<compile_context>
chip_gen: v7x
topology: tpu7x:2x2x1
jax: 0.10.0
libtpu: 0.0.40
codegen_flags: <defaults>
</compile_context>

<pallas_src>
import jax
import jax.numpy as jnp
import numpy as np
from jax import lax
from jax.experimental import pallas as pl
from jax.experimental.pallas import tpu as pltpu


def _make_cond_res_kernel(Nb, Cin, Cout, H, W, groups, eps,
                          has_skip, has_gm1, has_gm2, conv_dtype):
    HW = H * W
    gs_in = Cin // groups
    gs_out = Cout // groups

    # 9 conv taps: (offset_y, offset_x, lane-roll amount).
    taps = []
    for dy in range(3):
        for dx in range(3):
            oy, ox = dy - 1, dx - 1
            taps.append((oy, ox, (-(oy * W + ox)) % HW))

    def kernel(*refs):
        it = iter(refs)
        x_ref = next(it)                   # (Nb, Cin, HW)
        t_ref = next(it)                   # (Nb, t_dim, 1)
        mask_ref = next(it)                # (8, HW) f32 boundary masks (non-center taps)
        gm1_ref = next(it) if has_gm1 else None
        gamma1_ref, beta1_ref = next(it), next(it)     # (Cin, 1)
        w1_ref, cb1_ref = next(it), next(it)           # (Cout, 9*Cin+t_dim), (Cout, 1)
        gm2_ref = next(it) if has_gm2 else None
        gamma2_ref, beta2_ref = next(it), next(it)     # (Cout, 1)
        w2_ref, cb2_ref = next(it), next(it)           # (Cout, 9*Cout[+Cin]), (Cout, 1)
        o_ref = next(it)                   # (Nb, Cout, HW)

        masks = mask_ref[...]              # loaded once per grid step, shared by both convs
        w1 = w1_ref[...]
        w2 = w2_ref[...]

        def group_norm_silu(v, gm_ref, gamma_ref, beta_ref, gsize):
            # v: (C, HW) f32 -> GroupNorm(groups, C, eps) then SiLU; stats per image.
            inv_cnt = 1.0 / float(HW * gsize)
            s1 = jnp.sum(v, axis=1, keepdims=True)            # (C, 1)
            s2 = jnp.sum(v * v, axis=1, keepdims=True)        # (C, 1)
            if gsize > 1:
                # Single tiny dot aggregates BOTH moments over each group
                # (block-diagonal 0/1 mask, stays channel-major).
                s12 = jnp.concatenate([s1, s2], axis=1)       # (C, 2)
                g12 = jnp.dot(gm_ref[...], s12,
                              preferred_element_type=jnp.float32)
                gs1, gs2 = g12[:, 0:1], g12[:, 1:2]
            else:
                gs1, gs2 = s1, s2          # group size 1 (groups == C): identity
            mean = gs1 * inv_cnt
            var = jnp.maximum(gs2 * inv_cnt - mean * mean, 0.0)
            inv = lax.rsqrt(var + eps)
            xn = (v - mean) * (inv * gamma_ref[...]) + beta_ref[...]
            return xn * jax.nn.sigmoid(xn)                    # SiLU

        def im2col(h):
            # h: (C, HW) -> 9 pieces (C, HW); zero padding fused via mask multiply.
            pieces, mi = [], 0
            for oy, ox, shift in taps:
                if oy == 0 and ox == 0:
                    pieces.append(h)                          # center tap: always valid
                else:
                    rolled = pltpu.roll(h, shift=shift, axis=1)
                    pieces.append(rolled * masks[mi:mi + 1, :])
                    mi += 1
            return pieces

        # Short unrolled per-image loop: amortizes grid-step overhead while keeping
        # GroupNorm statistics strictly per image.
        for b in range(Nb):
            x_cm = x_ref[b]                                   # (Cin, HW)

            # ---- in_layer: GroupNorm -> SiLU -> Conv3x3 (+ fused cond Linear) ----
            h = group_norm_silu(x_cm, gm1_ref, gamma1_ref, beta1_ref, gs_in)
            tv = t_ref[b]                                     # (t_dim, 1)
            tv = tv * jax.nn.sigmoid(tv)                      # SiLU(t)
            t_rows = jnp.broadcast_to(tv, (tv.shape[0], HW))  # extra K rows
            col1 = jnp.concatenate(im2col(h) + [t_rows], axis=0)   # (9*Cin+t_dim, HW)
            h = jnp.dot(w1, col1.astype(conv_dtype),
                        preferred_element_type=jnp.float32) + cb1_ref[...]

            # ---- out_layer: GroupNorm -> SiLU -> Dropout(eval=id) -> Conv3x3 ----
            # TODO(synk): nn.Dropout(dp_rate) is identity in eval mode; training-mode
            #             stochastic masking (pltpu.prng_*) is not implemented.
            h = group_norm_silu(h, gm2_ref, gamma2_ref, beta2_ref, gs_out)
            pieces2 = im2col(h)
            if has_skip:
                pieces2 = pieces2 + [x_cm]        # fused 1x1 skip conv (extra K rows)
            col2 = jnp.concatenate(pieces2, axis=0)
            y = jnp.dot(w2, col2.astype(conv_dtype),
                        preferred_element_type=jnp.float32) + cb2_ref[...]
            if not has_skip:
                y = y + x_cm                      # identity skip connection
            o_ref[b] = y.astype(o_ref.dtype)

    return kernel


def cond_res_block(x, t, params, *, groups=32, eps=1e-6, block_n=None,
                   conv_dtype=jnp.float32):
    """Pallas forward of CondResBlock.  x: (N, Cin, H, W) NCHW, t: (N, t_dim)."""
    N, Cin, H, W = x.shape
    t_dim = t.shape[1]
    Cout = params["w1"].shape[0]
    HW = H * W
    has_skip = (Cin != Cout)
    assert Cin % groups == 0 and Cout % groups == 0
    has_gm1 = (Cin // groups) > 1
    has_gm2 = (Cout // groups) > 1

    f32 = jnp.float32
    as_col = lambda v: jnp.asarray(v).reshape(-1, 1).astype(f32)

    # Images per grid step (amortizes per-step overhead + resident-weight churn).
    if block_n is None:
        block_n = min(N, 8)
    Nb = max(1, min(block_n, N))
    Np = ((N + Nb - 1) // Nb) * Nb            # pad batch to a multiple of Nb

    x_flat = x.reshape(N, Cin, HW).astype(f32)   # free reshape, stays NCHW
    t_col = t.reshape(N, t_dim, 1).astype(f32)
    if Np != N:
        x_flat = jnp.concatenate([x_flat, jnp.zeros((Np - N, Cin, HW), f32)], axis=0)
        t_col = jnp.concatenate([t_col, jnp.zeros((Np - N, t_dim, 1), f32)], axis=0)

    def conv_mat(w):
        # (Cout, C, 3, 3) OIHW -> (Cout, 9*C); column index = (3*dy+dx)*C + ci
        co, ci = w.shape[0], w.shape[1]
        return jnp.transpose(w, (0, 2, 3, 1)).reshape(co, 9 * ci).astype(f32)

    def group_mask(C):
        gidx = np.arange(C) // (C // groups)
        return jnp.asarray((gidx[:, None] == gidx[None, :]).astype(np.float32))

    # 8 boundary masks (non-center taps), precomputed once, shared by both convs.
    ii, jj = np.divmod(np.arange(HW), W)
    rows = []
    for dy in range(3):
        for dx in range(3):
            oy, ox = dy - 1, dx - 1
            if oy == 0 and ox == 0:
                continue
            rows.append(((ii >= -oy) & (ii < H - oy) &
                         (jj >= -ox) & (jj < W - ox)).astype(np.float32))
    masks = jnp.asarray(np.stack(rows, axis=0))                      # (8, HW)

    # conv1 weights with the cond Linear fused in as extra K columns; bt folded.
    w1_aug = jnp.concatenate([conv_mat(params["w1"]),
                              jnp.asarray(params["wt"]).astype(f32)], axis=1)
    cb1 = as_col(params["b1"]) + as_col(params["bt"])
    # conv2 weights with the 1x1 skip conv fused in (if present); bskip folded.
    if has_skip:
        w2_aug = jnp.concatenate(
            [conv_mat(params["w2"]),
             jnp.asarray(params["wskip"]).astype(f32).reshape(Cout, Cin)], axis=1)
        cb2 = as_col(params["b2"]) + as_col(params["bskip"])
    else:
        w2_aug = conv_mat(params["w2"])
        cb2 = as_col(params["b2"])
    w1_aug = w1_aug.astype(conv_dtype)
    w2_aug = w2_aug.astype(conv_dtype)

    inputs = [x_flat, t_col, masks]
    if has_gm1:
        inputs.append(group_mask(Cin))
    inputs += [as_col(params["gn1_gamma"]), as_col(params["gn1_beta"]), w1_aug, cb1]
    if has_gm2:
        inputs.append(group_mask(Cout))
    inputs += [as_col(params["gn2_gamma"]), as_col(params["gn2_beta"]), w2_aug, cb2]

    in_specs = [
        pl.BlockSpec((Nb, Cin, HW), lambda n: (n, 0, 0)),
        pl.BlockSpec((Nb, t_dim, 1), lambda n: (n, 0, 0)),
    ]
    # Weights / biases / masks: full-array blocks, constant across the grid.
    # TODO(synk): single-buffer these (pl.Buffered(1)) when VMEM headroom matters
    #             at production channel counts.
    in_specs += [pl.BlockSpec(a.shape, lambda n, nd=a.ndim: (0,) * nd)
                 for a in inputs[2:]]

    # Explicit scoped-VMEM budget: double-buffered pipeline blocks + im2col slabs.
    k1 = 9 * Cin + t_dim
    k2 = 9 * Cout + (Cin if has_skip else 0)
    block_bytes = 4 * (Nb * (Cin + Cout) * HW + Nb * t_dim) \
        + sum(int(np.prod(a.shape)) * 4 for a in inputs[2:])
    temp_bytes = 4 * (k1 + k2 + 8 * max(Cin, Cout)) * HW
    vmem_limit = int(min(max(2 * block_bytes + 2 * temp_bytes, 16 << 20), 96 << 20))

    kernel = _make_cond_res_kernel(Nb, Cin, Cout, H, W, groups, eps,
                                   has_skip, has_gm1, has_gm2, conv_dtype)

    out = pl.pallas_call(
        kernel,
        out_shape=jax.ShapeDtypeStruct((Np, Cout, HW), f32),
        grid_spec=pltpu.PrefetchScalarGridSpec(
            num_scalar_prefetch=0,
            grid=(Np // Nb,),
            in_specs=in_specs,
            out_specs=pl.BlockSpec((Nb, Cout, HW), lambda n: (n, 0, 0)),
        ),
        compiler_params=pltpu.CompilerParams(
            dimension_semantics=("parallel",),
            vmem_limit_bytes=vmem_limit),
    )(*inputs)

    return out[:N].reshape(N, Cout, H, W)


# ----------------------------- pure-JAX reference -----------------------------
def _ref_cond_res_block(x, t, params, *, groups=32, eps=1e-6):
    def gn(v, gamma, beta):
        n, c, h, w = v.shape
        g = v.reshape(n, groups, c // groups, h, w)
        mean = g.mean(axis=(2, 3, 4), keepdims=True)
        var = g.var(axis=(2, 3, 4), keepdims=True)       # biased, like GroupNorm
        g = (g - mean) / jnp.sqrt(var + eps)
        return g.reshape(n, c, h, w) * gamma.reshape(1, c, 1, 1) + beta.reshape(1, c, 1, 1)

    def conv(v, w, b, pad):
        y = lax.conv_general_dilated(v, w, (1, 1), ((pad, pad), (pad, pad)),
                                     dimension_numbers=("NCHW", "OIHW", "NCHW"))
        return y + b.reshape(1, -1, 1, 1)

    silu = lambda v: v * jax.nn.sigmoid(v)

    h = conv(silu(gn(x, params["gn1_gamma"], params["gn1_beta"])),
             params["w1"], params["b1"], 1)
    cond = silu(t) @ params["wt"].T + params["bt"]
    h = h + cond[:, :, None, None]
    h = conv(silu(gn(h, params["gn2_gamma"], params["gn2_beta"])),
             params["w2"], params["b2"], 1)
    skip = conv(x, params["wskip"], params["bskip"], 0) if "wskip" in params else x
    return h + skip


if __name__ == "__main__":
    key = jax.random.PRNGKey(0)

    def conv_params(k, co, ci, ksz):
        bound = 1.0 / np.sqrt(ci * ksz * ksz)
        kw_, kb_ = jax.random.split(k)
        w = jax.random.uniform(kw_, (co, ci, ksz, ksz), minval=-bound, maxval=bound)
        b = jax.random.uniform(kb_, (co,), minval=-bound, maxval=bound)
        return w, b

    def make_case(k, N, Cin, Cout, H, W, t_dim):
        ks = jax.random.split(k, 10)
        x = jax.random.normal(ks[0], (N, Cin, H, W), dtype=jnp.float32)
        t = jax.random.normal(ks[1], (N, t_dim), dtype=jnp.float32)
        w1, b1 = conv_params(ks[2], Cout, Cin, 3)
        w2, b2 = conv_params(ks[3], Cout, Cout, 3)
        lb = 1.0 / np.sqrt(t_dim)
        kt1, kt2 = jax.random.split(ks[4])
        wt = jax.random.uniform(kt1, (Cout, t_dim), minval=-lb, maxval=lb)
        bt = jax.random.uniform(kt2, (Cout,), minval=-lb, maxval=lb)
        params = dict(
            gn1_gamma=1.0 + 0.1 * jax.random.normal(ks[5], (Cin,)),
            gn1_beta=0.1 * jax.random.normal(ks[6], (Cin,)),
            w1=w1, b1=b1, wt=wt, bt=bt,
            gn2_gamma=1.0 + 0.1 * jax.random.normal(ks[7], (Cout,)),
            gn2_beta=0.1 * jax.random.normal(ks[8], (Cout,)),
            w2=w2, b2=b2,
        )
        if Cin != Cout:   # PyTorch: skip_connection is a 1x1 conv only when Cin != Cout
            wsk, bsk = conv_params(ks[9], Cout, Cin, 1)
            params["wskip"], params["bskip"] = wsk, bsk
        return x, t, params

    kA, kB = jax.random.split(key)

    # Case A: Cin == Cout -> Identity skip; GroupNorm group size 1 (no group dot).
    # N=4, block_n=2 -> grid=(2,) (even, keeps both v7x TensorCores busy).
    xA, tA, pA = make_case(kA, N=4, Cin=32, Cout=32, H=16, W=16, t_dim=8)
    outA = jax.block_until_ready(cond_res_block(xA, tA, pA, block_n=2))
    refA = _ref_cond_res_block(xA, tA, pA)
    np.testing.assert_allclose(np.asarray(outA), np.asarray(refA), atol=2e-4, rtol=2e-4)

    # Case B: Cin != Cout -> fused 1x1 skip conv; GN2 group size 2 (group dot path);
    # N=3 with block_n=2 exercises the batch-padding path.
    xB, tB, pB = make_case(kB, N=3, Cin=32, Cout=64, H=16, W=16, t_dim=8)
    outB = jax.block_until_ready(cond_res_block(xB, tB, pB, block_n=2))
    refB = _ref_cond_res_block(xB, tB, pB)
    np.testing.assert_allclose(np.asarray(outB), np.asarray(refB), atol=2e-4, rtol=2e-4)

    assert outA.shape == (4, 32, 16, 16) and outB.shape == (3, 64, 16, 16)
    print("KERNEL_OK")
</pallas_src>

<mosaic_0001>
module attributes {stable_mosaic.version = 11 : i64} {
  func.func @kernel(%arg0: i32, %arg1: memref<2x32x256xf32, #tpu.memory_space<vmem>>, %arg2: memref<2x8x1xf32, #tpu.memory_space<vmem>>, %arg3: memref<8x256xf32, #tpu.memory_space<vmem>>, %arg4: memref<32x1xf32, #tpu.memory_space<vmem>>, %arg5: memref<32x1xf32, #tpu.memory_space<vmem>>, %arg6: memref<32x296xf32, #tpu.memory_space<vmem>>, %arg7: memref<32x1xf32, #tpu.memory_space<vmem>>, %arg8: memref<32x1xf32, #tpu.memory_space<vmem>>, %arg9: memref<32x1xf32, #tpu.memory_space<vmem>>, %arg10: memref<32x288xf32, #tpu.memory_space<vmem>>, %arg11: memref<32x1xf32, #tpu.memory_space<vmem>>, %arg12: memref<2x32x256xf32, #tpu.memory_space<vmem>>) attributes {dimension_semantics = [#tpu.dimension_semantics<parallel>], iteration_bounds = array<i64: 2>, scalar_prefetch = 0 : i64, scratch_operands = 0 : i64, tpu.core_type = #tpu.core_type<tc>, window_params = [{transform_indices = @transform_0, window_bounds = array<i64: 2, 32, 256>}, {transform_indices = @transform_1, window_bounds = array<i64: 2, 8, 1>}, {pipeline_mode = #tpu.pipeline_mode<synchronous>, transform_indices = @transform_2, window_bounds = array<i64: 8, 256>}, {pipeline_mode = #tpu.pipeline_mode<synchronous>, transform_indices = @transform_3, window_bounds = array<i64: 32, 1>}, {pipeline_mode = #tpu.pipeline_mode<synchronous>, transform_indices = @transform_4, window_bounds = array<i64: 32, 1>}, {pipeline_mode = #tpu.pipeline_mode<synchronous>, transform_indices = @transform_5, window_bounds = array<i64: 32, 296>}, {pipeline_mode = #tpu.pipeline_mode<synchronous>, transform_indices = @transform_6, window_bounds = array<i64: 32, 1>}, {pipeline_mode = #tpu.pipeline_mode<synchronous>, transform_indices = @transform_7, window_bounds = array<i64: 32, 1>}, {pipeline_mode = #tpu.pipeline_mode<synchronous>, transform_indices = @transform_8, window_bounds = array<i64: 32, 1>}, {pipeline_mode = #tpu.pipeline_mode<synchronous>, transform_indices = @transform_9, window_bounds = array<i64: 32, 288>}, {pipeline_mode = #tpu.pipeline_mode<synchronous>, transform_indices = @transform_10, window_bounds = array<i64: 32, 1>}, {transform_indices = @transform_11, window_bounds = array<i64: 2, 32, 256>}]} {
    %c0 = arith.constant 0 : index
    %c0_0 = arith.constant 0 : index
    %0 = vector.load %arg3[%c0, %c0_0] : memref<8x256xf32, #tpu.memory_space<vmem>>, vector<8x256xf32>
    %c0_1 = arith.constant 0 : index
    %c0_2 = arith.constant 0 : index
    %1 = vector.load %arg6[%c0_1, %c0_2] : memref<32x296xf32, #tpu.memory_space<vmem>>, vector<32x296xf32>
    %c0_3 = arith.constant 0 : index
    %c0_4 = arith.constant 0 : index
    %2 = vector.load %arg10[%c0_3, %c0_4] : memref<32x288xf32, #tpu.memory_space<vmem>>, vector<32x288xf32>
    %c0_5 = arith.constant 0 : index
    %c0_6 = arith.constant 0 : index
    %c0_7 = arith.constant 0 : index
    %3 = vector.load %arg1[%c0_5, %c0_6, %c0_7] : memref<2x32x256xf32, #tpu.memory_space<vmem>>, vector<1x32x256xf32>
    %4 = vector.shape_cast %3 : vector<1x32x256xf32> to vector<32x256xf32>
    %cst = arith.constant dense<0.000000e+00> : vector<32xf32>
    %5 = vector.multi_reduction <add>, %4, %cst [1] : vector<32x256xf32> to vector<32xf32>
    %6 = vector.shape_cast %5 : vector<32xf32> to vector<32x1xf32>
    %7 = arith.mulf %4, %4 : vector<32x256xf32>
    %cst_8 = arith.constant dense<0.000000e+00> : vector<32xf32>
    %8 = vector.multi_reduction <add>, %7, %cst_8 [1] : vector<32x256xf32> to vector<32xf32>
    %9 = vector.shape_cast %8 : vector<32xf32> to vector<32x1xf32>
    %cst_9 = arith.constant 3.906250e-03 : f32
    %10 = vector.broadcast %cst_9 : f32 to vector<32x1xf32>
    %11 = arith.mulf %6, %10 : vector<32x1xf32>
    %cst_10 = arith.constant 3.906250e-03 : f32
    %12 = vector.broadcast %cst_10 : f32 to vector<32x1xf32>
    %13 = arith.mulf %9, %12 : vector<32x1xf32>
    %14 = arith.mulf %11, %11 : vector<32x1xf32>
    %15 = arith.subf %13, %14 : vector<32x1xf32>
    %cst_11 = arith.constant 0.000000e+00 : f32
    %16 = vector.broadcast %cst_11 : f32 to vector<32x1xf32>
    %17 = arith.maximumf %15, %16 : vector<32x1xf32>
    %cst_12 = arith.constant 9.99999997E-7 : f32
    %18 = vector.broadcast %cst_12 : f32 to vector<32x1xf32>
    %19 = arith.addf %17, %18 : vector<32x1xf32>
    %20 = math.rsqrt %19 : vector<32x1xf32>
    %21 = vector.broadcast %11 : vector<32x1xf32> to vector<32x256xf32>
    %22 = arith.subf %4, %21 : vector<32x256xf32>
    %c0_13 = arith.constant 0 : index
    %c0_14 = arith.constant 0 : index
    %23 = vector.load %arg4[%c0_13, %c0_14] : memref<32x1xf32, #tpu.memory_space<vmem>>, vector<32x1xf32>
    %24 = arith.mulf %20, %23 : vector<32x1xf32>
    %25 = vector.broadcast %24 : vector<32x1xf32> to vector<32x256xf32>
    %26 = arith.mulf %22, %25 : vector<32x256xf32>
    %c0_15 = arith.constant 0 : index
    %c0_16 = arith.constant 0 : index
    %27 = vector.load %arg5[%c0_15, %c0_16] : memref<32x1xf32, #tpu.memory_space<vmem>>, vector<32x1xf32>
    %28 = vector.broadcast %27 : vector<32x1xf32> to vector<32x256xf32>
    %29 = arith.addf %26, %28 : vector<32x256xf32>
    %30 = arith.negf %29 : vector<32x256xf32>
    %31 = math.exp %30 : vector<32x256xf32>
    %cst_17 = arith.constant 1.000000e+00 : f32
    %32 = vector.broadcast %cst_17 : f32 to vector<32x256xf32>
    %33 = arith.addf %32, %31 : vector<32x256xf32>
    %34 = arith.divf %32, %33 : vector<32x256xf32>
    %35 = arith.mulf %29, %34 : vector<32x256xf32>
    %c0_18 = arith.constant 0 : index
    %c0_19 = arith.constant 0 : index
    %c0_20 = arith.constant 0 : index
    %36 = vector.load %arg2[%c0_18, %c0_19, %c0_20] : memref<2x8x1xf32, #tpu.memory_space<vmem>>, vector<1x8x1xf32>
    %37 = vector.shape_cast %36 : vector<1x8x1xf32> to vector<8x1xf32>
    %38 = arith.negf %37 : vector<8x1xf32>
    %39 = math.exp %38 : vector<8x1xf32>
    %cst_21 = arith.constant 1.000000e+00 : f32
    %40 = vector.broadcast %cst_21 : f32 to vector<8x1xf32>
    %41 = arith.addf %40, %39 : vector<8x1xf32>
    %42 = arith.divf %40, %41 : vector<8x1xf32>
    %43 = arith.mulf %37, %42 : vector<8x1xf32>
    %44 = vector.shape_cast %43 : vector<8x1xf32> to vector<8x1xf32>
    %45 = vector.broadcast %44 : vector<8x1xf32> to vector<8x256xf32>
    %c17_i32 = arith.constant 17 : i32
    %46 = tpu.dynamic_rotate %35 by %c17_i32 dim 1 : vector<32x256xf32>, i32 -> vector<32x256xf32>
    %47 = vector.extract_strided_slice %0 {offsets = [0, 0], sizes = [1, 256], strides = [1, 1]} : vector<8x256xf32> to vector<1x256xf32>
    %48 = vector.broadcast %47 : vector<1x256xf32> to vector<32x256xf32>
    %49 = arith.mulf %46, %48 : vector<32x256xf32>
    %c16_i32 = arith.constant 16 : i32
    %50 = tpu.dynamic_rotate %35 by %c16_i32 dim 1 : vector<32x256xf32>, i32 -> vector<32x256xf32>
    %51 = vector.extract_strided_slice %0 {offsets = [1, 0], sizes = [1, 256], strides = [1, 1]} : vector<8x256xf32> to vector<1x256xf32>
    %52 = vector.broadcast %51 : vector<1x256xf32> to vector<32x256xf32>
    %53 = arith.mulf %50, %52 : vector<32x256xf32>
    %c15_i32 = arith.constant 15 : i32
    %54 = tpu.dynamic_rotate %35 by %c15_i32 dim 1 : vector<32x256xf32>, i32 -> vector<32x256xf32>
    %55 = vector.extract_strided_slice %0 {offsets = [2, 0], sizes = [1, 256], strides = [1, 1]} : vector<8x256xf32> to vector<1x256xf32>
    %56 = vector.broadcast %55 : vector<1x256xf32> to vector<32x256xf32>
    %57 = arith.mulf %54, %56 : vector<32x256xf32>
    %c1_i32 = arith.constant 1 : i32
    %58 = tpu.dynamic_rotate %35 by %c1_i32 dim 1 : vector<32x256xf32>, i32 -> vector<32x256xf32>
    %59 = vector.extract_strided_slice %0 {offsets = [3, 0], sizes = [1, 256], strides = [1, 1]} : vector<8x256xf32> to vector<1x256xf32>
    %60 = vector.broadcast %59 : vector<1x256xf32> to vector<32x256xf32>
    %61 = arith.mulf %58, %60 : vector<32x256xf32>
    %c255_i32 = arith.constant 255 : i32
    %62 = tpu.dynamic_rotate %35 by %c255_i32 dim 1 : vector<32x256xf32>, i32 -> vector<32x256xf32>
    %63 = vector.extract_strided_slice %0 {offsets = [4, 0], sizes = [1, 256], strides = [1, 1]} : vector<8x256xf32> to vector<1x256xf32>
    %64 = vector.broadcast %63 : vector<1x256xf32> to vector<32x256xf32>
    %65 = arith.mulf %62, %64 : vector<32x256xf32>
    %c241_i32 = arith.constant 241 : i32
    %66 = tpu.dynamic_rotate %35 by %c241_i32 dim 1 : vector<32x256xf32>, i32 -> vector<32x256xf32>
    %67 = vector.extract_strided_slice %0 {offsets = [5, 0], sizes = [1, 256], strides = [1, 1]} : vector<8x256xf32> to vector<1x256xf32>
    %68 = vector.broadcast %67 : vector<1x256xf32> to vector<32x256xf32>
    %69 = arith.mulf %66, %68 : vector<32x256xf32>
    %c240_i32 = arith.constant 240 : i32
    %70 = tpu.dynamic_rotate %35 by %c240_i32 dim 1 : vector<32x256xf32>, i32 -> vector<32x256xf32>
    %71 = vector.extract_strided_slice %0 {offsets = [6, 0], sizes = [1, 256], strides = [1, 1]} : vector<8x256xf32> to vector<1x256xf32>
    %72 = vector.broadcast %71 : vector<1x256xf32> to vector<32x256xf32>
    %73 = arith.mulf %70, %72 : vector<32x256xf32>
    %c239_i32 = arith.constant 239 : i32
    %74 = tpu.dynamic_rotate %35 by %c239_i32 dim 1 : vector<32x256xf32>, i32 -> vector<32x256xf32>
    %75 = vector.extract_strided_slice %0 {offsets = [7, 0], sizes = [1, 256], strides = [1, 1]} : vector<8x256xf32> to vector<1x256xf32>
    %76 = vector.broadcast %75 : vector<1x256xf32> to vector<32x256xf32>
    %77 = arith.mulf %74, %76 : vector<32x256xf32>
    %78 = tpu.concatenate %49, %53, %57, %61, %35, %65, %69, %73, %77, %45 in 0 : vector<32x256xf32>, vector<32x256xf32>, vector<32x256xf32>, vector<32x256xf32>, vector<32x256xf32>, vector<32x256xf32>, vector<32x256xf32>, vector<32x256xf32>, vector<32x256xf32>, vector<8x256xf32> -> vector<296x256xf32>
    %cst_22 = arith.constant dense<0.000000e+00> : vector<32x256xf32>
    %79 = tpu.matmul %1, %78, %cst_22 {dimension_numbers = #tpu.dot_dimension_numbers<[1], [0], [0], [1], [0, 0, 1, 1], [], []>} : vector<32x296xf32>, vector<296x256xf32>, vector<32x256xf32> -> vector<32x256xf32>
    %c0_23 = arith.constant 0 : index
    %c0_24 = arith.constant 0 : index
    %80 = vector.load %arg7[%c0_23, %c0_24] : memref<32x1xf32, #tpu.memory_space<vmem>>, vector<32x1xf32>
    %81 = vector.broadcast %80 : vector<32x1xf32> to vector<32x256xf32>
    %82 = arith.addf %79, %81 : vector<32x256xf32>
    %cst_25 = arith.constant dense<0.000000e+00> : vector<32xf32>
    %83 = vector.multi_reduction <add>, %82, %cst_25 [1] : vector<32x256xf32> to vector<32xf32>
    %84 = vector.shape_cast %83 : vector<32xf32> to vector<32x1xf32>
    %85 = arith.mulf %82, %82 : vector<32x256xf32>
    %cst_26 = arith.constant dense<0.000000e+00> : vector<32xf32>
    %86 = vector.multi_reduction <add>, %85, %cst_26 [1] : vector<32x256xf32> to vector<32xf32>
    %87 = vector.shape_cast %86 : vector<32xf32> to vector<32x1xf32>
    %cst_27 = arith.constant 3.906250e-03 : f32
    %88 = vector.broadcast %cst_27 : f32 to vector<32x1xf32>
    %89 = arith.mulf %84, %88 : vector<32x1xf32>
    %cst_28 = arith.constant 3.906250e-03 : f32
    %90 = vector.broadcast %cst_28 : f32 to vector<32x1xf32>
    %91 = arith.mulf %87, %90 : vector<32x1xf32>
    %92 = arith.mulf %89, %89 : vector<32x1xf32>
    %93 = arith.subf %91, %92 : vector<32x1xf32>
    %cst_29 = arith.constant 0.000000e+00 : f32
    %94 = vector.broadcast %cst_29 : f32 to vector<32x1xf32>
    %95 = arith.maximumf %93, %94 : vector<32x1xf32>
    %cst_30 = arith.constant 9.99999997E-7 : f32
    %96 = vector.broadcast %cst_30 : f32 to vector<32x1xf32>
    %97 = arith.addf %95, %96 : vector<32x1xf32>
    %98 = math.rsqrt %97 : vector<32x1xf32>
    %99 = vector.broadcast %89 : vector<32x1xf32> to vector<32x256xf32>
    %100 = arith.subf %82, %99 : vector<32x256xf32>
    %c0_31 = arith.constant 0 : index
    %c0_32 = arith.constant 0 : index
    %101 = vector.load %arg8[%c0_31, %c0_32] : memref<32x1xf32, #tpu.memory_space<vmem>>, vector<32x1xf32>
    %102 = arith.mulf %98, %101 : vector<32x1xf32>
    %103 = vector.broadcast %102 : vector<32x1xf32> to vector<32x256xf32>
    %104 = arith.mulf %100, %103 : vector<32x256xf32>
    %c0_33 = arith.constant 0 : index
    %c0_34 = arith.constant 0 : index
    %105 = vector.load %arg9[%c0_33, %c0_34] : memref<32x1xf32, #tpu.memory_space<vmem>>, vector<32x1xf32>
    %106 = vector.broadcast %105 : vector<32x1xf32> to vector<32x256xf32>
    %107 = arith.addf %104, %106 : vector<32x256xf32>
    %108 = arith.negf %107 : vector<32x256xf32>
    %109 = math.exp %108 : vector<32x256xf32>
    %cst_35 = arith.constant 1.000000e+00 : f32
    %110 = vector.broadcast %cst_35 : f32 to vector<32x256xf32>
    %111 = arith.addf %110, %109 : vector<32x256xf32>
    %112 = arith.divf %110, %111 : vector<32x256xf32>
    %113 = arith.mulf %107, %112 : vector<32x256xf32>
    %c17_i32_36 = arith.constant 17 : i32
    %114 = tpu.dynamic_rotate %113 by %c17_i32_36 dim 1 : vector<32x256xf32>, i32 -> vector<32x256xf32>
    %115 = vector.extract_strided_slice %0 {offsets = [0, 0], sizes = [1, 256], strides = [1, 1]} : vector<8x256xf32> to vector<1x256xf32>
    %116 = vector.broadcast %115 : vector<1x256xf32> to vector<32x256xf32>
    %117 = arith.mulf %114, %116 : vector<32x256xf32>
    %c16_i32_37 = arith.constant 16 : i32
    %118 = tpu.dynamic_rotate %113 by %c16_i32_37 dim 1 : vector<32x256xf32>, i32 -> vector<32x256xf32>
    %119 = vector.extract_strided_slice %0 {offsets = [1, 0], sizes = [1, 256], strides = [1, 1]} : vector<8x256xf32> to vector<1x256xf32>
    %120 = vector.broadcast %119 : vector<1x256xf32> to vector<32x256xf32>
    %121 = arith.mulf %118, %120 : vector<32x256xf32>
    %c15_i32_38 = arith.constant 15 : i32
    %122 = tpu.dynamic_rotate %113 by %c15_i32_38 dim 1 : vector<32x256xf32>, i32 -> vector<32x256xf32>
    %123 = vector.extract_strided_slice %0 {offsets = [2, 0], sizes = [1, 256], strides = [1, 1]} : vector<8x256xf32> to vector<1x256xf32>
    %124 = vector.broadcast %123 : vector<1x256xf32> to vector<32x256xf32>
    %125 = arith.mulf %122, %124 : vector<32x256xf32>
    %c1_i32_39 = arith.constant 1 : i32
    %126 = tpu.dynamic_rotate %113 by %c1_i32_39 dim 1 : vector<32x256xf32>, i32 -> vector<32x256xf32>
    %127 = vector.extract_strided_slice %0 {offsets = [3, 0], sizes = [1, 256], strides = [1, 1]} : vector<8x256xf32> to vector<1x256xf32>
    %128 = vector.broadcast %127 : vector<1x256xf32> to vector<32x256xf32>
    %129 = arith.mulf %126, %128 : vector<32x256xf32>
    %c255_i32_40 = arith.constant 255 : i32
    %130 = tpu.dynamic_rotate %113 by %c255_i32_40 dim 1 : vector<32x256xf32>, i32 -> vector<32x256xf32>
    %131 = vector.extract_strided_slice %0 {offsets = [4, 0], sizes = [1, 256], strides = [1, 1]} : vector<8x256xf32> to vector<1x256xf32>
    %132 = vector.broadcast %131 : vector<1x256xf32> to vector<32x256xf32>
    %133 = arith.mulf %130, %132 : vector<32x256xf32>
    %c241_i32_41 = arith.constant 241 : i32
    %134 = tpu.dynamic_rotate %113 by %c241_i32_41 dim 1 : vector<32x256xf32>, i32 -> vector<32x256xf32>
    %135 = vector.extract_strided_slice %0 {offsets = [5, 0], sizes = [1, 256], strides = [1, 1]} : vector<8x256xf32> to vector<1x256xf32>
    %136 = vector.broadcast %135 : vector<1x256xf32> to vector<32x256xf32>
    %137 = arith.mulf %134, %136 : vector<32x256xf32>
    %c240_i32_42 = arith.constant 240 : i32
    %138 = tpu.dynamic_rotate %113 by %c240_i32_42 dim 1 : vector<32x256xf32>, i32 -> vector<32x256xf32>
    %139 = vector.extract_strided_slice %0 {offsets = [6, 0], sizes = [1, 256], strides = [1, 1]} : vector<8x256xf32> to vector<1x256xf32>
    %140 = vector.broadcast %139 : vector<1x256xf32> to vector<32x256xf32>
    %141 = arith.mulf %138, %140 : vector<32x256xf32>
    %c239_i32_43 = arith.constant 239 : i32
    %142 = tpu.dynamic_rotate %113 by %c239_i32_43 dim 1 : vector<32x256xf32>, i32 -> vector<32x256xf32>
    %143 = vector.extract_strided_slice %0 {offsets = [7, 0], sizes = [1, 256], strides = [1, 1]} : vector<8x256xf32> to vector<1x256xf32>
    %144 = vector.broadcast %143 : vector<1x256xf32> to vector<32x256xf32>
    %145 = arith.mulf %142, %144 : vector<32x256xf32>
    %146 = tpu.concatenate %117, %121, %125, %129, %113, %133, %137, %141, %145 in 0 : vector<32x256xf32>, vector<32x256xf32>, vector<32x256xf32>, vector<32x256xf32>, vector<32x256xf32>, vector<32x256xf32>, vector<32x256xf32>, vector<32x256xf32>, vector<32x256xf32> -> vector<288x256xf32>
    %cst_44 = arith.constant dense<0.000000e+00> : vector<32x256xf32>
    %147 = tpu.matmul %2, %146, %cst_44 {dimension_numbers = #tpu.dot_dimension_numbers<[1], [0], [0], [1], [0, 0, 1, 1], [], []>} : vector<32x288xf32>, vector<288x256xf32>, vector<32x256xf32> -> vector<32x256xf32>
    %c0_45 = arith.constant 0 : index
    %c0_46 = arith.constant 0 : index
    %148 = vector.load %arg11[%c0_45, %c0_46] : memref<32x1xf32, #tpu.memory_space<vmem>>, vector<32x1xf32>
    %149 = vector.broadcast %148 : vector<32x1xf32> to vector<32x256xf32>
    %150 = arith.addf %147, %149 : vector<32x256xf32>
    %151 = arith.addf %150, %4 : vector<32x256xf32>
    %c0_47 = arith.constant 0 : index
    %c0_48 = arith.constant 0 : index
    %c0_49 = arith.constant 0 : index
    %152 = vector.load %arg12[%c0_47, %c0_48, %c0_49] : memref<2x32x256xf32, #tpu.memory_space<vmem>>, vector<1x32x256xf32>
    %153 = vector.shape_cast %152 : vector<1x32x256xf32> to vector<32x256xf32>
    %154 = vector.shape_cast %151 : vector<32x256xf32> to vector<1x32x256xf32>
    tpu.vector_store %arg12[%c0_47, %c0_48, %c0_49], %154 {strides = array<i32>} : memref<2x32x256xf32, #tpu.memory_space<vmem>>, vector<1x32x256xf32>,
    %c1 = arith.constant 1 : index
    %c0_50 = arith.constant 0 : index
    %c0_51 = arith.constant 0 : index
    %155 = vector.load %arg1[%c1, %c0_50, %c0_51] : memref<2x32x256xf32, #tpu.memory_space<vmem>>, vector<1x32x256xf32>
    %156 = vector.shape_cast %155 : vector<1x32x256xf32> to vector<32x256xf32>
    %cst_52 = arith.constant dense<0.000000e+00> : vector<32xf32>
    %157 = vector.multi_reduction <add>, %156, %cst_52 [1] : vector<32x256xf32> to vector<32xf32>
    %158 = vector.shape_cast %157 : vector<32xf32> to vector<32x1xf32>
    %159 = arith.mulf %156, %156 : vector<32x256xf32>
    %cst_53 = arith.constant dense<0.000000e+00> : vector<32xf32>
    %160 = vector.multi_reduction <add>, %159, %cst_53 [1] : vector<32x256xf32> to vector<32xf32>
    %161 = vector.shape_cast %160 : vector<32xf32> to vector<32x1xf32>
    %cst_54 = arith.constant 3.906250e-03 : f32
    %162 = vector.broadcast %cst_54 : f32 to vector<32x1xf32>
    %163 = arith.mulf %158, %162 : vector<32x1xf32>
    %cst_55 = arith.constant 3.906250e-03 : f32
    %164 = vector.broadcast %cst_55 : f32 to vector<32x1xf32>
    %165 = arith.mulf %161, %164 : vector<32x1xf32>
    %166 = arith.mulf %163, %163 : vector<32x1xf32>
    %167 = arith.subf %165, %166 : vector<32x1xf32>
    %cst_56 = arith.constant 0.000000e+00 : f32
    %168 = vector.broadcast %cst_56 : f32 to vector<32x1xf32>
    %169 = arith.maximumf %167, %168 : vector<32x1xf32>
    %cst_57 = arith.constant 9.99999997E-7 : f32
    %170 = vector.broadcast %cst_57 : f32 to vector<32x1xf32>
    %171 = arith.addf %169, %170 : vector<32x1xf32>
    %172 = math.rsqrt %171 : vector<32x1xf32>
    %173 = vector.broadcast %163 : vector<32x1xf32> to vector<32x256xf32>
    %174 = arith.subf %156, %173 : vector<32x256xf32>
    %c0_58 = arith.constant 0 : index
    %c0_59 = arith.constant 0 : index
    %175 = vector.load %arg4[%c0_58, %c0_59] : memref<32x1xf32, #tpu.memory_space<vmem>>, vector<32x1xf32>
    %176 = arith.mulf %172, %175 : vector<32x1xf32>
    %177 = vector.broadcast %176 : vector<32x1xf32> to vector<32x256xf32>
    %178 = arith.mulf %174, %177 : vector<32x256xf32>
    %c0_60 = arith.constant 0 : index
    %c0_61 = arith.constant 0 : index
    %179 = vector.load %arg5[%c0_60, %c0_61] : memref<32x1xf32, #tpu.memory_space<vmem>>, vector<32x1xf32>
    %180 = vector.broadcast %179 : vector<32x1xf32> to vector<32x256xf32>
    %181 = arith.addf %178, %180 : vector<32x256xf32>
    %182 = arith.negf %181 : vector<32x256xf32>
    %183 = math.exp %182 : vector<32x256xf32>
    %cst_62 = arith.constant 1.000000e+00 : f32
    %184 = vector.broadcast %cst_62 : f32 to vector<32x256xf32>
    %185 = arith.addf %184, %183 : vector<32x256xf32>
    %186 = arith.divf %184, %185 : vector<32x256xf32>
    %187 = arith.mulf %181, %186 : vector<32x256xf32>
    %c1_63 = arith.constant 1 : index
    %c0_64 = arith.constant 0 : index
    %c0_65 = arith.constant 0 : index
    %188 = vector.load %arg2[%c1_63, %c0_64, %c0_65] : memref<2x8x1xf32, #tpu.memory_space<vmem>>, vector<1x8x1xf32>
    %189 = vector.shape_cast %188 : vector<1x8x1xf32> to vector<8x1xf32>
    %190 = arith.negf %189 : vector<8x1xf32>
    %191 = math.exp %190 : vector<8x1xf32>
    %cst_66 = arith.constant 1.000000e+00 : f32
    %192 = vector.broadcast %cst_66 : f32 to vector<8x1xf32>
    %193 = arith.addf %192, %191 : vector<8x1xf32>
    %194 = arith.divf %192, %193 : vector<8x1xf32>
    %195 = arith.mulf %189, %194 : vector<8x1xf32>
    %196 = vector.shape_cast %195 : vector<8x1xf32> to vector<8x1xf32>
    %197 = vector.broadcast %196 : vector<8x1xf32> to vector<8x256xf32>
    %c17_i32_67 = arith.constant 17 : i32
    %198 = tpu.dynamic_rotate %187 by %c17_i32_67 dim 1 : vector<32x256xf32>, i32 -> vector<32x256xf32>
    %199 = vector.extract_strided_slice %0 {offsets = [0, 0], sizes = [1, 256], strides = [1, 1]} : vector<8x256xf32> to vector<1x256xf32>
    %200 = vector.broadcast %199 : vector<1x256xf32> to vector<32x256xf32>
    %201 = arith.mulf %198, %200 : vector<32x256xf32>
    %c16_i32_68 = arith.constant 16 : i32
    %202 = tpu.dynamic_rotate %187 by %c16_i32_68 dim 1 : vector<32x256xf32>, i32 -> vector<32x256xf32>
    %203 = vector.extract_strided_slice %0 {offsets = [1, 0], sizes = [1, 256], strides = [1, 1]} : vector<8x256xf32> to vector<1x256xf32>
    %204 = vector.broadcast %203 : vector<1x256xf32> to vector<32x256xf32>
    %205 = arith.mulf %202, %204 : vector<32x256xf32>
    %c15_i32_69 = arith.constant 15 : i32
    %206 = tpu.dynamic_rotate %187 by %c15_i32_69 dim 1 : vector<32x256xf32>, i32 -> vector<32x256xf32>
    %207 = vector.extract_strided_slice %0 {offsets = [2, 0], sizes = [1, 256], strides = [1, 1]} : vector<8x256xf32> to vector<1x256xf32>
    %208 = vector.broadcast %207 : vector<1x256xf32> to vector<32x256xf32>
    %209 = arith.mulf %206, %208 : vector<32x256xf32>
    %c1_i32_70 = arith.constant 1 : i32
    %210 = tpu.dynamic_rotate %187 by %c1_i32_70 dim 1 : vector<32x256xf32>, i32 -> vector<32x256xf32>
    %211 = vector.extract_strided_slice %0 {offsets = [3, 0], sizes = [1, 256], strides = [1, 1]} : vector<8x256xf32> to vector<1x256xf32>
    %212 = vector.broadcast %211 : vector<1x256xf32> to vector<32x256xf32>
    %213 = arith.mulf %210, %212 : vector<32x256xf32>
    %c255_i32_71 = arith.constant 255 : i32
    %214 = tpu.dynamic_rotate %187 by %c255_i32_71 dim 1 : vector<32x256xf32>, i32 -> vector<32x256xf32>
    %215 = vector.extract_strided_slice %0 {offsets = [4, 0], sizes = [1, 256], strides = [1, 1]} : vector<8x256xf32> to vector<1x256xf32>
    %216 = vector.broadcast %215 : vector<1x256xf32> to vector<32x256xf32>
    %217 = arith.mulf %214, %216 : vector<32x256xf32>
    %c241_i32_72 = arith.constant 241 : i32
    %218 = tpu.dynamic_rotate %187 by %c241_i32_72 dim 1 : vector<32x256xf32>, i32 -> vector<32x256xf32>
    %219 = vector.extract_strided_slice %0 {offsets = [5, 0], sizes = [1, 256], strides = [1, 1]} : vector<8x256xf32> to vector<1x256xf32>
    %220 = vector.broadcast %219 : vector<1x256xf32> to vector<32x256xf32>
    %221 = arith.mulf %218, %220 : vector<32x256xf32>
    %c240_i32_73 = arith.constant 240 : i32
    %222 = tpu.dynamic_rotate %187 by %c240_i32_73 dim 1 : vector<32x256xf32>, i32 -> vector<32x256xf32>
    %223 = vector.extract_strided_slice %0 {offsets = [6, 0], sizes = [1, 256], strides = [1, 1]} : vector<8x256xf32> to vector<1x256xf32>
    %224 = vector.broadcast %223 : vector<1x256xf32> to vector<32x256xf32>
    %225 = arith.mulf %222, %224 : vector<32x256xf32>
    %c239_i32_74 = arith.constant 239 : i32
    %226 = tpu.dynamic_rotate %187 by %c239_i32_74 dim 1 : vector<32x256xf32>, i32 -> vector<32x256xf32>
    %227 = vector.extract_strided_slice %0 {offsets = [7, 0], sizes = [1, 256], strides = [1, 1]} : vector<8x256xf32> to vector<1x256xf32>
    %228 = vector.broadcast %227 : vector<1x256xf32> to vector<32x256xf32>
    %229 = arith.mulf %226, %228 : vector<32x256xf32>
    %230 = tpu.concatenate %201, %205, %209, %213, %187, %217, %221, %225, %229, %197 in 0 : vector<32x256xf32>, vector<32x256xf32>, vector<32x256xf32>, vector<32x256xf32>, vector<32x256xf32>, vector<32x256xf32>, vector<32x256xf32>, vector<32x256xf32>, vector<32x256xf32>, vector<8x256xf32> -> vector<296x256xf32>
    %cst_75 = arith.constant dense<0.000000e+00> : vector<32x256xf32>
    %231 = tpu.matmul %1, %230, %cst_75 {dimension_numbers = #tpu.dot_dimension_numbers<[1], [0], [0], [1], [0, 0, 1, 1], [], []>} : vector<32x296xf32>, vector<296x256xf32>, vector<32x256xf32> -> vector<32x256xf32>
    %c0_76 = arith.constant 0 : index
    %c0_77 = arith.constant 0 : index
    %232 = vector.load %arg7[%c0_76, %c0_77] : memref<32x1xf32, #tpu.memory_space<vmem>>, vector<32x1xf32>
    %233 = vector.broadcast %232 : vector<32x1xf32> to vector<32x256xf32>
    %234 = arith.addf %231, %233 : vector<32x256xf32>
    %cst_78 = arith.constant dense<0.000000e+00> : vector<32xf32>
    %235 = vector.multi_reduction <add>, %234, %cst_78 [1] : vector<32x256xf32> to vector<32xf32>
    %236 = vector.shape_cast %235 : vector<32xf32> to vector<32x1xf32>
    %237 = arith.mulf %234, %234 : vector<32x256xf32>
    %cst_79 = arith.constant dense<0.000000e+00> : vector<32xf32>
    %238 = vector.multi_reduction <add>, %237, %cst_79 [1] : vector<32x256xf32> to vector<32xf32>
    %239 = vector.shape_cast %238 : vector<32xf32> to vector<32x1xf32>
    %cst_80 = arith.constant 3.906250e-03 : f32
    %240 = vector.broadcast %cst_80 : f32 to vector<32x1xf32>
    %241 = arith.mulf %236, %240 : vector<32x1xf32>
    %cst_81 = arith.constant 3.906250e-03 : f32
    %242 = vector.broadcast %cst_81 : f32 to vector<32x1xf32>
    %243 = arith.mulf %239, %242 : vector<32x1xf32>
    %244 = arith.mulf %241, %241 : vector<32x1xf32>
    %245 = arith.subf %243, %244 : vector<32x1xf32>
    %cst_82 = arith.constant 0.000000e+00 : f32
    %246 = vector.broadcast %cst_82 : f32 to vector<32x1xf32>
    %247 = arith.maximumf %245, %246 : vector<32x1xf32>
    %cst_83 = arith.constant 9.99999997E-7 : f32
    %248 = vector.broadcast %cst_83 : f32 to vector<32x1xf32>
    %249 = arith.addf %247, %248 : vector<32x1xf32>
    %250 = math.rsqrt %249 : vector<32x1xf32>
    %251 = vector.broadcast %241 : vector<32x1xf32> to vector<32x256xf32>
    %252 = arith.subf %234, %251 : vector<32x256xf32>
    %c0_84 = arith.constant 0 : index
    %c0_85 = arith.constant 0 : index
    %253 = vector.load %arg8[%c0_84, %c0_85] : memref<32x1xf32, #tpu.memory_space<vmem>>, vector<32x1xf32>
    %254 = arith.mulf %250, %253 : vector<32x1xf32>
    %255 = vector.broadcast %254 : vector<32x1xf32> to vector<32x256xf32>
    %256 = arith.mulf %252, %255 : vector<32x256xf32>
    %c0_86 = arith.constant 0 : index
    %c0_87 = arith.constant 0 : index
    %257 = vector.load %arg9[%c0_86, %c0_87] : memref<32x1xf32, #tpu.memory_space<vmem>>, vector<32x1xf32>
    %258 = vector.broadcast %257 : vector<32x1xf32> to vector<32x256xf32>
    %259 = arith.addf %256, %258 : vector<32x256xf32>
    %260 = arith.negf %259 : vector<32x256xf32>
    %261 = math.exp %260 : vector<32x256xf32>
    %cst_88 = arith.constant 1.000000e+00 : f32
    %262 = vector.broadcast %cst_88 : f32 to vector<32x256xf32>
    %263 = arith.addf %262, %261 : vector<32x256xf32>
    %264 = arith.divf %262, %263 : vector<32x256xf32>
    %265 = arith.mulf %259, %264 : vector<32x256xf32>
    %c17_i32_89 = arith.constant 17 : i32
    %266 = tpu.dynamic_rotate %265 by %c17_i32_89 dim 1 : vector<32x256xf32>, i32 -> vector<32x256xf32>
    %267 = vector.extract_strided_slice %0 {offsets = [0, 0], sizes = [1, 256], strides = [1, 1]} : vector<8x256xf32> to vector<1x256xf32>
    %268 = vector.broadcast %267 : vector<1x256xf32> to vector<32x256xf32>
    %269 = arith.mulf %266, %268 : vector<32x256xf32>
    %c16_i32_90 = arith.constant 16 : i32
    %270 = tpu.dynamic_rotate %265 by %c16_i32_90 dim 1 : vector<32x256xf32>, i32 -> vector<32x256xf32>
    %271 = vector.extract_strided_slice %0 {offsets = [1, 0], sizes = [1, 256], strides = [1, 1]} : vector<8x256xf32> to vector<1x256xf32>
    %272 = vector.broadcast %271 : vector<1x256xf32> to vector<32x256xf32>
    %273 = arith.mulf %270, %272 : vector<32x256xf32>
    %c15_i32_91 = arith.constant 15 : i32
    %274 = tpu.dynamic_rotate %265 by %c15_i32_91 dim 1 : vector<32x256xf32>, i32 -> vector<32x256xf32>
    %275 = vector.extract_strided_slice %0 {offsets = [2, 0], sizes = [1, 256], strides = [1, 1]} : vector<8x256xf32> to vector<1x256xf32>
    %276 = vector.broadcast %275 : vector<1x256xf32> to vector<32x256xf32>
    %277 = arith.mulf %274, %276 : vector<32x256xf32>
    %c1_i32_92 = arith.constant 1 : i32
    %278 = tpu.dynamic_rotate %265 by %c1_i32_92 dim 1 : vector<32x256xf32>, i32 -> vector<32x256xf32>
    %279 = vector.extract_strided_slice %0 {offsets = [3, 0], sizes = [1, 256], strides = [1, 1]} : vector<8x256xf32> to vector<1x256xf32>
    %280 = vector.broadcast %279 : vector<1x256xf32> to vector<32x256xf32>
    %281 = arith.mulf %278, %280 : vector<32x256xf32>
    %c255_i32_93 = arith.constant 255 : i32
    %282 = tpu.dynamic_rotate %265 by %c255_i32_93 dim 1 : vector<32x256xf32>, i32 -> vector<32x256xf32>
    %283 = vector.extract_strided_slice %0 {offsets = [4, 0], sizes = [1, 256], strides = [1, 1]} : vector<8x256xf32> to vector<1x256xf32>
    %284 = vector.broadcast %283 : vector<1x256xf32> to vector<32x256xf32>
    %285 = arith.mulf %282, %284 : vector<32x256xf32>
    %c241_i32_94 = arith.constant 241 : i32
    %286 = tpu.dynamic_rotate %265 by %c241_i32_94 dim 1 : vector<32x256xf32>, i32 -> vector<32x256xf32>
    %287 = vector.extract_strided_slice %0 {offsets = [5, 0], sizes = [1, 256], strides = [1, 1]} : vector<8x256xf32> to vector<1x256xf32>
    %288 = vector.broadcast %287 : vector<1x256xf32> to vector<32x256xf32>
    %289 = arith.mulf %286, %288 : vector<32x256xf32>
    %c240_i32_95 = arith.constant 240 : i32
    %290 = tpu.dynamic_rotate %265 by %c240_i32_95 dim 1 : vector<32x256xf32>, i32 -> vector<32x256xf32>
    %291 = vector.extract_strided_slice %0 {offsets = [6, 0], sizes = [1, 256], strides = [1, 1]} : vector<8x256xf32> to vector<1x256xf32>
    %292 = vector.broadcast %291 : vector<1x256xf32> to vector<32x256xf32>
    %293 = arith.mulf %290, %292 : vector<32x256xf32>
    %c239_i32_96 = arith.constant 239 : i32
    %294 = tpu.dynamic_rotate %265 by %c239_i32_96 dim 1 : vector<32x256xf32>, i32 -> vector<32x256xf32>
    %295 = vector.extract_strided_slice %0 {offsets = [7, 0], sizes = [1, 256], strides = [1, 1]} : vector<8x256xf32> to vector<1x256xf32>
    %296 = vector.broadcast %295 : vector<1x256xf32> to vector<32x256xf32>
    %297 = arith.mulf %294, %296 : vector<32x256xf32>
    %298 = tpu.concatenate %269, %273, %277, %281, %265, %285, %289, %293, %297 in 0 : vector<32x256xf32>, vector<32x256xf32>, vector<32x256xf32>, vector<32x256xf32>, vector<32x256xf32>, vector<32x256xf32>, vector<32x256xf32>, vector<32x256xf32>, vector<32x256xf32> -> vector<288x256xf32>
    %cst_97 = arith.constant dense<0.000000e+00> : vector<32x256xf32>
    %299 = tpu.matmul %2, %298, %cst_97 {dimension_numbers = #tpu.dot_dimension_numbers<[1], [0], [0], [1], [0, 0, 1, 1], [], []>} : vector<32x288xf32>, vector<288x256xf32>, vector<32x256xf32> -> vector<32x256xf32>
    %c0_98 = arith.constant 0 : index
    %c0_99 = arith.constant 0 : index
    %300 = vector.load %arg11[%c0_98, %c0_99] : memref<32x1xf32, #tpu.memory_space<vmem>>, vector<32x1xf32>
    %301 = vector.broadcast %300 : vector<32x1xf32> to vector<32x256xf32>
    %302 = arith.addf %299, %301 : vector<32x256xf32>
    %303 = arith.addf %302, %156 : vector<32x256xf32>
    %c1_100 = arith.constant 1 : index
    %c0_101 = arith.constant 0 : index
    %c0_102 = arith.constant 0 : index
    %304 = vector.load %arg12[%c1_100, %c0_101, %c0_102] : memref<2x32x256xf32, #tpu.memory_space<vmem>>, vector<1x32x256xf32>
    %305 = vector.shape_cast %304 : vector<1x32x256xf32> to vector<32x256xf32>
    %306 = vector.shape_cast %303 : vector<32x256xf32> to vector<1x32x256xf32>
    tpu.vector_store %arg12[%c1_100, %c0_101, %c0_102], %306 {strides = array<i32>} : memref<2x32x256xf32, #tpu.memory_space<vmem>>, vector<1x32x256xf32>,
    return
  }
  func.func @transform_0(%arg0: i32) -> (i32, i32, i32) {
    %c0_i32 = arith.constant 0 : i32
    %c0_i32_0 = arith.constant 0 : i32
    %c0_i32_1 = arith.constant 0 : i32
    return %arg0, %c0_i32, %c0_i32_0 : i32, i32, i32
  }
  func.func @transform_1(%arg0: i32) -> (i32, i32, i32) {
    %c0_i32 = arith.constant 0 : i32
    %c0_i32_0 = arith.constant 0 : i32
    %c0_i32_1 = arith.constant 0 : i32
    return %arg0, %c0_i32, %c0_i32_0 : i32, i32, i32
  }
  func.func @transform_2(%arg0: i32) -> (i32, i32) {
    %c0_i32 = arith.constant 0 : i32
    %c0_i32_0 = arith.constant 0 : i32
    %c0_i32_1 = arith.constant 0 : i32
    return %c0_i32, %c0_i32_0 : i32, i32
  }
  func.func @transform_3(%arg0: i32) -> (i32, i32) {
    %c0_i32 = arith.constant 0 : i32
    %c0_i32_0 = arith.constant 0 : i32
    %c0_i32_1 = arith.constant 0 : i32
    return %c0_i32, %c0_i32_0 : i32, i32
  }
  func.func @transform_4(%arg0: i32) -> (i32, i32) {
    %c0_i32 = arith.constant 0 : i32
    %c0_i32_0 = arith.constant 0 : i32
    %c0_i32_1 = arith.constant 0 : i32
    return %c0_i32, %c0_i32_0 : i32, i32
  }
  func.func @transform_5(%arg0: i32) -> (i32, i32) {
    %c0_i32 = arith.constant 0 : i32
    %c0_i32_0 = arith.constant 0 : i32
    %c0_i32_1 = arith.constant 0 : i32
    return %c0_i32, %c0_i32_0 : i32, i32
  }
  func.func @transform_6(%arg0: i32) -> (i32, i32) {
    %c0_i32 = arith.constant 0 : i32
    %c0_i32_0 = arith.constant 0 : i32
    %c0_i32_1 = arith.constant 0 : i32
    return %c0_i32, %c0_i32_0 : i32, i32
  }
  func.func @transform_7(%arg0: i32) -> (i32, i32) {
    %c0_i32 = arith.constant 0 : i32
    %c0_i32_0 = arith.constant 0 : i32
    %c0_i32_1 = arith.constant 0 : i32
    return %c0_i32, %c0_i32_0 : i32, i32
  }
  func.func @transform_8(%arg0: i32) -> (i32, i32) {
    %c0_i32 = arith.constant 0 : i32
    %c0_i32_0 = arith.constant 0 : i32
    %c0_i32_1 = arith.constant 0 : i32
    return %c0_i32, %c0_i32_0 : i32, i32
  }
  func.func @transform_9(%arg0: i32) -> (i32, i32) {
    %c0_i32 = arith.constant 0 : i32
    %c0_i32_0 = arith.constant 0 : i32
    %c0_i32_1 = arith.constant 0 : i32
    return %c0_i32, %c0_i32_0 : i32, i32
  }
  func.func @transform_10(%arg0: i32) -> (i32, i32) {
    %c0_i32 = arith.constant 0 : i32
    %c0_i32_0 = arith.constant 0 : i32
    %c0_i32_1 = arith.constant 0 : i32
    return %c0_i32, %c0_i32_0 : i32, i32
  }
  func.func @transform_11(%arg0: i32) -> (i32, i32, i32) {
    %c0_i32 = arith.constant 0 : i32
    %c0_i32_0 = arith.constant 0 : i32
    %c0_i32_1 = arith.constant 0 : i32
    return %arg0, %c0_i32, %c0_i32_0 : i32, i32, i32
  }
}

</mosaic_0001>

<bundles_post_ra>
// kernel: tpu_custom_call.1
= control target key start
LH: loop header
LB: loop body
LE: loop exit
PB: predicated region body
PF: predicated region fallthrough
CT: control target
= control target key end

     0   :  { %16 = vsyncpa [#allocation3], 0  ;;  %s6788_s0 = inlined_call_operand.hbm [shape: f32[4,32,256], index: 0, kind: input, shape index: {}]   ;;  %s6789_s1 = inlined_call_operand.vmem [shape: f32[4,8,1], index: 1, kind: input, shape index: {}]   ;;  %s6790_s2 = inlined_call_operand.vmem [shape: f32[8,256], index: 2, kind: input, shape index: {}]   ;;  %s6791_s3 = inlined_call_operand.vmem [shape: f32[32,1], index: 3, kind: input, shape index: {}]   ;;  %s6792_s4 = inlined_call_operand.vmem [shape: f32[32,1], index: 4, kind: input, shape index: {}]   ;;  %s6793_s5 = inlined_call_operand.vmem [shape: f32[32,296], index: 5, kind: input, shape index: {}]   ;;  %s6794_s6 = inlined_call_operand.vmem [shape: f32[32,1], index: 6, kind: input, shape index: {}]   ;;  %s6795_s7 = inlined_call_operand.vmem [shape: f32[32,1], index: 7, kind: input, shape index: {}]   ;;  %s6796_s8 = inlined_call_operand.vmem [shape: f32[32,1], index: 8, kind: input, shape index: {}]   ;;  %s6797_s9 = inlined_call_operand.vmem [shape: f32[32,288], index: 9, kind: input, shape index: {}]   ;;  %s6798_s10 = inlined_call_operand.vmem [shape: f32[32,1], index: 10, kind: input, shape index: {}]   ;;  %s6799_s11 = inlined_call_operand.hbm [shape: f32[4,32,256], index: 11, kind: output, shape index: {}]  }
   0x1   :  { %18 = vsyncpa [#allocation3 + $0x1], 0 }
   0x2   :  { %19 = vsyncpa [#allocation4], 0 }
   0x3   :  { %21 = vsyncpa [#allocation4 + $0x1], 0  ;;  %s4192_s17 = smov 0   ;;  %s4194_s18 = smov 0  }
   0x4   :  { %s4196_s19 = smov 0   ;;  %s4198_s20 = smov 0  }
   0x5 LB: > { %6849 = sst [smem:[#allocation8_spill]] %s4111_s19  ;;  %s4213_s21 = sadd.s32 4294967295, %s4115_s20   ;;  %s4115_s20 = sphi %s4198_s20, %s6918_s20   ;;  %s4111_s19 = sphi %s4196_s19, %s6915_s19   ;;  %s4107_s18 = sphi %s4194_s18, %s6917_s18   ;;  %s4103_s17 = sphi %s4192_s17, %s6916_s17  }
   0x6   : > { %s3333_s22 = sadd.s32 4294967294, %s4115_s20   ;;  %s4217_s23 = sadd.s32 1, %s4115_s20  }
   0x7   : > { %s34_s24 = sadd.s32 1, %s4111_s19  ;;  %s31_s25 = ssub.s32 %s4115_s20, %s4217_s23 }
   0x8   : > { %p41_p0 = scmp.ne.s32.totalorder %s4111_s19, %s4107_s18  ;;  %p32_p1 = scmp.eq.s32.totalorder %s31_s25, 0 }
   0x9   : > { %p42_p2 = scmp.eq.s32.totalorder %s4115_s20, 0  ;;  %p47_p3 = scmp.ne.s32.totalorder %s4107_s18, %s4103_s17 }
   0xa   : > { %p48_p4 = scmp.eq.s32.totalorder %s4213_s21, 0  ;;  %p286_p7 = scmp.eq.s32.totalorder %s4213_s21, 1 }
   0xb   : > { %s4229_s26 = scalar_select %p32_p1, %s4111_s19, %s34_s24  }
   0xc   : > { %p4231_p5 = por %p42_p2, %p41_p0  ;;  %p4235_p6 = por %p48_p4, %p47_p3 }
   0xd   : > { %6850 = sst [smem:[#allocation9_spill]] %s4229_s26  ;;  %p292_p8 = scmp.eq.s32.totalorder %s3333_s22, 1 }
   0xe   : > { %p3786_p10 = scmp.lt.s32.totalorder %s4115_s20, 2  ;;  %p4242_p11 = por %p286_p7, %p41_p0 }
   0xf   : > { %p4246_p12 = por %p292_p8, %p47_p3  ;;  %s339_s12 = sand.u32 1, %s4111_s19  }
  0x10   : > { %s6853_s29 = scalar_select %p4242_p11, 1, 0 }
  0x11   : > { %s6854_s30 = scalar_select %p4246_p12, 1, 0 }
  0x12   : > { %s3419_s13 = sshll.u32 %s4115_s20, 11  ;;  %s3336_s14 = sshll.u32 %s339_s12, 7 }
  0x13   : > { %s4255_s24 = scalar_lea.hbm %s6788_s0, %s3419_s13  ;;  %s343_s22 = scalar_lea.vmem [#allocation2], %s3336_s14 }
  0x14   : > { %s351_s25 = sshll.u32 %s343_s22, 4  ;;  %p4259_p13 = pnand %p3786_p10, %p4231_p5  ;;  %s4263_s25 = int_to_ptr.vmem [resolvable:$true] %s351_s25 }
  0x15   : > { %s4265_s19 = scalar_lea.sflag [#allocation3], %s339_s12  ;;  %s4019_s15 = scalar_lea.hbm %s4255_s24, 2048 }
  0x16   : > { %p4020_p0 = scmp.ne.s32.totalorder %s4255_s24, %s4019_s15  ;;  %p4021_p1 = pneg %p4259_p13 }
  0x17   : > { %s4024_s14 = scalar_lea.hbm %s6788_s0, 4096  ;;  %p4025_p4 = scmp.lt.u32.totalorder %s4255_s24, %s6788_s0 }
  0x18   : > { %p4022_p2 = pnand %p4021_p1, %p4020_p0  ;;  %p4026_p5 = scmp.lt.u32.totalorder %s4024_s14, %s4019_s15 }
  0x19   : > { %p4028_p8 = scmp.lt.u32.totalorder %s4019_s15, %s4255_s24 }
  0x1a   : > { %p4023_p3 = pneg %p4022_p2  ;;  %p4027_p7 = por %p4026_p5, %p4025_p4 }
  0x1c   : > { %p4029_p10 = por %p4028_p8, %p4027_p7 }
  0x1e   : > { %p4030_p9 = pnand %p4029_p10, %p4023_p3 }
  0x20   : > { %4033 = shalt.err (!%p4030_p9)
}
  0x21   : > { %s4034_s12 = scalar_lea.vmem %s4263_s25, 2048  ;;  %s4117_s13 = smov [#allocation2]  }
  0x22   : > { %p4035_p0 = scmp.ne.s32.totalorder %s4263_s25, %s4034_s12  ;;  %s4039_s27 = sshll.u32 %s4117_s13, 4  ;;  %s4040_s27 = int_to_ptr.vmem [resolvable:$false] %s4039_s27 }
  0x23   : > { %s4041_s16 = scalar_lea.vmem %s4040_s27, 4096  ;;  %p4042_p11 = scmp.lt.s32.totalorder %s4263_s25, %s4040_s27 }
  0x24   : > { %p4037_p2 = pnand %p4035_p0, %p4021_p1  ;;  %p4043_p4 = scmp.lt.s32.totalorder %s4041_s16, %s4034_s12 }
  0x26   : > { %p4038_p12 = pneg %p4037_p2  ;;  %p4044_p5 = por %p4043_p4, %p4042_p11 }
  0x28   : > { %p4045_p7 = pnand %p4044_p5, %p4038_p12 }
  0x2a   : > { %4048 = shalt.err (!%p4045_p7)
}
  0x2b   : > { %s4118_s15 = smov 256   ;;  %s4119_s14 = smov 16  }
  0x2c   : > { %3781 = dma.hbm_to_vmem [thread:$0]  (!%p4259_p13), %s4255_s24, 2048, %s4263_s25, %s4265_s19, %s4118_s15, %s4118_s15, %s4119_s14  }
  0x2d   : > { %p3340_p9 = scmp.ge.s32.totalorder %s4115_s20, 1  ;;  %p368_p1 = scmp.lt.s32.totalorder %s4115_s20, 3 }
  0x2f   : > { %p369_p3 = pnand %p3340_p9, %p368_p1 }
  0x31   : > { %372 = sbr.rel (%p369_p3) target bundleno = 1823 (0x71f), region = 64 }
  0x38   : > { %s4296_s22 = sand.u32 1, %s4107_s18  }
  0x39   : > { %s6802_s12 = sshll.u32 %s4296_s22, 7  ;;  %s375_s13 = scalar_lea.sflag [#allocation3], %s4296_s22 }
  0x3a   : > { %s4302_s27 = scalar_lea.vmem [#allocation2], %s6802_s12 }
  0x3b   : > { %4094 = dma.done.wait (%p4235_p6), %s375_s13, 2048  }
  0x3c   : > { %4096 = vsyncadd (%p4235_p6), %s375_s13, 4294965248  ;;  %v4120_v0 = vmov 0   ;;  %v4309_v1 = vld [vmem:[%s4302_s27 + $0x30] sm:$0xff]  ;;  %v4312_v2 = vld [vmem:[%s4302_s27 + $0x38] sm:$0xff]  ;;  %s3343_s19 = sshll.u32 %s4213_s21, 1  ;;  %s6817_s16 = smov 17  }
  0x3d   : > { %3833 = vset.pattern.permute.xlu1 %v4120_v0  ;;  %3834 = vset.pattern.permute.xlu0 %v4120_v0  ;;  %v4315_v3 = vld [vmem:[%s4302_s27] sm:$0xff]  ;;  %v473_v4 = vadd.f32 %v4312_v2, %v4309_v1  ;;  %v4320_v5 = vld [vmem:[%s4302_s27 + $0x8] sm:$0xff]  ;;  %v4325_v7 = vld [vmem:[%s4302_s27 + $0x10] sm:$0xff]  ;;  %v482_v18 = vmul.f32 %v4309_v1, %v4309_v1  ;;  %v483_v19 = vmul.f32 %v4312_v2, %v4312_v2  ;;  %p424_p6 = scmp.lt.s32.totalorder %s3343_s19, 3  ;;  %s6811_s15 = smov 16   ;;  %vm1023_vm8 = vcmask 326656  }
  0x3e   : > { %v476_v6 = vmul.f32 %v4315_v3, %v4315_v3  ;;  %v4328_v8 = vld [vmem:[%s4302_s27 + $0x18] sm:$0xff]  ;;  %v464_v9 = vadd.f32 %v4320_v5, %v4315_v3  ;;  %v477_v10 = vmul.f32 %v4320_v5, %v4320_v5  ;;  %v478_v11 = vmul.f32 %v4325_v7, %v4325_v7  ;;  %v4341_v15 = vld [vmem:[%s4302_s27 + $0x20] sm:$0xff]  ;;  %v4344_v16 = vld [vmem:[%s4302_s27 + $0x28] sm:$0xff]  ;;  %s6809_s14 = smov 15   ;;  %s6807_s13 = smov 1  }
  0x3f   : > { %474 = vadd.xlane.f32.xlu1 %v473_v4  ;;  %v479_v12 = vmul.f32 %v4328_v8, %v4328_v8  ;;  %v467_v14 = vadd.f32 %v4328_v8, %v4325_v7  ;;  %v470_v20 = vadd.f32 %v4344_v16, %v4341_v15  ;;  %v480_v21 = vmul.f32 %v4341_v15, %v4341_v15  ;;  %v4357_v25 = vld [vmem:[%s4302_s27 + $0x50] sm:$0xff]  ;;  %v4360_v26 = vld [vmem:[%s4302_s27 + $0x58] sm:$0xff]  ;;  %v4363_v27 = vld [vmem:[%s4302_s27 + $0x40] sm:$0xff]  ;;  %s6920_s19 = smov (!%p424_p6, %s3343_s19), 3  ;;  %s6815_s28 = smov 112  }
  0x40   : > { %465 = vadd.xlane.f32.xlu0 %v464_v9  ;;  %v484_v13 = vadd.f32 %v477_v10, %v476_v6  ;;  %v481_v22 = vmul.f32 %v4344_v16, %v4344_v16  ;;  %v493_v23 = vadd.f32 %v483_v19, %v482_v18  ;;  %v4366_v28 = vld [vmem:[%s4302_s27 + $0x48] sm:$0xff]  ;;  %v1905_v29 = vadd.f32 %v4360_v26, %v4357_v25  ;;  %v4382_v37 = vld [vmem:[%s4302_s27 + $0x70] sm:$0xff]  ;;  %v4385_v38 = vld [vmem:[%s4302_s27 + $0x78] sm:$0xff]  ;;  %s3344_s26 = sshll.u32 %s6920_s19, 3  ;;  %s6805_s19 = smov 127  }
  0x41   : > { %v487_v17 = vadd.f32 %v479_v12, %v478_v11  ;;  %v1916_v30 = vmul.f32 %v4357_v25, %v4357_v25  ;;  %v1917_v31 = vmul.f32 %v4360_v26, %v4360_v26  ;;  %v1902_v32 = vadd.f32 %v4366_v28, %v4363_v27  ;;  %v4388_v39 = vld [vmem:[%s4302_s27 + $0x60] sm:$0xff]  ;;  %v4391_v40 = vld [vmem:[%s4302_s27 + $0x68] sm:$0xff]  ;;  %s4408_s25 = scalar_lea.vmem %s6789_s1, %s3344_s26  ;;  %v570_v55 = vld [vmem:[%s6792_s4 + $0x10] sm:$0xff]  ;;  %s6803_s26 = smov 113  }
  0x42   : > { %v490_v24 = vadd.f32 %v481_v22, %v480_v21  ;;  %v1914_v33 = vmul.f32 %v4363_v27, %v4363_v27  ;;  %v1915_v34 = vmul.f32 %v4366_v28, %v4366_v28  ;;  %v1911_v41 = vadd.f32 %v4385_v38, %v4382_v37  ;;  %v656_v49 = vld [vmem:[%s4408_s25] sm:$0xff]  ;;  %v569_v53 = vld [vmem:[%s6792_s4 + $0x8] sm:$0xff]  ;;  %v571_v56 = vld [vmem:[%s6792_s4 + $0x18] sm:$0xff]  ;;  %s6813_s24 = smov 111   ;;  %s6859_s12 = smov 113  }
  0x43   : > { %485 = vadd.xlane.f32.xlu1 %v484_v13  ;;  %v1925_v35 = vadd.f32 %v1917_v31, %v1916_v30  ;;  %v1920_v42 = vmul.f32 %v4382_v37, %v4382_v37  ;;  %v1921_v43 = vmul.f32 %v4385_v38, %v4385_v38  ;;  %v1908_v44 = vadd.f32 %v4391_v40, %v4388_v39  ;;  %v568_v51 = vld [vmem:[%s6792_s4] sm:$0xff]  ;;  %p6911_p12 = scmp.ne.s32.totalorder %s6853_s29, 0 }
  0x44   : > { %468 = vadd.xlane.f32.xlu0 %v467_v14  ;;  %v1922_v36 = vadd.f32 %v1915_v34, %v1914_v33  ;;  %v1918_v45 = vmul.f32 %v4388_v39, %v4388_v39  ;;  %v1919_v46 = vmul.f32 %v4391_v40, %v4391_v40  ;;  %v3353_v50 = vmul.f32 -1.442695, %v656_v49 }
  0x45   : > { %v1931_v47 = vadd.f32 %v1921_v43, %v1920_v42  ;;  %vm1686_vm9 = vcmask 261120  }
  0x46   : > { %v1928_v48 = vadd.f32 %v1919_v46, %v1918_v45  ;;  %3835 = vpow2.f32 %v3353_v50 }
  0x47   : > { %488 = vadd.xlane.f32.xlu1 %v487_v17 }
  0x48   : > { %471 = vadd.xlane.f32.xlu0 %v470_v20 }
  0x4b   : > { %494 = vadd.xlane.f32.xlu1 %v493_v23 }
  0x4c   : > { %491 = vadd.xlane.f32.xlu0 %v490_v24 }
  0x4f   : > { %1906 = vadd.xlane.f32.xlu1 %v1905_v29 }
  0x50   : > { %1903 = vadd.xlane.f32.xlu0 %v1902_v32  ;;  %v3836_v52 = vpop.eup %3835 }
  0x51   : > { %v660_v54 = vadd.f32 1.0, %v3836_v52  ;;  %v532_v52 = vld [vmem:[%s6791_s3] sm:$0xff] }
  0x53   : > { %1926 = vadd.xlane.f32.xlu1 %v1925_v35  ;;  %3837 = vrcp.f32 %v660_v54 }
  0x54   : > { %1923 = vadd.xlane.f32.xlu0 %v1922_v36 }
  0x57   : > { %1912 = vadd.xlane.f32.xlu1 %v1911_v41 }
  0x58   : > { %1909 = vadd.xlane.f32.xlu0 %v1908_v44 }
  0x5b   : > { %1932 = vadd.xlane.f32.xlu1 %v1931_v47 }
  0x5c   : > { %1929 = vadd.xlane.f32.xlu0 %v1928_v48 }
  0x5d   : > { %v3838_v57 = vpop.eup %3837 }
  0x5e   : > { %v663_v58 = vmul.f32 %v3838_v57, %v656_v49 }
  0x6c   : > { %574 = vperm.xlu1 %3833, %v568_v51  }
  0x70   : > { %579 = vperm.xlu1 %3833, %v569_v53  }
  0x72   : > { %2017 = vperm.xlu0 %3834, %v569_v53  }
  0x74   : > { %584 = vperm.xlu1 %3833, %v570_v55  }
  0x76   : > { %2027 = vperm.xlu0 %3834, %v571_v56  }
  0x78   : > { %589 = vperm.xlu1 %3833, %v571_v56  }
  0x7c   : > { %2012 = vperm.xlu1 %3833, %v568_v51  }
  0x80   : > { %2022 = vperm.xlu1 %3833, %v570_v55  }
  0x84   : > { %666 = vperm.xlu1 %3833, %v663_v58  }
  0xcc   : > { %v475_v59 = vpop.xlane.xlu1 %474 }
  0xcd   : > { %v466_v60 = vpop.xlane.xlu0 %465  ;;  %v4429_v11 = vmul.f32 0.00390625, %v475_v59 }
  0xce   : > { %v4423_v61 = vmul.f32 0.00390625, %v466_v60 }
  0xcf   : > { %v507_v23 = vmul.f32 %v4429_v11, %v4429_v11 }
  0xd0   : > { %v486_v62 = vpop.xlane.xlu1 %485  ;;  %v504_v0 = vmul.f32 %v4423_v61, %v4423_v61 }
  0xd1   : > { %v500_v63 = vmul.f32 0.00390625, %v486_v62  ;;  %v469_v4 = vpop.xlane.xlu0 %468 }
  0xd2   : > { %v4427_v6 = vmul.f32 0.00390625, %v469_v4 }
  0xd3   : > { %v508_v9 = vsub.f32 %v500_v63, %v504_v0  ;;  %v533_v63 = vld [vmem:[%s6791_s3 + $0x8] sm:$0xff] }
  0xd4   : > { %v489_v10 = vpop.xlane.xlu1 %488  ;;  %v505_v14 = vmul.f32 %v4427_v6, %v4427_v6 }
  0xd5   : > { %v512_v12 = vmax.f32 %v508_v9, 0.0  ;;  %v501_v13 = vmul.f32 0.00390625, %v489_v10  ;;  %v472_v17 = vpop.xlane.xlu0 %471 }
  0xd6   : > { %v4433_v18 = vmul.f32 0.00390625, %v472_v17 }
  0xd7   : > { %v516_v19 = vadd.f32 1e-06, %v512_v12  ;;  %v509_v20 = vsub.f32 %v501_v13, %v505_v14 }
  0xd8   : > { %v495_v21 = vpop.xlane.xlu1 %494  ;;  %v506_v30 = vmul.f32 %v4433_v18, %v4433_v18 }
  0xd9   : > { %3839 = vrsqrt.f32 %v516_v19  ;;  %v513_v22 = vmax.f32 %v509_v20, 0.0  ;;  %v503_v24 = vmul.f32 0.00390625, %v495_v21  ;;  %v492_v29 = vpop.xlane.xlu0 %491 }
  0xda   : > { %v502_v31 = vmul.f32 0.00390625, %v492_v29 }
  0xdb   : > { %v517_v32 = vadd.f32 1e-06, %v513_v22  ;;  %v511_v33 = vsub.f32 %v503_v24, %v507_v23  ;;  %v534_v23 = vld [vmem:[%s6791_s3 + $0x10] sm:$0xff] }
  0xdc   : > { %v510_v34 = vsub.f32 %v502_v31, %v506_v30  ;;  %v1907_v35 = vpop.xlane.xlu1 %1906 }
  0xdd   : > { %3841 = vrsqrt.f32 %v517_v32  ;;  %v515_v36 = vmax.f32 %v511_v33, 0.0  ;;  %v4439_v41 = vmul.f32 0.00390625, %v1907_v35  ;;  %v1904_v42 = vpop.xlane.xlu0 %1903  ;;  %v535_v35 = vld [vmem:[%s6791_s3 + $0x18] sm:$0xff] }
  0xde   : > { %v514_v43 = vmax.f32 %v510_v34, 0.0  ;;  %v4441_v44 = vmul.f32 0.00390625, %v1904_v42 }
  0xdf   : > { %v1943_v45 = vmul.f32 %v4439_v41, %v4439_v41  ;;  %v519_v46 = vadd.f32 1e-06, %v515_v36 }
  0xe0   : > { %v518_v47 = vadd.f32 1e-06, %v514_v43  ;;  %v1927_v48 = vpop.xlane.xlu1 %1926  ;;  %v1942_v49 = vmul.f32 %v4441_v44, %v4441_v44 }
  0xe1   : > { %v1939_v50 = vmul.f32 0.00390625, %v1927_v48  ;;  %v1924_v51 = vpop.xlane.xlu0 %1923 }
  0xe2   : > { %3843 = vrsqrt.f32 %v518_v47  ;;  %v1938_v53 = vmul.f32 0.00390625, %v1924_v51 }
  0xe3   : > { %v3840_v54 = vpop.eup %3839  ;;  %v1947_v55 = vsub.f32 %v1939_v50, %v1943_v45  ;;  %3845 = vrsqrt.f32 %v519_v46 }
  0xe4   : > { %v1946_v56 = vsub.f32 %v1938_v53, %v1942_v49  ;;  %v1913_v57 = vpop.xlane.xlu1 %1912  ;;  %v536_v58 = vmul.f32 %v3840_v54, %v532_v52 }
  0xe5   : > { %v1951_v59 = vmax.f32 %v1947_v55, 0.0  ;;  %v4450_v60 = vmul.f32 0.00390625, %v1913_v57  ;;  %v1910_v62 = vpop.xlane.xlu0 %1909 }
  0xe6   : > { %v1950_v0 = vmax.f32 %v1946_v56, 0.0  ;;  %v4455_v4 = vmul.f32 0.00390625, %v1910_v62  ;;  %542 = vperm.xlu0 %3834, %v536_v58  }
  0xe7   : > { %v3842_v9 = vpop.eup %3841  ;;  %v1955_v10 = vadd.f32 1e-06, %v1951_v59  ;;  %v1945_v12 = vmul.f32 %v4450_v60, %v4450_v60 }
  0xe8   : > { %v1954_v13 = vadd.f32 1e-06, %v1950_v0  ;;  %v1933_v14 = vpop.xlane.xlu1 %1932  ;;  %v1944_v17 = vmul.f32 %v4455_v4, %v4455_v4  ;;  %v537_v19 = vmul.f32 %v3842_v9, %v533_v63  ;;  %v525_v0 = vsub.f32 %v4320_v5, %v4423_v61 }
  0xe9   : > { %3847 = vrsqrt.f32 %v1955_v10  ;;  %v1941_v20 = vmul.f32 0.00390625, %v1933_v14  ;;  %v1930_v21 = vpop.xlane.xlu0 %1929 }
  0xea   : > { %3849 = vrsqrt.f32 %v1954_v13  ;;  %v1940_v22 = vmul.f32 0.00390625, %v1930_v21  ;;  %547 = vperm.xlu1 %3833, %v537_v19   ;;  %v526_v19 = vsub.f32 %v4325_v7, %v4427_v6  ;;  %v529_v7 = vsub.f32 %v4344_v16, %v4433_v18 }
  0xeb   : > { %v1949_v24 = vsub.f32 %v1941_v20, %v1945_v12  ;;  %v527_v20 = vsub.f32 %v4328_v8, %v4427_v6 }
  0xec   : > { %v3844_v29 = vpop.eup %3843  ;;  %v1948_v30 = vsub.f32 %v1940_v22, %v1944_v17  ;;  %v575_v54 = vpop.permute.xlu1 %574 }
  0xed   : > { %v1953_v31 = vmax.f32 %v1949_v24, 0.0  ;;  %v538_v32 = vmul.f32 %v3844_v29, %v534_v23  ;;  %v3846_v33 = vpop.eup %3845  ;;  %v528_v29 = vsub.f32 %v4341_v15, %v4433_v18 }
  0xee   : > { %v1952_v34 = vmax.f32 %v1948_v30, 0.0  ;;  %v539_v43 = vmul.f32 %v3846_v33, %v535_v35  ;;  %v530_v33 = vsub.f32 %v4309_v1, %v4429_v11 }
  0xef   : > { %v1957_v36 = vadd.f32 1e-06, %v1953_v31  ;;  %552 = vperm.xlu1 %3833, %v538_v32  }
  0xf0   : > { %v1956_v42 = vadd.f32 1e-06, %v1952_v34  ;;  %v580_v55 = vpop.permute.xlu1 %579 }
  0xf1   : > { %3851 = vrsqrt.f32 %v1957_v36  ;;  %v4469_v59 = vpop.permute.xlu0 %2017  ;;  %v531_v36 = vsub.f32 %v4312_v2, %v4429_v11 }
  0xf2   : > { %3853 = vrsqrt.f32 %v1956_v42 }
  0xf3   : > { %v3848_v45 = vpop.eup %3847  ;;  %557 = vperm.xlu1 %3833, %v539_v43  }
  0xf4   : > { %v3850_v46 = vpop.eup %3849  ;;  %v1975_v47 = vmul.f32 %v3848_v45, %v533_v63  ;;  %v585_v56 = vpop.permute.xlu1 %584 }
  0xf5   : > { %v1974_v48 = vmul.f32 %v3850_v46, %v532_v52  ;;  %v4473_v63 = vpop.permute.xlu0 %2027  ;;  %v524_v52 = vsub.f32 %v4315_v3, %v4423_v61 }
  0xf6   : > { %1985 = vperm.xlu0 %3834, %v1975_v47  }
  0xf7   : > { %1980 = vperm.xlu1 %3833, %v1974_v48  }
  0xf8   : > { %v590_v57 = vpop.permute.xlu1 %589 }
  0xfb   : > { %v3852_v49 = vpop.eup %3851 }
  0xfc   : > { %v3854_v50 = vpop.eup %3853  ;;  %v1977_v51 = vmul.f32 %v3852_v49, %v535_v35  ;;  %v4467_v58 = vpop.permute.xlu1 %2012 }
  0xfd   : > { %v1976_v53 = vmul.f32 %v3854_v50, %v534_v23 }
  0xfe   : > { %1995 = vperm.xlu0 %3834, %v1977_v51  }
  0xff   : > { %1990 = vperm.xlu1 %3833, %v1976_v53  }
 0x100   : > { %v4471_v62 = vpop.permute.xlu1 %2022 }
 0x104   : > { %v4479_v9 = vpop.permute.xlu1 %666 }
 0x165   : > { %v543_v10 = vpop.permute.xlu0 %542 }
 0x166   : > { %v560_v12 = vmul.f32 %v543_v10, %v524_v52  ;;  %v561_v13 = vmul.f32 %v543_v10, %v525_v0 }
 0x168   : > { %v592_v14 = vadd.f32 %v575_v54, %v560_v12  ;;  %v4481_v17 = vadd.f32 %v575_v54, %v561_v13 }
 0x169   : > { %v548_v21 = vpop.permute.xlu1 %547 }
 0x16a   : > { %v3345_v22 = vmul.f32 -1.442695, %v592_v14  ;;  %v3346_v3 = vmul.f32 -1.442695, %v4481_v17  ;;  %v562_v23 = vmul.f32 %v548_v21, %v526_v19  ;;  %v563_v5 = vmul.f32 %v548_v21, %v527_v20 }
 0x16c   : > { %3855 = vpow2.f32 %v3345_v22  ;;  %v594_v61 = vadd.f32 %v580_v55, %v562_v23  ;;  %v4488_v24 = vadd.f32 %v580_v55, %v563_v5 }
 0x16d   : > { %3857 = vpow2.f32 %v3346_v3 }
 0x16e   : > { %v3347_v30 = vmul.f32 -1.442695, %v594_v61  ;;  %v3348_v8 = vmul.f32 -1.442695, %v4488_v24  ;;  %v553_v6 = vpop.permute.xlu1 %552 }
 0x16f   : > { %v564_v31 = vmul.f32 %v553_v6, %v528_v29  ;;  %v565_v32 = vmul.f32 %v553_v6, %v529_v7 }
 0x170   : > { %3859 = vpow2.f32 %v3347_v30 }
 0x171   : > { %3861 = vpow2.f32 %v3348_v8  ;;  %v596_v34 = vadd.f32 %v585_v56, %v564_v31  ;;  %v597_v35 = vadd.f32 %v585_v56, %v565_v32  ;;  %v1964_v32 = vsub.f32 %v4357_v25, %v4439_v41 }
 0x172   : > { %v558_v15 = vpop.permute.xlu1 %557 }
 0x173   : > { %v3349_v42 = vmul.f32 -1.442695, %v596_v34  ;;  %v3350_v43 = vmul.f32 -1.442695, %v597_v35  ;;  %v566_v16 = vmul.f32 %v558_v15, %v530_v33  ;;  %v567_v18 = vmul.f32 %v558_v15, %v531_v36 }
 0x174   : > { %v1962_v36 = vsub.f32 %v4363_v27, %v4441_v44 }
 0x175   : > { %3863 = vpow2.f32 %v3349_v42  ;;  %v598_v45 = vadd.f32 %v590_v57, %v566_v16  ;;  %v599_v46 = vadd.f32 %v590_v57, %v567_v18  ;;  %v1986_v31 = vpop.permute.xlu0 %1985 }
 0x176   : > { %v3856_v47 = vpop.eup %3855  ;;  %3865 = vpow2.f32 %v3350_v43  ;;  %v2000_v33 = vmul.f32 %v1986_v31, %v1964_v32  ;;  %v1968_v43 = vsub.f32 %v4382_v37, %v4450_v60 }
 0x177   : > { %v3858_v48 = vpop.eup %3857  ;;  %v624_v49 = vadd.f32 1.0, %v3856_v47  ;;  %v3351_v50 = vmul.f32 -1.442695, %v598_v45  ;;  %v3352_v51 = vmul.f32 -1.442695, %v599_v46  ;;  %v1969_v47 = vsub.f32 %v4385_v38, %v4450_v60 }
 0x178   : > { %v625_v1 = vadd.f32 1.0, %v3858_v48  ;;  %v4610_v25 = vadd.f32 %v4469_v59, %v2000_v33 }
 0x179   : > { %3867 = vrcp.f32 %v624_v49 }
 0x17a   : > { %v3860_v53 = vpop.eup %3859  ;;  %3869 = vrcp.f32 %v625_v1  ;;  %v3380_v18 = vmul.f32 -1.442695, %v4610_v25 }
 0x17b   : > { %v3862_v54 = vpop.eup %3861  ;;  %v626_v2 = vadd.f32 1.0, %v3860_v53  ;;  %3871 = vpow2.f32 %v3351_v50  ;;  %v1967_v50 = vsub.f32 %v4391_v40, %v4455_v4 }
 0x17c   : > { %v627_v11 = vadd.f32 1.0, %v3862_v54  ;;  %3873 = vpow2.f32 %v3352_v51 }
 0x17d   : > { %3875 = vrcp.f32 %v626_v2  ;;  %v1996_v42 = vpop.permute.xlu0 %1995  ;;  %v685_v2 = vlaneseq }
 0x17e   : > { %3877 = vrcp.f32 %v627_v11  ;;  %v2005_v48 = vmul.f32 %v1996_v42, %v1969_v47 }
 0x17f   : > { %v3864_v55 = vpop.eup %3863 }
 0x180   : > { %v3866_v56 = vpop.eup %3865  ;;  %v628_v57 = vadd.f32 1.0, %v3864_v55  ;;  %v4651_v1 = vadd.f32 %v4473_v63, %v2005_v48 }
 0x181   : > { %v629_v52 = vadd.f32 1.0, %v3866_v56 }
 0x182   : > { %3879 = vrcp.f32 %v628_v57  ;;  %v3385_v54 = vmul.f32 -1.442695, %v4651_v1  ;;  %v4675_v57 = vshrl.u32 %v685_v2, 7 }
 0x183   : > { %v3868_v0 = vpop.eup %3867  ;;  %3881 = vrcp.f32 %v629_v52  ;;  %v4682_v52 = vld [vmem:[%s6793_s5 + $0x8] sm:$0xff] }
 0x184   : > { %v3870_v10 = vpop.eup %3869  ;;  %v4499_v12 = vmul.f32 %v3868_v0, %v592_v14  ;;  %1100 = vmatprep.mubr.f32.mxu0 %v4682_v52 }
 0x185   : > { %v3872_v13 = vpop.eup %3871  ;;  %v4504_v3 = vmul.f32 %v3870_v10, %v4481_v17 }
 0x186   : > { %v3874_v19 = vpop.eup %3873  ;;  %v630_v20 = vadd.f32 1.0, %v3872_v13  ;;  %669 = vrot.lane.b32.xlu1 %v4499_v12, %s6817_s16 }
 0x187   : > { %v3876_v21 = vpop.eup %3875  ;;  %v631_v22 = vadd.f32 1.0, %v3874_v19  ;;  %v4684_v19 = vand.u32 127, %v685_v2 }
 0x188   : > { %v4506_v23 = vmul.f32 %v3876_v21, %v594_v61  ;;  %3883 = vrcp.f32 %v630_v20  ;;  %v3878_v5 = vpop.eup %3877 }
 0x189   : > { %3885 = vrcp.f32 %v631_v22  ;;  %v4513_v29 = vmul.f32 %v3878_v5, %v4488_v24  ;;  %v698_v22 = vsub.s32 0, %v4675_v57  ;;  %vm687_vm0 = vcmp.lt.s32.totalorder %v4684_v19, 17 }
 0x18a   : > { %671 = vrot.lane.b32.xlu0 %v4506_v23, %s6817_s16  ;;  %677 = vrot.lane.b32.xlu1 %v4504_v3, %s6817_s16  ;;  %3887 = vpow2.f32 %v3380_v18  ;;  %vm728_vm1 = vcmp.lt.s32.totalorder %v4684_v19, 16  ;;  %vm769_vm2 = vcmp.lt.s32.totalorder %v4684_v19, 15  ;;  %vm810_vm3 = vcmp.lt.s32.totalorder %v4684_v19, 1 }
 0x18b   : > { %vm851_vm4 = vcmp.lt.s32.totalorder %v4684_v19, 127  ;;  %vm892_vm5 = vcmp.lt.s32.totalorder %v4684_v19, 113  ;;  %vm933_vm6 = vcmp.lt.s32.totalorder %v4684_v19, 112  ;;  %vm974_vm7 = vcmp.lt.s32.totalorder %v4684_v19, 111 }
 0x18c   : > { %v3880_v14 = vpop.eup %3879  ;;  %v6905_v19 = vmov 0.0  }
 0x18d   : > { %v4515_v7 = vmul.f32 %v3880_v14, %v596_v34  ;;  %v3882_v30 = vpop.eup %3881  ;;  %v1965_v34 = vsub.f32 %v4360_v26, %v4439_v41  ;;  %v1963_v26 = vsub.f32 %v4366_v28, %v4441_v44  ;;  %v2004_v41 = vmul.f32 %v1996_v42, %v1968_v43  ;;  %v4695_v14 = vld [vmem:[%s6790_s2] sm:$0xff] }
 0x18e   : > { %679 = vrot.lane.b32.xlu0 %v4513_v29, %s6817_s16  ;;  %v4521_v17 = vmul.f32 %v3882_v30, %v597_v35  ;;  %v1981_v35 = vpop.permute.xlu1 %1980  ;;  %v1966_v28 = vsub.f32 %v4388_v39, %v4455_v4  ;;  %v4700_v30 = vld [vmem:[%s6790_s2 + $0x8] sm:$0xff] }
 0x18f   : > { %673 = vrot.lane.b32.xlu1 %v4515_v7, %s6817_s16  ;;  %v2001_v15 = vmul.f32 %v1986_v31, %v1965_v34  ;;  %v1998_v16 = vmul.f32 %v1981_v35, %v1962_v36  ;;  %v4636_v44 = vadd.f32 %v4473_v63, %v2004_v41  ;;  %v4706_v34 = vrot.slane %v4695_v14, %v698_v22 }
 0x191   : > { %v4621_v27 = vadd.f32 %v4469_v59, %v2001_v15  ;;  %v3384_v39 = vmul.f32 -1.442695, %v4636_v44 }
 0x192   : > { %v3884_v61 = vpop.eup %3883  ;;  %v1991_v37 = vpop.permute.xlu1 %1990 }
 0x193   : > { %v4523_v8 = vmul.f32 %v3884_v61, %v598_v45  ;;  %681 = vrot.lane.b32.xlu1 %v4521_v17, %s6817_s16  ;;  %v3886_v6 = vpop.eup %3885  ;;  %v1999_v45 = vmul.f32 %v1981_v35, %v1963_v26  ;;  %v3381_v59 = vmul.f32 -1.442695, %v4621_v27  ;;  %v2002_v38 = vmul.f32 %v1991_v37, %v1966_v28 }
 0x194   : > { %v4529_v24 = vmul.f32 %v3886_v6, %v599_v46  ;;  %v4627_v46 = vadd.f32 %v4467_v58, %v1998_v16  ;;  %v2003_v53 = vmul.f32 %v1991_v37, %v1967_v50  ;;  %v3888_v4 = vpop.eup %3887  ;;  %v4709_v35 = vrot.slane %v4700_v30, %v698_v22 }
 0x195   : > { %675 = vrot.lane.b32.xlu0 %v4523_v8, %s6817_s16  ;;  %v4642_v49 = vadd.f32 %v4467_v58, %v1999_v45  ;;  %3889 = vpow2.f32 %v3381_v59  ;;  %v4657_v51 = vadd.f32 %v4471_v62, %v2002_v38  ;;  %v2064_v11 = vadd.f32 1.0, %v3888_v4 }
 0x196   : > { %v3378_v60 = vmul.f32 -1.442695, %v4627_v46  ;;  %v4666_v63 = vadd.f32 %v4471_v62, %v2003_v53 }
 0x197   : > { %712 = vrot.lane.b32.xlu1 %v4499_v12, %s6811_s15  ;;  %v3379_v58 = vmul.f32 -1.442695, %v4642_v49  ;;  %v3382_v40 = vmul.f32 -1.442695, %v4657_v51 }
 0x198   : > { %3891 = vpow2.f32 %v3378_v60  ;;  %v3383_v56 = vmul.f32 -1.442695, %v4666_v63 }
 0x199   : > { %683 = vrot.lane.b32.xlu0 %v4529_v24, %s6817_s16  ;;  %3893 = vpow2.f32 %v3384_v39 }
 0x19a   : > { %3895 = vpow2.f32 %v3379_v58 }
 0x19b   : > { %720 = vrot.lane.b32.xlu1 %v4504_v3, %s6811_s15  ;;  %3897 = vpow2.f32 %v3385_v54 }
 0x19c   : > { %3899 = vpow2.f32 %v3382_v40 }
 0x19d   : > { %714 = vrot.lane.b32.xlu0 %v4506_v23, %s6811_s15  ;;  %3901 = vrcp.f32 %v2064_v11 }
 0x19e   : > { %3903 = vpow2.f32 %v3383_v56 }
 0x19f   : > { %716 = vrot.lane.b32.xlu1 %v4515_v7, %s6811_s15  ;;  %v3890_v55 = vpop.eup %3889 }
 0x1a0   : > { %v2065_v10 = vadd.f32 1.0, %v3890_v55 }
 0x1a1   : > { %722 = vrot.lane.b32.xlu0 %v4513_v29, %s6811_s15 }
 0x1a2   : > { %v3892_v62 = vpop.eup %3891  ;;  %3905 = vrcp.f32 %v2065_v10 }
 0x1a3   : > { %724 = vrot.lane.b32.xlu1 %v4521_v17, %s6811_s15  ;;  %v3894_v0 = vpop.eup %3893  ;;  %v2062_v21 = vadd.f32 1.0, %v3892_v62 }
 0x1a4   : > { %v3896_v20 = vpop.eup %3895  ;;  %v2068_v5 = vadd.f32 1.0, %v3894_v0 }
 0x1a5   : > { %718 = vrot.lane.b32.xlu0 %v4523_v8, %s6811_s15  ;;  %v3898_v31 = vpop.eup %3897  ;;  %v2063_v32 = vadd.f32 1.0, %v3896_v20  ;;  %3907 = vrcp.f32 %v2062_v21  ;;  %v739_v20 = vsub.s32 1, %v4675_v57 }
 0x1a6   : > { %v3900_v33 = vpop.eup %3899  ;;  %3909 = vrcp.f32 %v2068_v5  ;;  %v2069_v42 = vadd.f32 1.0, %v3898_v31 }
 0x1a7   : > { %753 = vrot.lane.b32.xlu1 %v4499_v12, %s6809_s14  ;;  %3911 = vrcp.f32 %v2063_v32  ;;  %v2066_v16 = vadd.f32 1.0, %v3900_v33  ;;  %v3902_v45 = vpop.eup %3901 }
 0x1a8   : > { %v3904_v48 = vpop.eup %3903  ;;  %3913 = vrcp.f32 %v2069_v42  ;;  %v4730_v39 = vmul.f32 %v3902_v45, %v4610_v25  ;;  %v4774_v42 = vrot.slane %v4695_v14, %v739_v20 }
 0x1a9   : > { %726 = vrot.lane.b32.xlu0 %v4529_v24, %s6811_s15  ;;  %v2067_v53 = vadd.f32 1.0, %v3904_v48  ;;  %3915 = vrcp.f32 %v2066_v16 }
 0x1ab   : > { %761 = vrot.lane.b32.xlu1 %v4504_v3, %s6809_s14  ;;  %3917 = vrcp.f32 %v2067_v53 }
 0x1ac   : > { %v3906_v58 = vpop.eup %3905 }
 0x1ad   : > { %755 = vrot.lane.b32.xlu0 %v4506_v23, %s6809_s14  ;;  %v4737_v2 = vmul.f32 %v3906_v58, %v4621_v27 }
 0x1af   : > { %757 = vrot.lane.b32.xlu1 %v4515_v7, %s6809_s14  ;;  %v3908_v40 = vpop.eup %3907 }
 0x1b0   : > { %v3910_v4 = vpop.eup %3909  ;;  %v4746_v62 = vmul.f32 %v3908_v40, %v4627_v46 }
 0x1b1   : > { %763 = vrot.lane.b32.xlu0 %v4513_v29, %s6809_s14  ;;  %v3912_v56 = vpop.eup %3911  ;;  %v4751_v27 = vmul.f32 %v3910_v4, %v4636_v44 }
 0x1b3   : > { %765 = vrot.lane.b32.xlu1 %v4521_v17, %s6809_s14 }
 0x1b5   : > { %759 = vrot.lane.b32.xlu0 %v4523_v8, %s6809_s14 }
 0x1b7   : > { %794 = vrot.lane.b32.xlu1 %v4499_v12, %s6807_s13 }
 0x1b9   : > { %767 = vrot.lane.b32.xlu0 %v4529_v24, %s6809_s14 }
 0x1bb   : > { %802 = vrot.lane.b32.xlu1 %v4504_v3, %s6807_s13 }
 0x1bd   : > { %796 = vrot.lane.b32.xlu0 %v4506_v23, %s6807_s13 }
 0x1bf   : > { %798 = vrot.lane.b32.xlu1 %v4515_v7, %s6807_s13 }
 0x1c1   : > { %804 = vrot.lane.b32.xlu0 %v4513_v29, %s6807_s13 }
 0x1c3   : > { %806 = vrot.lane.b32.xlu1 %v4521_v17, %s6807_s13 }
 0x1c5   : > { %800 = vrot.lane.b32.xlu0 %v4523_v8, %s6807_s13 }
 0x1c7   : > { %835 = vrot.lane.b32.xlu1 %v4499_v12, %s6805_s19 }
 0x1c9   : > { %808 = vrot.lane.b32.xlu0 %v4529_v24, %s6807_s13  ;;  %s6856_s13 = smov 1  }
 0x1cb   : > { %843 = vrot.lane.b32.xlu1 %v4504_v3, %s6805_s19 }
 0x1cd   : > { %837 = vrot.lane.b32.xlu0 %v4506_v23, %s6805_s19 }
 0x1cf   : > { %839 = vrot.lane.b32.xlu1 %v4515_v7, %s6805_s19 }
 0x1d1   : > { %845 = vrot.lane.b32.xlu0 %v4513_v29, %s6805_s19 }
 0x1d3   : > { %847 = vrot.lane.b32.xlu1 %v4521_v17, %s6805_s19 }
 0x1d5   : > { %841 = vrot.lane.b32.xlu0 %v4523_v8, %s6805_s19 }
 0x1d7   : > { %876 = vrot.lane.b32.xlu1 %v4499_v12, %s6803_s26 }
 0x1d9   : > { %849 = vrot.lane.b32.xlu0 %v4529_v24, %s6805_s19  ;;  %s6857_s19 = smov 127  }
 0x1db   : > { %884 = vrot.lane.b32.xlu1 %v4504_v3, %s6803_s26 }
 0x1dd   : > { %878 = vrot.lane.b32.xlu0 %v4506_v23, %s6803_s26 }
 0x1df   : > { %880 = vrot.lane.b32.xlu1 %v4515_v7, %s6803_s26 }
 0x1e1   : > { %886 = vrot.lane.b32.xlu0 %v4513_v29, %s6803_s26 }
 0x1e3   : > { %888 = vrot.lane.b32.xlu1 %v4521_v17, %s6803_s26 }
 0x1e5   : > { %882 = vrot.lane.b32.xlu0 %v4523_v8, %s6803_s26 }
 0x1e7   : > { %917 = vrot.lane.b32.xlu1 %v4499_v12, %s6815_s28 }
 0x1e9   : > { %890 = vrot.lane.b32.xlu0 %v4529_v24, %s6803_s26  ;;  %s6867_s26 = smov 112  }
 0x1eb   : > { %925 = vrot.lane.b32.xlu1 %v4504_v3, %s6815_s28 }
 0x1ed   : > { %919 = vrot.lane.b32.xlu0 %v4506_v23, %s6815_s28 }
 0x1ef   : > { %921 = vrot.lane.b32.xlu1 %v4515_v7, %s6815_s28 }
 0x1f1   : > { %927 = vrot.lane.b32.xlu0 %v4513_v29, %s6815_s28 }
 0x1f3   : > { %929 = vrot.lane.b32.xlu1 %v4521_v17, %s6815_s28 }
 0x1f5   : > { %923 = vrot.lane.b32.xlu0 %v4523_v8, %s6815_s28 }
 0x1f7   : > { %958 = vrot.lane.b32.xlu1 %v4499_v12, %s6813_s24 }
 0x1f8   : > { %v670_v13 = vpop.permute.xlu1 %669 }
 0x1f9   : > { %931 = vrot.lane.b32.xlu0 %v4529_v24, %s6815_s28 }
 0x1fb   : > { %966 = vrot.lane.b32.xlu1 %v4504_v3, %s6813_s24 }
 0x1fc   : > { %v678_v61 = vpop.permute.xlu1 %677  ;;  %v672_v6 = vpop.permute.xlu0 %671 }
 0x1fd   : > { %960 = vrot.lane.b32.xlu0 %v4506_v23, %s6813_s24  ;;  %v692_v36 = vsel %vm687_vm0, %v678_v61, %v670_v13  ;;  %v688_v15 = vsel %vm687_vm0, %v670_v13, %v678_v61  ;;  %v3914_v61 = vpop.eup %3913 }
 0x1fe   : > { %v705_v37 = vmul.f32 %v4709_v35, %v688_v15  ;;  %v704_v28 = vmul.f32 %v4706_v34, %v692_v36  ;;  %v3916_v36 = vpop.eup %3915  ;;  %v4771_v15 = vmul.f32 %v3914_v61, %v4651_v1 }
 0x1ff   : > { %962 = vrot.lane.b32.xlu1 %v4515_v7, %s6813_s24  ;;  %v4786_v1 = vmul.f32 %v3916_v36, %v4657_v51 }
 0x200   : > { %v680_v43 = vpop.permute.xlu0 %679 }
 0x201   : > { %968 = vrot.lane.b32.xlu0 %v4513_v29, %s6813_s24  ;;  %v674_v26 = vpop.permute.xlu1 %673  ;;  %v693_v41 = vsel %vm687_vm0, %v680_v43, %v672_v6  ;;  %v689_v18 = vsel %vm687_vm0, %v672_v6, %v680_v43  ;;  %v4765_v6 = vmul.f32 %v3912_v56, %v4642_v49  ;;  %v4777_v43 = vrot.slane %v4700_v30, %v739_v20 }
 0x202   : > { %v707_v47 = vmul.f32 %v4709_v35, %v689_v18  ;;  %v706_v59 = vmul.f32 %v4706_v34, %v693_v41  ;;  %v3918_v18 = vpop.eup %3917 }
 0x203   : > { %970 = vrot.lane.b32.xlu1 %v4521_v17, %s6813_s24 }
 0x204   : > { %v3422_v38 = vpack.c.bf16 %v707_v47, %v705_v37  ;;  %v3424_v60 = vpack.c.bf16 %v706_v59, %v704_v28 }
 0x205   : > { %964 = vrot.lane.b32.xlu0 %v4523_v8, %s6813_s24  ;;  %v682_v50 = vpop.permute.xlu1 %681 }
 0x206   : > { %3423 = vmatprep.subr.bf16.mxu0 %v3422_v38  ;;  %v690_v11 = vsel %vm687_vm0, %v674_v26, %v682_v50  ;;  %v694_v55 = vsel %vm687_vm0, %v682_v50, %v674_v26  ;;  %v4801_v38 = vmul.f32 %v3918_v18, %v4666_v63 }
 0x207   : > { %v676_v54 = vpop.permute.xlu0 %675  ;;  %2110 = vrot.lane.b32.xlu1 %v4730_v39, %s6817_s16  ;;  %3425 = vmatpush1.bf16.msra.mxu0 %v3424_v60  ;;  %v708_v21 = vmul.f32 %v4706_v34, %v694_v55  ;;  %v709_v46 = vmul.f32 %v4709_v35, %v690_v11  ;;  %v780_v11 = vsub.s32 2, %v4675_v57 }
 0x209   : > { %972 = vrot.lane.b32.xlu0 %v4529_v24, %s6813_s24  ;;  %v713_v25 = vpop.permute.xlu1 %712 }
 0x20b   : > { %v684_v0 = vpop.permute.xlu0 %683  ;;  %2118 = vrot.lane.b32.xlu1 %v4737_v2, %s6817_s16 }
 0x20c   : > { %v691_v10 = vsel %vm687_vm0, %v676_v54, %v684_v0  ;;  %v695_v13 = vsel %vm687_vm0, %v684_v0, %v676_v54 }
 0x20d   : > { %v710_v22 = vmul.f32 %v4706_v34, %v695_v13  ;;  %v711_v5 = vmul.f32 %v4709_v35, %v691_v10  ;;  %2108 = vrot.lane.b32.xlu0 %v4746_v62, %s6817_s16  ;;  %v721_v44 = vpop.permute.xlu1 %720 }
 0x20e   : > { %v729_v16 = vsel %vm728_vm1, %v713_v25, %v721_v44  ;;  %v733_v26 = vsel %vm728_vm1, %v721_v44, %v713_v25 }
 0x20f   : > { %v715_v31 = vpop.permute.xlu0 %714  ;;  %2114 = vrot.lane.b32.xlu1 %v4751_v27, %s6817_s16  ;;  %v3426_v32 = vpack.c.bf16 %v711_v5, %v709_v46  ;;  %v3428_v33 = vpack.c.bf16 %v710_v22, %v708_v21  ;;  %v745_v47 = vmul.f32 %v4774_v42, %v733_v26  ;;  %v746_v28 = vmul.f32 %v4777_v43, %v729_v16 }
 0x210   : > { %v4828_v22 = vrot.slane %v4695_v14, %v780_v11  ;;  %v4831_v5 = vrot.slane %v4700_v30, %v780_v11 }
 0x211   : > { %2116 = vrot.lane.b32.xlu0 %v4765_v6, %s6817_s16  ;;  %3427 = vmatprep.subr.bf16.mxu0 %v3426_v32  ;;  %v717_v49 = vpop.permute.xlu1 %716 }
 0x212   : > { %3429 = vmatpush1.bf16.msra.mxu0 %v3428_v33 }
 0x213   : > { %v723_v41 = vpop.permute.xlu0 %722  ;;  %2122 = vrot.lane.b32.xlu1 %v4771_v15, %s6817_s16 }
 0x214   : > { %v730_v45 = vsel %vm728_vm1, %v715_v31, %v723_v41  ;;  %v734_v37 = vsel %vm728_vm1, %v723_v41, %v715_v31 }
 0x215   : > { %v747_v59 = vmul.f32 %v4774_v42, %v734_v37  ;;  %v748_v51 = vmul.f32 %v4777_v43, %v730_v45  ;;  %2112 = vrot.lane.b32.xlu0 %v4786_v1, %s6817_s16  ;;  %v725_v48 = vpop.permute.xlu1 %724 }
 0x216   : > { %v731_v54 = vsel %vm728_vm1, %v717_v49, %v725_v48  ;;  %v735_v40 = vsel %vm728_vm1, %v725_v48, %v717_v49 }
 0x217   : > { %v719_v60 = vpop.permute.xlu0 %718  ;;  %2142 = vrot.lane.b32.xlu1 %v4730_v39, %s6811_s15  ;;  %v3430_v50 = vpack.c.bf16 %v748_v51, %v746_v28  ;;  %v3432_v58 = vpack.c.bf16 %v747_v59, %v745_v47  ;;  %v749_v55 = vmul.f32 %v4774_v42, %v735_v40  ;;  %v750_v56 = vmul.f32 %v4777_v43, %v731_v54 }
 0x219   : > { %2120 = vrot.lane.b32.xlu0 %v4801_v38, %s6817_s16  ;;  %3431 = vmatprep.subr.bf16.mxu0 %v3430_v50  ;;  %v754_v53 = vpop.permute.xlu1 %753  ;;  %s6864_s16 = smov 17  }
 0x21a   : > { %3433 = vmatpush1.bf16.msra.mxu0 %v3432_v58  ;;  %v821_v58 = vsub.s32 3, %v4675_v57 }
 0x21b   : > { %v727_v63 = vpop.permute.xlu0 %726  ;;  %2150 = vrot.lane.b32.xlu1 %v4737_v2, %s6811_s15 }
 0x21c   : > { %v732_v4 = vsel %vm728_vm1, %v719_v60, %v727_v63  ;;  %v736_v25 = vsel %vm728_vm1, %v727_v63, %v719_v60 }
 0x21d   : > { %v751_v0 = vmul.f32 %v4774_v42, %v736_v25  ;;  %v752_v10 = vmul.f32 %v4777_v43, %v732_v4  ;;  %2140 = vrot.lane.b32.xlu0 %v4746_v62, %s6811_s15  ;;  %v762_v13 = vpop.permute.xlu1 %761 }
 0x21e   : > { %v770_v61 = vsel %vm769_vm2, %v754_v53, %v762_v13  ;;  %v774_v31 = vsel %vm769_vm2, %v762_v13, %v754_v53 }
 0x21f   : > { %v756_v20 = vpop.permute.xlu0 %755  ;;  %2146 = vrot.lane.b32.xlu1 %v4751_v27, %s6811_s15  ;;  %v3434_v21 = vpack.c.bf16 %v752_v10, %v750_v56  ;;  %v3436_v46 = vpack.c.bf16 %v751_v0, %v749_v55  ;;  %v786_v49 = vmul.f32 %v4828_v22, %v774_v31  ;;  %v787_v16 = vmul.f32 %v4831_v5, %v770_v61 }
 0x220   : > { %v4876_v56 = vrot.slane %v4695_v14, %v821_v58  ;;  %v4879_v0 = vrot.slane %v4700_v30, %v821_v58  ;;  %v862_v58 = vsub.s32 4, %v4675_v57 }
 0x221   : > { %2148 = vrot.lane.b32.xlu0 %v4765_v6, %s6811_s15  ;;  %3435 = vmatprep.subr.bf16.mxu0 %v3434_v21  ;;  %v758_v44 = vpop.permute.xlu1 %757 }
 0x222   : > { %3437 = vmatpush1.bf16.msra.mxu0 %v3436_v46 }
 0x223   : > { %v764_v32 = vpop.permute.xlu0 %763  ;;  %2154 = vrot.lane.b32.xlu1 %v4771_v15, %s6811_s15 }
 0x224   : > { %v771_v33 = vsel %vm769_vm2, %v756_v20, %v764_v32  ;;  %v775_v36 = vsel %vm769_vm2, %v764_v32, %v756_v20 }
 0x225   : > { %v788_v26 = vmul.f32 %v4828_v22, %v775_v36  ;;  %v789_v41 = vmul.f32 %v4831_v5, %v771_v33  ;;  %2144 = vrot.lane.b32.xlu0 %v4786_v1, %s6811_s15  ;;  %v766_v18 = vpop.permute.xlu1 %765 }
 0x226   : > { %v772_v59 = vsel %vm769_vm2, %v758_v44, %v766_v18  ;;  %v776_v51 = vsel %vm769_vm2, %v766_v18, %v758_v44 }
 0x227   : > { %v760_v45 = vpop.permute.xlu0 %759  ;;  %2174 = vrot.lane.b32.xlu1 %v4730_v39, %s6809_s14  ;;  %v3438_v37 = vpack.c.bf16 %v789_v41, %v787_v16  ;;  %v3440_v47 = vpack.c.bf16 %v788_v26, %v786_v49  ;;  %v790_v53 = vmul.f32 %v4828_v22, %v776_v51  ;;  %v791_v54 = vmul.f32 %v4831_v5, %v772_v59 }
 0x229   : > { %2152 = vrot.lane.b32.xlu0 %v4801_v38, %s6811_s15  ;;  %3439 = vmatprep.subr.bf16.mxu0 %v3438_v37  ;;  %v795_v28 = vpop.permute.xlu1 %794  ;;  %s6868_s15 = smov 111  }
 0x22a   : > { %3441 = vmatpush1.bf16.msra.mxu0 %v3440_v47 }
 0x22b   : > { %v768_v48 = vpop.permute.xlu0 %767  ;;  %2182 = vrot.lane.b32.xlu1 %v4737_v2, %s6809_s14 }
 0x22c   : > { %v773_v60 = vsel %vm769_vm2, %v760_v45, %v768_v48  ;;  %v777_v50 = vsel %vm769_vm2, %v768_v48, %v760_v45 }
 0x22d   : > { %v792_v40 = vmul.f32 %v4828_v22, %v777_v50  ;;  %v793_v63 = vmul.f32 %v4831_v5, %v773_v60  ;;  %2172 = vrot.lane.b32.xlu0 %v4746_v62, %s6809_s14  ;;  %v803_v4 = vpop.permute.xlu1 %802 }
 0x22e   : > { %v811_v13 = vsel %vm810_vm3, %v795_v28, %v803_v4  ;;  %v815_v20 = vsel %vm810_vm3, %v803_v4, %v795_v28  ;;  %v3454_v4 = vpack.c.bf16 %v4513_v29, %v4504_v3 }
 0x22f   : > { %v797_v25 = vpop.permute.xlu0 %796  ;;  %2178 = vrot.lane.b32.xlu1 %v4751_v27, %s6809_s14  ;;  %v3442_v11 = vpack.c.bf16 %v793_v63, %v791_v54  ;;  %v3444_v55 = vpack.c.bf16 %v792_v40, %v790_v53  ;;  %v827_v61 = vmul.f32 %v4876_v56, %v815_v20  ;;  %v828_v31 = vmul.f32 %v4879_v0, %v811_v13 }
 0x230   : > { %v3456_v13 = vpack.c.bf16 %v4506_v23, %v4499_v12 }
 0x231   : > { %2180 = vrot.lane.b32.xlu0 %v4765_v6, %s6809_s14  ;;  %3443 = vmatprep.subr.bf16.mxu0 %v3442_v11  ;;  %v799_v10 = vpop.permute.xlu1 %798 }
 0x232   : > { %3445 = vmatpush1.bf16.msra.mxu0 %v3444_v55 }
 0x233   : > { %v805_v21 = vpop.permute.xlu0 %804  ;;  %2186 = vrot.lane.b32.xlu1 %v4771_v15, %s6809_s14 }
 0x234   : > { %v812_v46 = vsel %vm810_vm3, %v797_v25, %v805_v21  ;;  %v816_v44 = vsel %vm810_vm3, %v805_v21, %v797_v25  ;;  %v4928_v25 = vrot.slane %v4700_v30, %v862_v58  ;;  %v3458_v21 = vpack.c.bf16 %v4529_v24, %v4521_v17 }
 0x235   : > { %v829_v32 = vmul.f32 %v4876_v56, %v816_v44  ;;  %v830_v33 = vmul.f32 %v4879_v0, %v812_v46  ;;  %2176 = vrot.lane.b32.xlu0 %v4786_v1, %s6809_s14  ;;  %v807_v36 = vpop.permute.xlu1 %806  ;;  %v4946_v46 = vrot.slane %v4695_v14, %v862_v58 }
 0x236   : > { %v813_v18 = vsel %vm810_vm3, %v799_v10, %v807_v36  ;;  %v817_v45 = vsel %vm810_vm3, %v807_v36, %v799_v10 }
 0x237   : > { %v801_v49 = vpop.permute.xlu0 %800  ;;  %2206 = vrot.lane.b32.xlu1 %v4730_v39, %s6856_s13  ;;  %v3446_v16 = vpack.c.bf16 %v830_v33, %v828_v31  ;;  %v3448_v26 = vpack.c.bf16 %v829_v32, %v827_v61  ;;  %v831_v59 = vmul.f32 %v4876_v56, %v817_v45  ;;  %v832_v51 = vmul.f32 %v4879_v0, %v813_v18 }
 0x238   : > { %v3460_v31 = vpack.c.bf16 %v4523_v8, %v4515_v7 }
 0x239   : > { %2184 = vrot.lane.b32.xlu0 %v4801_v38, %s6809_s14  ;;  %3447 = vmatprep.subr.bf16.mxu0 %v3446_v16  ;;  %v836_v41 = vpop.permute.xlu1 %835  ;;  %s3421_s14 = sshll.u32 %s4213_s21, 11  ;;  %s3234_s21 = scalar_lea.sflag [#allocation4], %s4296_s22 }
 0x23a   : > { %3449 = vmatpush1.bf16.msra.mxu0 %v3448_v26  ;;  %v903_v26 = vsub.s32 5, %v4675_v57 }
 0x23b   : > { %v809_v37 = vpop.permute.xlu0 %808  ;;  %2214 = vrot.lane.b32.xlu1 %v4737_v2, %s6856_s13 }
 0x23c   : > { %v814_v47 = vsel %vm810_vm3, %v801_v49, %v809_v37  ;;  %v818_v28 = vsel %vm810_vm3, %v809_v37, %v801_v49 }
 0x23d   : > { %v833_v48 = vmul.f32 %v4876_v56, %v818_v28  ;;  %v834_v60 = vmul.f32 %v4879_v0, %v814_v47  ;;  %2204 = vrot.lane.b32.xlu0 %v4746_v62, %s6856_s13  ;;  %v844_v50 = vpop.permute.xlu1 %843 }
 0x23e   : > { %v856_v55 = vsel %vm851_vm4, %v844_v50, %v836_v41  ;;  %v852_v44 = vsel %vm851_vm4, %v836_v41, %v844_v50 }
 0x23f   : > { %v838_v53 = vpop.permute.xlu0 %837  ;;  %2210 = vrot.lane.b32.xlu1 %v4751_v27, %s6856_s13  ;;  %v3450_v54 = vpack.c.bf16 %v834_v60, %v832_v51  ;;  %v3452_v40 = vpack.c.bf16 %v833_v48, %v831_v59  ;;  %v869_v12 = vmul.f32 %v4928_v25, %v856_v55  ;;  %v868_v32 = vmul.f32 %v4946_v46, %v852_v44 }
 0x240   : > { %v4980_v48 = vrot.slane %v4695_v14, %v903_v26  ;;  %v4983_v60 = vrot.slane %v4700_v30, %v903_v26 }
 0x241   : > { %2212 = vrot.lane.b32.xlu0 %v4765_v6, %s6856_s13  ;;  %3451 = vmatprep.subr.bf16.mxu0 %v3450_v54  ;;  %v840_v63 = vpop.permute.xlu1 %839 }
 0x242   : > { %3453 = vmatpush1.bf16.msra.mxu0 %v3452_v40  ;;  %6858 = vst [vmem:[#allocation10_spill] sm:$0xff] %v4980_v48 }
 0x243   : > { %v846_v11 = vpop.permute.xlu0 %845  ;;  %3455 = vmatprep.subr.bf16.mxu0 %v3454_v4  ;;  %2218 = vrot.lane.b32.xlu1 %v4771_v15, %s6856_s13 }
 0x244   : > { %v857_v10 = vsel %vm851_vm4, %v846_v11, %v838_v53  ;;  %v853_v3 = vsel %vm851_vm4, %v838_v53, %v846_v11 }
 0x245   : > { %v871_v29 = vmul.f32 %v4928_v25, %v857_v10  ;;  %2208 = vrot.lane.b32.xlu0 %v4786_v1, %s6856_s13  ;;  %v848_v20 = vpop.permute.xlu1 %847  ;;  %v870_v61 = vmul.f32 %v4946_v46, %v853_v3 }
 0x246   : > { %3457 = vmatpush1.bf16.msra.mxu0 %v3456_v13  ;;  %v854_v33 = vsel %vm851_vm4, %v840_v63, %v848_v20  ;;  %v858_v36 = vsel %vm851_vm4, %v848_v20, %v840_v63 }
 0x247   : > { %v842_v23 = vpop.permute.xlu0 %841  ;;  %3459 = vmatprep.subr.bf16.mxu0 %v3458_v21  ;;  %2238 = vrot.lane.b32.xlu1 %v4730_v39, %s6857_s19  ;;  %v3462_v24 = vpack.c.bf16 %v871_v29, %v869_v12  ;;  %v3464_v16 = vpack.c.bf16 %v870_v61, %v868_v32  ;;  %v872_v41 = vmul.f32 %v4946_v46, %v854_v33 }
 0x248   : > { %v873_v18 = vmul.f32 %v4928_v25, %v858_v36 }
 0x249   : > { %2216 = vrot.lane.b32.xlu0 %v4801_v38, %s6856_s13  ;;  %v877_v17 = vpop.permute.xlu1 %876 }
 0x24a   : > { %3461 = vmatpush1.bf16.msra.mxu0 %v3460_v31 }
 0x24b   : > { %v850_v49 = vpop.permute.xlu0 %849  ;;  %3463 = vmatprep.subr.bf16.mxu0 %v3462_v24  ;;  %2246 = vrot.lane.b32.xlu1 %v4737_v2, %s6857_s19 }
 0x24c   : > { %v855_v7 = vsel %vm851_vm4, %v842_v23, %v850_v49  ;;  %v859_v8 = vsel %vm851_vm4, %v850_v49, %v842_v23 }
 0x24d   : > { %v874_v45 = vmul.f32 %v4946_v46, %v855_v7  ;;  %v875_v37 = vmul.f32 %v4928_v25, %v859_v8  ;;  %2236 = vrot.lane.b32.xlu0 %v4746_v62, %s6857_s19  ;;  %v885_v47 = vpop.permute.xlu1 %884 }
 0x24e   : > { %3465 = vmatpush1.bf16.msra.mxu0 %v3464_v16  ;;  %v893_v58 = vsel %vm892_vm5, %v877_v17, %v885_v47  ;;  %v897_v53 = vsel %vm892_vm5, %v885_v47, %v877_v17  ;;  %v944_v17 = vsub.s32 6, %v4675_v57 }
 0x24f   : > { %v879_v28 = vpop.permute.xlu0 %878  ;;  %2242 = vrot.lane.b32.xlu1 %v4751_v27, %s6857_s19  ;;  %v3466_v59 = vpack.c.bf16 %v875_v37, %v873_v18  ;;  %v3468_v51 = vpack.c.bf16 %v874_v45, %v872_v41  ;;  %v909_v4 = vmul.f32 %v4980_v48, %v893_v58  ;;  %v910_v11 = vmul.f32 %v4983_v60, %v897_v53 }
 0x250   : > { %v5028_v26 = vrot.slane %v4695_v14, %v944_v17  ;;  %v5031_v41 = vrot.slane %v4700_v30, %v944_v17 }
 0x251   : > { %2244 = vrot.lane.b32.xlu0 %v4765_v6, %s6857_s19  ;;  %3467 = vmatprep.subr.bf16.mxu0 %v3466_v59  ;;  %v881_v50 = vpop.permute.xlu1 %880 }
 0x252   : > { %3469 = vmatpush1.bf16.msra.mxu0 %v3468_v51  ;;  %6860 = vst [vmem:[#allocation11_spill] sm:$0xff] %v5028_v26  ;;  %6861 = vst [vmem:[#allocation12_spill] sm:$0xff] %v5031_v41 }
 0x253   : > { %v887_v54 = vpop.permute.xlu0 %886  ;;  %2250 = vrot.lane.b32.xlu1 %v4771_v15, %s6857_s19 }
 0x254   : > { %v894_v40 = vsel %vm892_vm5, %v879_v28, %v887_v54  ;;  %v898_v63 = vsel %vm892_vm5, %v887_v54, %v879_v28  ;;  %v5042_v28 = vld [vmem:[%s4408_s25 + $0x8] sm:$0xff] }
 0x255   : > { %v911_v55 = vmul.f32 %v4980_v48, %v894_v40  ;;  %v912_v10 = vmul.f32 %v4983_v60, %v898_v63  ;;  %2240 = vrot.lane.b32.xlu0 %v4786_v1, %s6857_s19  ;;  %v889_v13 = vpop.permute.xlu1 %888  ;;  %v3387_v63 = vmul.f32 -1.442695, %v5042_v28 }
 0x256   : > { %v895_v44 = vsel %vm892_vm5, %v881_v50, %v889_v13  ;;  %v899_v12 = vsel %vm892_vm5, %v889_v13, %v881_v50 }
 0x257   : > { %v883_v3 = vpop.permute.xlu0 %882  ;;  %2270 = vrot.lane.b32.xlu1 %v4730_v39, %s6859_s12  ;;  %v3470_v29 = vpack.c.bf16 %v912_v10, %v910_v11  ;;  %v3472_v20 = vpack.c.bf16 %v911_v55, %v909_v4  ;;  %v913_v24 = vmul.f32 %v4980_v48, %v895_v44  ;;  %v914_v32 = vmul.f32 %v4983_v60, %v899_v12 }
 0x258   : > { %3919 = vpow2.f32 %v3387_v63  ;;  %v985_v44 = vsub.s32 7, %v4675_v57 }
 0x259   : > { %2248 = vrot.lane.b32.xlu0 %v4801_v38, %s6857_s19  ;;  %3471 = vmatprep.subr.bf16.mxu0 %v3470_v29  ;;  %v918_v21 = vpop.permute.xlu1 %917 }
 0x25a   : > { %3473 = vmatpush1.bf16.msra.mxu0 %v3472_v20 }
 0x25b   : > { %v891_v23 = vpop.permute.xlu0 %890  ;;  %2278 = vrot.lane.b32.xlu1 %v4737_v2, %s6859_s12 }
 0x25c   : > { %v896_v61 = vsel %vm892_vm5, %v883_v3, %v891_v23  ;;  %v900_v31 = vsel %vm892_vm5, %v891_v23, %v883_v3 }
 0x25d   : > { %v915_v33 = vmul.f32 %v4980_v48, %v896_v61  ;;  %v916_v36 = vmul.f32 %v4983_v60, %v900_v31  ;;  %2268 = vrot.lane.b32.xlu0 %v4746_v62, %s6859_s12  ;;  %v926_v49 = vpop.permute.xlu1 %925 }
 0x25e   : > { %v934_v45 = vsel %vm933_vm6, %v918_v21, %v926_v49  ;;  %v938_v37 = vsel %vm933_vm6, %v926_v49, %v918_v21  ;;  %v5085_v49 = vrot.slane %v4700_v30, %v985_v44  ;;  %v5101_v30 = vld [vmem:[%s6793_s5 + $0x20] sm:$0xff] }
 0x25f   : > { %v920_v7 = vpop.permute.xlu0 %919  ;;  %2274 = vrot.lane.b32.xlu1 %v4751_v27, %s6859_s12  ;;  %v3474_v8 = vpack.c.bf16 %v916_v36, %v914_v32  ;;  %v3476_v16 = vpack.c.bf16 %v915_v33, %v913_v24  ;;  %v950_v50 = vmul.f32 %v5028_v26, %v934_v45  ;;  %v951_v58 = vmul.f32 %v5031_v41, %v938_v37 }
 0x260   : > { %v5080_v33 = vrot.slane %v4695_v14, %v985_v44  ;;  %6863 = vst [vmem:[#allocation14_spill] sm:$0xff] %v5085_v49  ;;  %v5094_v14 = vld [vmem:[%s6793_s5] sm:$0xff] }
 0x261   : > { %2276 = vrot.lane.b32.xlu0 %v4765_v6, %s6859_s12  ;;  %3475 = vmatprep.subr.bf16.mxu0 %v3474_v8  ;;  %v922_v18 = vpop.permute.xlu1 %921 }
 0x262   : > { %3477 = vmatpush1.bf16.msra.mxu0 %v3476_v16  ;;  %6862 = vst [vmem:[#allocation13_spill] sm:$0xff] %v5080_v33 }
 0x263   : > { %v928_v47 = vpop.permute.xlu0 %927  ;;  %2282 = vrot.lane.b32.xlu1 %v4771_v15, %s6859_s12 }
 0x264   : > { %v935_v59 = vsel %vm933_vm6, %v920_v7, %v928_v47  ;;  %v939_v51 = vsel %vm933_vm6, %v928_v47, %v920_v7  ;;  %v3920_v47 = vpop.eup %3919 }
 0x265   : > { %v952_v53 = vmul.f32 %v5028_v26, %v935_v59  ;;  %v953_v54 = vmul.f32 %v5031_v41, %v939_v51  ;;  %2272 = vrot.lane.b32.xlu0 %v4786_v1, %s6859_s12  ;;  %v930_v40 = vpop.permute.xlu1 %929  ;;  %v2099_v63 = vadd.f32 1.0, %v3920_v47  ;;  %v5183_v47 = vld [vmem:[%s6794_s6] sm:$0xff] }
 0x266   : > { %v936_v13 = vsel %vm933_vm6, %v922_v18, %v930_v40  ;;  %v940_v3 = vsel %vm933_vm6, %v930_v40, %v922_v18 }
 0x267   : > { %v924_v4 = vpop.permute.xlu0 %923  ;;  %2302 = vrot.lane.b32.xlu1 %v4730_v39, %s6815_s28  ;;  %v3478_v11 = vpack.c.bf16 %v953_v54, %v951_v58  ;;  %v3480_v55 = vpack.c.bf16 %v952_v53, %v950_v50  ;;  %v954_v12 = vmul.f32 %v5028_v26, %v936_v13  ;;  %v955_v23 = vmul.f32 %v5031_v41, %v940_v3 }
 0x268   : > { %3921 = vrcp.f32 %v2099_v63 }
 0x269   : > { %2280 = vrot.lane.b32.xlu0 %v4801_v38, %s6859_s12  ;;  %3479 = vmatprep.subr.bf16.mxu0 %v3478_v11  ;;  %v959_v10 = vpop.permute.xlu1 %958 }
 0x26a   : > { %3481 = vmatpush1.bf16.msra.mxu0 %v3480_v55  ;;  %v5127_v55 = vld [vmem:[%s6793_s5 + $0x38] sm:$0xff] }
 0x26b   : > { %v932_v29 = vpop.permute.xlu0 %931  ;;  %2310 = vrot.lane.b32.xlu1 %v4737_v2, %s6815_s28 }
 0x26c   : > { %v937_v20 = vsel %vm933_vm6, %v924_v4, %v932_v29  ;;  %v941_v21 = vsel %vm933_vm6, %v932_v29, %v924_v4  ;;  %v5120_v4 = vld [vmem:[%s6793_s5 + $0x18] sm:$0xff] }
 0x26d   : > { %v956_v61 = vmul.f32 %v5028_v26, %v937_v20  ;;  %v957_v31 = vmul.f32 %v5031_v41, %v941_v21  ;;  %2300 = vrot.lane.b32.xlu0 %v4746_v62, %s6815_s28  ;;  %v967_v17 = vpop.permute.xlu1 %966  ;;  %v5144_v21 = vld [vmem:[%s6793_s5 + $0x30] sm:$0xff] }
 0x26e   : > { %v975_v36 = vsel %vm974_vm7, %v959_v10, %v967_v17  ;;  %v979_v8 = vsel %vm974_vm7, %v967_v17, %v959_v10 }
 0x26f   : > { %v961_v24 = vpop.permute.xlu0 %960  ;;  %2306 = vrot.lane.b32.xlu1 %v4751_v27, %s6815_s28  ;;  %v3482_v32 = vpack.c.bf16 %v957_v31, %v955_v23  ;;  %v3484_v57 = vpack.c.bf16 %v956_v61, %v954_v12  ;;  %v991_v18 = vmul.f32 %v5080_v33, %v975_v36  ;;  %v992_v59 = vmul.f32 %v5085_v49, %v979_v8  ;;  %v5154_v31 = vld [vmem:[%s6793_s5 + $0x50] sm:$0xff] }
 0x271   : > { %2308 = vrot.lane.b32.xlu0 %v4765_v6, %s6815_s28  ;;  %3483 = vmatprep.subr.bf16.mxu0 %v3482_v32  ;;  %v963_v7 = vpop.permute.xlu1 %962 }
 0x272   : > { %3485 = vmatpush1.bf16.msra.mxu0 %v3484_v57 }
 0x273   : > { %v969_v16 = vpop.permute.xlu0 %968  ;;  %2314 = vrot.lane.b32.xlu1 %v4771_v15, %s6815_s28 }
 0x274   : > { %v976_v45 = vsel %vm974_vm7, %v961_v24, %v969_v16  ;;  %v980_v37 = vsel %vm974_vm7, %v969_v16, %v961_v24 }
 0x275   : > { %v993_v51 = vmul.f32 %v5080_v33, %v976_v45  ;;  %v994_v50 = vmul.f32 %v5085_v49, %v980_v37  ;;  %2304 = vrot.lane.b32.xlu0 %v4786_v1, %s6815_s28  ;;  %v971_v58 = vpop.permute.xlu1 %970  ;;  %1101 = vmatmul.mubr.f32.vlgmr.msra.gmra.mrb[0].mxu0 %v5094_v14 }
 0x276   : > { %1106 = vmatprep.mubr.f32.mxu0 %v5101_v30  ;;  %v977_v10 = vsel %vm974_vm7, %v963_v7, %v971_v58  ;;  %v981_v13 = vsel %vm974_vm7, %v971_v58, %v963_v7  ;;  %v5166_v7 = vld [vmem:[%s6793_s5 + $0x48] sm:$0xff]  ;;  %v6819_v58 = vmov 0.0  }
 0x277   : > { %v3488_v53 = vpack.c.bf16 %v993_v51, %v991_v18  ;;  %v965_v54 = vpop.permute.xlu0 %964  ;;  %2334 = vrot.lane.b32.xlu1 %v4730_v39, %s6813_s24  ;;  %v3486_v40 = vpack.c.bf16 %v994_v50, %v992_v59  ;;  %v995_v44 = vmul.f32 %v5080_v33, %v977_v10  ;;  %v996_v17 = vmul.f32 %v5085_v49, %v981_v13 }
 0x279   : > { %2312 = vrot.lane.b32.xlu0 %v4801_v38, %s6815_s28  ;;  %3487 = vmatprep.subr.bf16.mxu0 %v3486_v40  ;;  %v2111_v11 = vpop.permute.xlu1 %2110  ;;  %v3922_v40 = vpop.eup %3921  ;;  %s6865_s28 = smov 16  }
 0x27a   : > { %3489 = vmatpush1.bf16.msra.mxu0 %v3488_v53 }
 0x27b   : > { %v973_v3 = vpop.permute.xlu0 %972  ;;  %1107 = vmatmul.mubr.f32.gmra.mrb[2].mxu0 %v5120_v4  ;;  %2342 = vrot.lane.b32.xlu1 %v4737_v2, %s6813_s24 }
 0x27c   : > { %v978_v29 = vsel %vm974_vm7, %v965_v54, %v973_v3  ;;  %v982_v20 = vsel %vm974_vm7, %v973_v3, %v965_v54  ;;  %1112 = vmatprep.mubr.f32.mxu0 %v5127_v55  ;;  %v5194_v54 = vld [vmem:[%s6793_s5 + $0x10] sm:$0xff] }
 0x27d   : > { %v997_v12 = vmul.f32 %v5080_v33, %v978_v29  ;;  %v998_v23 = vmul.f32 %v5085_v49, %v982_v20  ;;  %2332 = vrot.lane.b32.xlu0 %v4746_v62, %s6813_s24  ;;  %v2119_v61 = vpop.permute.xlu1 %2118  ;;  %v1001_v3 = vld [vmem:[%s6794_s6 + $0x10] sm:$0xff]  ;;  %v5212_v20 = vld [vmem:[%s6793_s5 + $0x28] sm:$0xff] }
 0x27e   : > { %v2129_v8 = vsel %vm687_vm0, %v2119_v61, %v2111_v11  ;;  %v2125_v16 = vsel %vm687_vm0, %v2111_v11, %v2119_v61 }
 0x27f   : > { %v3492_v24 = vpack.c.bf16 %v997_v12, %v995_v44  ;;  %v2109_v32 = vpop.permute.xlu0 %2108  ;;  %1113 = vmatmul.mubr.f32.gmra.mrb[4].mxu0 %v5144_v21  ;;  %2338 = vrot.lane.b32.xlu1 %v4751_v27, %s6813_s24  ;;  %v3490_v57 = vpack.c.bf16 %v998_v23, %v996_v17  ;;  %v2134_v59 = vmul.f32 %v2129_v8, %v4706_v34 }
 0x280   : > { %1118 = vmatprep.mubr.f32.mxu0 %v5154_v31  ;;  %v2135_v63 = vmul.f32 %v2125_v16, %v4709_v35  ;;  %v2102_v44 = vmul.f32 %v3922_v40, %v5042_v28  ;;  %v2365_v28 = vld [vmem:[%s6794_s6 + $0x8] sm:$0xff]  ;;  %v5234_v16 = vld [vmem:[%s6793_s5 + $0x40] sm:$0xff]  ;;  %v1002_v40 = vld [vmem:[%s6794_s6 + $0x18] sm:$0xff] }
 0x281   : > { %2340 = vrot.lane.b32.xlu0 %v4765_v6, %s6813_s24  ;;  %v2115_v36 = vpop.permute.xlu1 %2114  ;;  %3491 = vmatprep.subr.bf16.mxu0 %v3490_v57 }
 0x282   : > { %3493 = vmatpush1.bf16.msra.mxu0 %v3492_v24 }
 0x283   : > { %v2117_v18 = vpop.permute.xlu0 %2116  ;;  %2346 = vrot.lane.b32.xlu1 %v4771_v15, %s6813_s24  ;;  %1119 = vmatmul.mubr.f32.gmra.mrb[6].mxu0 %v5166_v7 }
 0x284   : > { %v2124_v45 = vsel %vm687_vm0, %v2109_v32, %v2117_v18  ;;  %v2128_v37 = vsel %vm687_vm0, %v2117_v18, %v2109_v32  ;;  %1133 = vmatprep.subr.mxu0 %v4479_v9  ;;  %1189 = vmatprep.mubr.f32.mxu0 %v6819_v58 }
 0x285   : > { %v2132_v51 = vmul.f32 %v2128_v37, %v4706_v34  ;;  %v2133_v50 = vmul.f32 %v2124_v45, %v4709_v35  ;;  %2336 = vrot.lane.b32.xlu0 %v4786_v1, %s6813_s24  ;;  %v2123_v53 = vpop.permute.xlu1 %2122 }
 0x286   : > { %1134 = vmatpush1.msra.mxu0 %v4479_v9  ;;  %v2131_v29 = vsel %vm687_vm0, %v2123_v53, %v2115_v36  ;;  %v2127_v12 = vsel %vm687_vm0, %v2115_v36, %v2123_v53 }
 0x287   : > { %v3568_v11 = vpack.c.bf16 %v2134_v59, %v2132_v51  ;;  %v2113_v10 = vpop.permute.xlu0 %2112  ;;  %1005 = vperm.xlu1 %3833, %v5183_v47   ;;  %3354 = vmatmul.mubr.msk.f32.vlgmr.msra.gmra.mrb[0].mxu0 %vm1023_vm8, %v5194_v54  ;;  %v3566_v13 = vpack.c.bf16 %v2135_v63, %v2133_v50  ;;  %v2138_v61 = vmul.f32 %v2131_v29, %v4706_v34  ;;  %v5243_v50 = vld [vmem:[%s6793_s5 + $0x58] sm:$0xff]  ;;  %v1318_v29 = vld [vmem:[%s6796_s8] sm:$0xff] }
 0x288   : > { %1195 = vmatprep.mubr.f32.mxu0 %v6819_v58  ;;  %v2139_v32 = vmul.f32 %v2127_v12, %v4709_v35 }
 0x289   : > { %2344 = vrot.lane.b32.xlu0 %v4801_v38, %s6813_s24  ;;  %v2143_v9 = vpop.permute.xlu1 %2142  ;;  %3567 = vmatprep.subr.bf16.mxu0 %v3566_v13  ;;  %s6866_s24 = smov 15  }
 0x28a   : > { %3569 = vmatpush1.bf16.msra.mxu0 %v3568_v11 }
 0x28b   : > { %v2121_v23 = vpop.permute.xlu0 %2120  ;;  %1015 = vperm.xlu1 %3833, %v1001_v3   ;;  %3355 = vmatmul.mubr.msk.f32.gmra.mrb[2].mxu0 %vm1023_vm8, %v5212_v20 }
 0x28c   : > { %v2126_v17 = vsel %vm687_vm0, %v2113_v10, %v2121_v23  ;;  %v2130_v24 = vsel %vm687_vm0, %v2121_v23, %v2113_v10  ;;  %1201 = vmatprep.mubr.f32.mxu0 %v6819_v58 }
 0x28d   : > { %v2136_v57 = vmul.f32 %v2130_v24, %v4706_v34  ;;  %v2137_v36 = vmul.f32 %v2126_v17, %v4709_v35  ;;  %2105 = vperm.xlu0 %3834, %v2102_v44   ;;  %v2151_v8 = vpop.permute.xlu1 %2150  ;;  %v5268_v24 = vld [vmem:[%s6796_s8 + $0x10] sm:$0xff] }
 0x28e   : > { %v2161_v59 = vsel %vm728_vm1, %v2151_v8, %v2143_v9  ;;  %v2157_v53 = vsel %vm728_vm1, %v2143_v9, %v2151_v8 }
 0x28f   : > { %v3572_v18 = vpack.c.bf16 %v2138_v61, %v2136_v57  ;;  %v2141_v45 = vpop.permute.xlu0 %2140  ;;  %2375 = vperm.xlu1 %3833, %v2365_v28   ;;  %v3570_v37 = vpack.c.bf16 %v2139_v32, %v2137_v36  ;;  %3356 = vmatmul.mubr.msk.f32.gmra.mrb[4].mxu0 %vm1023_vm8, %v5234_v16  ;;  %v2166_v11 = vmul.f32 %v2161_v59, %v4774_v42 }
 0x290   : > { %1207 = vmatprep.mubr.f32.mxu0 %v6819_v58  ;;  %v2167_v9 = vmul.f32 %v2157_v53, %v4777_v43 }
 0x291   : > { %1010 = vperm.xlu0 %3834, %v2365_v28   ;;  %3571 = vmatprep.subr.bf16.mxu0 %v3570_v37  ;;  %v2147_v51 = vpop.permute.xlu1 %2146 }
 0x292   : > { %3573 = vmatpush1.bf16.msra.mxu0 %v3572_v18 }
 0x293   : > { %v2149_v63 = vpop.permute.xlu0 %2148  ;;  %2380 = vperm.xlu1 %3833, %v1001_v3   ;;  %3357 = vmatmul.mubr.msk.f32.gmra.mrb[6].mxu0 %vm1023_vm8, %v5243_v50 }
 0x294   : > { %v2156_v10 = vsel %vm728_vm1, %v2141_v45, %v2149_v63  ;;  %v2160_v13 = vsel %vm728_vm1, %v2149_v63, %v2141_v45  ;;  %2452 = vmatprep.mubr.f32.mxu0 %v4682_v52 }
 0x295   : > { %v2164_v44 = vmul.f32 %v2160_v13, %v4774_v42  ;;  %v2165_v3 = vmul.f32 %v2156_v10, %v4777_v43  ;;  %1020 = vperm.xlu0 %3834, %v1002_v40   ;;  %v2155_v12 = vpop.permute.xlu1 %2154 }
 0x296   : > { %v2159_v32 = vsel %vm728_vm1, %v2147_v51, %v2155_v12  ;;  %v2163_v57 = vsel %vm728_vm1, %v2155_v12, %v2147_v51  ;;  %v1319_v51 = vld [vmem:[%s6796_s8 + $0x8] sm:$0xff] }
 0x297   : > { %v3576_v23 = vpack.c.bf16 %v2166_v11, %v2164_v44  ;;  %v2145_v61 = vpop.permute.xlu0 %2144  ;;  %1324 = vperm.xlu1 %3833, %v1318_v29   ;;  %v3574_v17 = vpack.c.bf16 %v2167_v9, %v2165_v3  ;;  %v2171_v18 = vmul.f32 %v2159_v32, %v4777_v43 }
 0x299   : > { %2370 = vperm.xlu0 %3834, %v5183_v47   ;;  %3575 = vmatprep.subr.bf16.mxu0 %v3574_v17  ;;  %v2175_v28 = vpop.permute.xlu1 %2174  ;;  %v2170_v47 = vmul.f32 %v2163_v57, %v4774_v42 }
 0x29a   : > { %3577 = vmatpush1.bf16.msra.mxu0 %v3576_v23 }
 0x29b   : > { %v2153_v52 = vpop.permute.xlu0 %2152  ;;  %1334 = vperm.xlu1 %3833, %v5268_v24  }
 0x29c   : > { %v2158_v36 = vsel %vm728_vm1, %v2145_v61, %v2153_v52  ;;  %v2162_v8 = vsel %vm728_vm1, %v2153_v52, %v2145_v61 }
 0x29d   : > { %v2168_v45 = vmul.f32 %v2162_v8, %v4774_v42  ;;  %v2169_v37 = vmul.f32 %v2158_v36, %v4777_v43  ;;  %2385 = vperm.xlu0 %3834, %v1002_v40   ;;  %v2183_v59 = vpop.permute.xlu1 %2182  ;;  %v5294_v40 = vld [vmem:[%s6796_s8 + $0x18] sm:$0xff] }
 0x29e   : > { %v2189_v13 = vsel %vm769_vm2, %v2175_v28, %v2183_v59  ;;  %v2193_v9 = vsel %vm769_vm2, %v2183_v59, %v2175_v28 }
 0x29f   : > { %v3580_v53 = vpack.c.bf16 %v2170_v47, %v2168_v45  ;;  %v2173_v63 = vpop.permute.xlu0 %2172  ;;  %2676 = vperm.xlu1 %3833, %v1318_v29   ;;  %v3578_v11 = vpack.c.bf16 %v2171_v18, %v2169_v37  ;;  %v2198_v12 = vmul.f32 %v2193_v9, %v4828_v22  ;;  %v2199_v23 = vmul.f32 %v2189_v13, %v4831_v5 }
 0x2a1   : > { %1329 = vperm.xlu0 %3834, %v1319_v51   ;;  %3579 = vmatprep.subr.bf16.mxu0 %v3578_v11  ;;  %v2179_v10 = vpop.permute.xlu1 %2178 }
 0x2a2   : > { %3581 = vmatpush1.bf16.msra.mxu0 %v3580_v53 }
 0x2a3   : > { %v2181_v44 = vpop.permute.xlu0 %2180 }
 0x2a4   : > { %v2188_v29 = vsel %vm769_vm2, %v2173_v63, %v2181_v44  ;;  %v2192_v3 = vsel %vm769_vm2, %v2181_v44, %v2173_v63 }
 0x2a5   : > { %v2196_v61 = vmul.f32 %v2192_v3, %v4828_v22  ;;  %v2197_v17 = vmul.f32 %v2188_v29, %v4831_v5  ;;  %1339 = vperm.xlu0 %3834, %v5294_v40   ;;  %v2187_v28 = vpop.permute.xlu1 %2186 }
 0x2a6   : > { %v2191_v8 = vsel %vm769_vm2, %v2179_v10, %v2187_v28  ;;  %v2195_v47 = vsel %vm769_vm2, %v2187_v28, %v2179_v10 }
 0x2a7   : > { %v3584_v32 = vpack.c.bf16 %v2198_v12, %v2196_v61  ;;  %v2177_v57 = vpop.permute.xlu0 %2176  ;;  %v3582_v52 = vpack.c.bf16 %v2199_v23, %v2197_v17  ;;  %v2202_v59 = vmul.f32 %v2195_v47, %v4828_v22 }
 0x2a9   : > { %2681 = vperm.xlu0 %3834, %v1319_v51   ;;  %3583 = vmatprep.subr.bf16.mxu0 %v3582_v52  ;;  %v2207_v36 = vpop.permute.xlu1 %2206  ;;  %v2203_v51 = vmul.f32 %v2191_v8, %v4831_v5 }
 0x2aa   : > { %3585 = vmatpush1.bf16.msra.mxu0 %v3584_v32 }
 0x2ab   : > { %v2185_v18 = vpop.permute.xlu0 %2184 }
 0x2ac   : > { %v2190_v45 = vsel %vm769_vm2, %v2177_v57, %v2185_v18  ;;  %v2194_v37 = vsel %vm769_vm2, %v2185_v18, %v2177_v57 }
 0x2ad   : > { %v2200_v53 = vmul.f32 %v2194_v37, %v4828_v22  ;;  %v2201_v63 = vmul.f32 %v2190_v45, %v4831_v5  ;;  %v2215_v11 = vpop.permute.xlu1 %2214 }
 0x2ae   : > { %v2221_v29 = vsel %vm810_vm3, %v2207_v36, %v2215_v11  ;;  %v2225_v3 = vsel %vm810_vm3, %v2215_v11, %v2207_v36 }
 0x2af   : > { %v3588_v13 = vpack.c.bf16 %v2202_v59, %v2200_v53  ;;  %v2205_v9 = vpop.permute.xlu0 %2204  ;;  %v3586_v10 = vpack.c.bf16 %v2203_v51, %v2201_v63  ;;  %v2230_v17 = vmul.f32 %v2225_v3, %v4876_v56  ;;  %v2231_v28 = vmul.f32 %v2221_v29, %v4879_v0 }
 0x2b1   : > { %3587 = vmatprep.subr.bf16.mxu0 %v3586_v10  ;;  %v2211_v44 = vpop.permute.xlu1 %2210 }
 0x2b2   : > { %3589 = vmatpush1.bf16.msra.mxu0 %v3588_v13 }
 0x2b3   : > { %v2213_v12 = vpop.permute.xlu0 %2212 }
 0x2b4   : > { %v2220_v23 = vsel %vm810_vm3, %v2205_v9, %v2213_v12  ;;  %v2224_v61 = vsel %vm810_vm3, %v2213_v12, %v2205_v9 }
 0x2b5   : > { %v2228_v32 = vmul.f32 %v2224_v61, %v4876_v56  ;;  %v2229_v57 = vmul.f32 %v2220_v23, %v4879_v0  ;;  %v2219_v52 = vpop.permute.xlu1 %2218  ;;  %v3598_v23 = vpack.c.bf16 %v4737_v2, %v4765_v6  ;;  %v3602_v2 = vpack.c.bf16 %v4771_v15, %v4801_v38 }
 0x2b6   : > { %v2223_v45 = vsel %vm810_vm3, %v2211_v44, %v2219_v52  ;;  %v2227_v37 = vsel %vm810_vm3, %v2219_v52, %v2211_v44 }
 0x2b7   : > { %v3592_v8 = vpack.c.bf16 %v2230_v17, %v2228_v32  ;;  %v2209_v47 = vpop.permute.xlu0 %2208  ;;  %v3590_v36 = vpack.c.bf16 %v2231_v28, %v2229_v57  ;;  %v2234_v63 = vmul.f32 %v2227_v37, %v4876_v56  ;;  %v2235_v11 = vmul.f32 %v2223_v45, %v4879_v0 }
 0x2b8   : > { %v3600_v32 = vpack.c.bf16 %v4730_v39, %v4746_v62  ;;  %v3604_v39 = vpack.c.bf16 %v4751_v27, %v4786_v1 }
 0x2b9   : > { %3591 = vmatprep.subr.bf16.mxu0 %v3590_v36  ;;  %v2239_v18 = vpop.permute.xlu1 %2238 }
 0x2ba   : > { %3593 = vmatpush1.bf16.msra.mxu0 %v3592_v8 }
 0x2bb   : > { %v2217_v59 = vpop.permute.xlu0 %2216 }
 0x2bc   : > { %v2222_v51 = vsel %vm810_vm3, %v2209_v47, %v2217_v59  ;;  %v2226_v53 = vsel %vm810_vm3, %v2217_v59, %v2209_v47 }
 0x2bd   : > { %v2232_v13 = vmul.f32 %v2226_v53, %v4876_v56  ;;  %v2233_v9 = vmul.f32 %v2222_v51, %v4879_v0  ;;  %v2247_v10 = vpop.permute.xlu1 %2246 }
 0x2be   : > { %v2257_v17 = vsel %vm851_vm4, %v2247_v10, %v2239_v18  ;;  %v2253_v6 = vsel %vm851_vm4, %v2239_v18, %v2247_v10 }
 0x2bf   : > { %v3596_v29 = vpack.c.bf16 %v2234_v63, %v2232_v13  ;;  %v2237_v3 = vpop.permute.xlu0 %2236  ;;  %v3594_v44 = vpack.c.bf16 %v2235_v11, %v2233_v9  ;;  %v2263_v47 = vmul.f32 %v2257_v17, %v4928_v25  ;;  %v2262_v59 = vmul.f32 %v2253_v6, %v4946_v46 }
 0x2c1   : > { %3595 = vmatprep.subr.bf16.mxu0 %v3594_v44  ;;  %v2243_v12 = vpop.permute.xlu1 %2242 }
 0x2c2   : > { %3597 = vmatpush1.bf16.msra.mxu0 %v3596_v29 }
 0x2c3   : > { %v2245_v61 = vpop.permute.xlu0 %2244  ;;  %3599 = vmatprep.subr.bf16.mxu0 %v3598_v23 }
 0x2c4   : > { %v2256_v28 = vsel %vm851_vm4, %v2245_v61, %v2237_v3  ;;  %v2252_v57 = vsel %vm851_vm4, %v2237_v3, %v2245_v61 }
 0x2c5   : > { %v2261_v52 = vmul.f32 %v2256_v28, %v4928_v25  ;;  %v2251_v8 = vpop.permute.xlu1 %2250  ;;  %v2260_v45 = vmul.f32 %v2252_v57, %v4946_v46 }
 0x2c6   : > { %3601 = vmatpush1.bf16.msra.mxu0 %v3600_v32  ;;  %v2255_v15 = vsel %vm851_vm4, %v2243_v12, %v2251_v8  ;;  %v2259_v38 = vsel %vm851_vm4, %v2251_v8, %v2243_v12 }
 0x2c7   : > { %v2241_v36 = vpop.permute.xlu0 %2240  ;;  %3603 = vmatprep.subr.bf16.mxu0 %v3602_v2  ;;  %v3606_v37 = vpack.c.bf16 %v2263_v47, %v2261_v52  ;;  %v3608_v51 = vpack.c.bf16 %v2262_v59, %v2260_v45  ;;  %v2266_v1 = vmul.f32 %v2255_v15, %v4946_v46  ;;  %v2267_v63 = vmul.f32 %v2259_v38, %v4928_v25 }
 0x2c9   : > { %v2271_v62 = vpop.permute.xlu1 %2270 }
 0x2ca   : > { %3605 = vmatpush1.bf16.msra.mxu0 %v3604_v39 }
 0x2cb   : > { %v2249_v18 = vpop.permute.xlu0 %2248  ;;  %3607 = vmatprep.subr.bf16.mxu0 %v3606_v37 }
 0x2cc   : > { %v2254_v53 = vsel %vm851_vm4, %v2241_v36, %v2249_v18  ;;  %v2258_v27 = vsel %vm851_vm4, %v2249_v18, %v2241_v36 }
 0x2cd   : > { %v2264_v11 = vmul.f32 %v2254_v53, %v4946_v46  ;;  %v2265_v13 = vmul.f32 %v2258_v27, %v4928_v25  ;;  %v2279_v9 = vpop.permute.xlu1 %2278 }
 0x2ce   : > { %3609 = vmatpush1.bf16.msra.mxu0 %v3608_v51  ;;  %v2285_v12 = vsel %vm892_vm5, %v2271_v62, %v2279_v9  ;;  %v2289_v23 = vsel %vm892_vm5, %v2279_v9, %v2271_v62 }
 0x2cf   : > { %v3612_v10 = vpack.c.bf16 %v2266_v1, %v2264_v11  ;;  %v2269_v29 = vpop.permute.xlu0 %2268  ;;  %v3610_v3 = vpack.c.bf16 %v2267_v63, %v2265_v13  ;;  %v2294_v32 = vmul.f32 %v2285_v12, %v4980_v48  ;;  %v2295_v57 = vmul.f32 %v2289_v23, %v4983_v60 }
 0x2d1   : > { %3611 = vmatprep.subr.bf16.mxu0 %v3610_v3  ;;  %v2275_v44 = vpop.permute.xlu1 %2274 }
 0x2d2   : > { %3613 = vmatpush1.bf16.msra.mxu0 %v3612_v10 }
 0x2d3   : > { %v2277_v61 = vpop.permute.xlu0 %2276 }
 0x2d4   : > { %v2284_v17 = vsel %vm892_vm5, %v2269_v29, %v2277_v61  ;;  %v2288_v28 = vsel %vm892_vm5, %v2277_v61, %v2269_v29 }
 0x2d5   : > { %v2292_v52 = vmul.f32 %v2284_v17, %v4980_v48  ;;  %v2293_v8 = vmul.f32 %v2288_v28, %v4983_v60  ;;  %v2283_v2 = vpop.permute.xlu1 %2282 }
 0x2d6   : > { %v2287_v39 = vsel %vm892_vm5, %v2275_v44, %v2283_v2  ;;  %v2291_v62 = vsel %vm892_vm5, %v2283_v2, %v2275_v44 }
 0x2d7   : > { %v3616_v6 = vpack.c.bf16 %v2294_v32, %v2292_v52  ;;  %v2273_v47 = vpop.permute.xlu0 %2272  ;;  %v3614_v36 = vpack.c.bf16 %v2295_v57, %v2293_v8  ;;  %v2298_v38 = vmul.f32 %v2287_v39, %v4980_v48  ;;  %v2299_v18 = vmul.f32 %v2291_v62, %v4983_v60 }
 0x2d9   : > { %3615 = vmatprep.subr.bf16.mxu0 %v3614_v36  ;;  %v2303_v45 = vpop.permute.xlu1 %2302 }
 0x2da   : > { %3617 = vmatpush1.bf16.msra.mxu0 %v3616_v6 }
 0x2db   : > { %v2281_v37 = vpop.permute.xlu0 %2280 }
 0x2dc   : > { %v2286_v59 = vsel %vm892_vm5, %v2273_v47, %v2281_v37  ;;  %v2290_v15 = vsel %vm892_vm5, %v2281_v37, %v2273_v47 }
 0x2dd   : > { %v2296_v51 = vmul.f32 %v2286_v59, %v4980_v48  ;;  %v2297_v53 = vmul.f32 %v2290_v15, %v4983_v60  ;;  %v2311_v27 = vpop.permute.xlu1 %2310 }
 0x2de   : > { %v2317_v9 = vsel %vm933_vm6, %v2303_v45, %v2311_v27  ;;  %v2321_v10 = vsel %vm933_vm6, %v2311_v27, %v2303_v45 }
 0x2df   : > { %v3620_v1 = vpack.c.bf16 %v2298_v38, %v2296_v51  ;;  %v2301_v63 = vpop.permute.xlu0 %2300  ;;  %v3618_v11 = vpack.c.bf16 %v2299_v18, %v2297_v53  ;;  %v2326_v12 = vmul.f32 %v2317_v9, %v5028_v26  ;;  %v2327_v23 = vmul.f32 %v2321_v10, %v5031_v41 }
 0x2e1   : > { %3619 = vmatprep.subr.bf16.mxu0 %v3618_v11  ;;  %v2307_v13 = vpop.permute.xlu1 %2306 }
 0x2e2   : > { %3621 = vmatpush1.bf16.msra.mxu0 %v3620_v1 }
 0x2e3   : > { %v2309_v29 = vpop.permute.xlu0 %2308 }
 0x2e4   : > { %v2316_v3 = vsel %vm933_vm6, %v2301_v63, %v2309_v29  ;;  %v2320_v44 = vsel %vm933_vm6, %v2309_v29, %v2301_v63 }
 0x2e5   : > { %v2324_v61 = vmul.f32 %v2316_v3, %v5028_v26  ;;  %v2325_v17 = vmul.f32 %v2320_v44, %v5031_v41  ;;  %v2315_v28 = vpop.permute.xlu1 %2314 }
 0x2e6   : > { %v2319_v2 = vsel %vm933_vm6, %v2307_v13, %v2315_v28  ;;  %v2323_v6 = vsel %vm933_vm6, %v2315_v28, %v2307_v13 }
 0x2e7   : > { %v3624_v32 = vpack.c.bf16 %v2326_v12, %v2324_v61  ;;  %v2305_v57 = vpop.permute.xlu0 %2304  ;;  %v3622_v52 = vpack.c.bf16 %v2327_v23, %v2325_v17  ;;  %v2330_v39 = vmul.f32 %v2319_v2, %v5028_v26  ;;  %v2331_v62 = vmul.f32 %v2323_v6, %v5031_v41 }
 0x2e9   : > { %3623 = vmatprep.subr.bf16.mxu0 %v3622_v52  ;;  %v2335_v8 = vpop.permute.xlu1 %2334 }
 0x2ea   : > { %3625 = vmatpush1.bf16.msra.mxu0 %v3624_v32 }
 0x2eb   : > { %v2313_v47 = vpop.permute.xlu0 %2312 }
 0x2ec   : > { %v2318_v36 = vsel %vm933_vm6, %v2305_v57, %v2313_v47  ;;  %v2322_v45 = vsel %vm933_vm6, %v2313_v47, %v2305_v57 }
 0x2ed   : > { %v2328_v37 = vmul.f32 %v2318_v36, %v5028_v26  ;;  %v2329_v59 = vmul.f32 %v2322_v45, %v5031_v41  ;;  %v2343_v15 = vpop.permute.xlu1 %2342 }
 0x2ee   : > { %v2349_v27 = vsel %vm974_vm7, %v2335_v8, %v2343_v15  ;;  %v2353_v1 = vsel %vm974_vm7, %v2343_v15, %v2335_v8 }
 0x2ef   : > { %v3628_v38 = vpack.c.bf16 %v2330_v39, %v2328_v37  ;;  %v2333_v18 = vpop.permute.xlu0 %2332  ;;  %v3626_v51 = vpack.c.bf16 %v2331_v62, %v2329_v59  ;;  %v2358_v9 = vmul.f32 %v2349_v27, %v5080_v33  ;;  %v2359_v10 = vmul.f32 %v2353_v1, %v5085_v49 }
 0x2f1   : > { %3627 = vmatprep.subr.bf16.mxu0 %v3626_v51  ;;  %v2339_v53 = vpop.permute.xlu1 %2338 }
 0x2f2   : > { %3629 = vmatpush1.bf16.msra.mxu0 %v3628_v38 }
 0x2f3   : > { %v2341_v63 = vpop.permute.xlu0 %2340 }
 0x2f4   : > { %v2348_v11 = vsel %vm974_vm7, %v2333_v18, %v2341_v63  ;;  %v2352_v13 = vsel %vm974_vm7, %v2341_v63, %v2333_v18 }
 0x2f5   : > { %v2356_v29 = vmul.f32 %v2348_v11, %v5080_v33  ;;  %v2357_v3 = vmul.f32 %v2352_v13, %v5085_v49  ;;  %2453 = vmatmul.mubr.f32.vlgmr.msra.gmra.mrb[8].mxu0 %v5094_v14  ;;  %v2347_v12 = vpop.permute.xlu1 %2346 }
 0x2f6   : > { %2458 = vmatprep.mubr.f32.mxu0 %v5101_v30  ;;  %v2351_v17 = vsel %vm974_vm7, %v2339_v53, %v2347_v12  ;;  %v2355_v28 = vsel %vm974_vm7, %v2347_v12, %v2339_v53 }
 0x2f7   : > { %v3632_v44 = vpack.c.bf16 %v2358_v9, %v2356_v29  ;;  %v2337_v23 = vpop.permute.xlu0 %2336  ;;  %v3630_v61 = vpack.c.bf16 %v2359_v10, %v2357_v3  ;;  %v2362_v57 = vmul.f32 %v2351_v17, %v5080_v33 }
 0x2f9   : > { %3631 = vmatprep.subr.bf16.mxu0 %v3630_v61  ;;  %2459 = vmatmul.mubr.f32.gmra.mrb[10].mxu0 %v5120_v4  ;;  %v2363_v4 = vmul.f32 %v2355_v28, %v5085_v49 }
 0x2fa   : > { %3633 = vmatpush1.bf16.msra.mxu0 %v3632_v44  ;;  %2464 = vmatprep.mubr.f32.mxu0 %v5127_v55 }
 0x2fb   : > { %v2345_v32 = vpop.permute.xlu0 %2344 }
 0x2fc   : > { %v2350_v14 = vsel %vm974_vm7, %v2337_v23, %v2345_v32  ;;  %v2354_v30 = vsel %vm974_vm7, %v2345_v32, %v2337_v23 }
 0x2fd   : > { %v2360_v52 = vmul.f32 %v2350_v14, %v5080_v33  ;;  %v2361_v8 = vmul.f32 %v2354_v30, %v5085_v49  ;;  %2465 = vmatmul.mubr.f32.gmra.mrb[12].mxu0 %v5144_v21 }
 0x2fe   : > { %2470 = vmatprep.mubr.f32.mxu0 %v5154_v31 }
 0x2ff   : > { %v3636_v55 = vpack.c.bf16 %v2362_v57, %v2360_v52  ;;  %v3634_v2 = vpack.c.bf16 %v2363_v4, %v2361_v8 }
 0x301   : > { %3635 = vmatprep.subr.bf16.mxu0 %v3634_v2  ;;  %2471 = vmatmul.mubr.f32.gmra.mrb[14].mxu0 %v5166_v7 }
 0x302   : > { %3637 = vmatpush1.bf16.msra.mxu0 %v3636_v55  ;;  %2541 = vmatprep.mubr.f32.mxu0 %v6819_v58 }
 0x306   : > { %v1006_v21 = vpop.permute.xlu1 %1005 }
 0x30a   : > { %v1016_v51 = vpop.permute.xlu1 %1015 }
 0x30c   : > { %v2106_v6 = vpop.permute.xlu0 %2105 }
 0x30d   : > { %2485 = vmatprep.subr.mxu0 %v2106_v6 }
 0x30e   : > { %2486 = vmatpush1.msra.mxu0 %v2106_v6  ;;  %v2376_v30 = vpop.permute.xlu1 %2375 }
 0x30f   : > { %3388 = vmatmul.mubr.msk.f32.vlgmr.msra.gmra.mrb[8].mxu0 %vm1023_vm8, %v5194_v54 }
 0x310   : > { %2547 = vmatprep.mubr.f32.mxu0 %v6819_v58  ;;  %v1011_v36 = vpop.permute.xlu0 %1010 }
 0x312   : > { %v2381_v4 = vpop.permute.xlu1 %2380 }
 0x313   : > { %3389 = vmatmul.mubr.msk.f32.gmra.mrb[10].mxu0 %vm1023_vm8, %v5212_v20 }
 0x314   : > { %2553 = vmatprep.mubr.f32.mxu0 %v6819_v58  ;;  %v1021_v13 = vpop.permute.xlu0 %1020 }
 0x316   : > { %v5506_v8 = vpop.permute.xlu1 %1324 }
 0x317   : > { %3390 = vmatmul.mubr.msk.f32.gmra.mrb[12].mxu0 %vm1023_vm8, %v5234_v16 }
 0x318   : > { %2559 = vmatprep.mubr.f32.mxu0 %v6819_v58  ;;  %v2371_v57 = vpop.permute.xlu0 %2370 }
 0x31b   : > { %3391 = vmatmul.mubr.msk.f32.gmra.mrb[14].mxu0 %vm1023_vm8, %v5243_v50 }
 0x31c   : > { %v2386_v52 = vpop.permute.xlu0 %2385 }
 0x320   : > { %v5508_v55 = vpop.permute.xlu0 %1329 }
 0x35a   : > { %v1191_v31 = vpop.f32.mrb[0].mxu0 }
 0x35b   : > { %v5464_v7 = vadd.f32 %v1191_v31, %v1006_v21  ;;  %v1193_v54 = vpop.f32.mrb[1].mxu0  ;;  %v5512_v31 = vpop.permute.xlu1 %1334 }
 0x35c   : > { %v5466_v47 = vadd.f32 %v1193_v54, %v1006_v21 }
 0x35d   : > { %v1226_v20 = vmul.f32 %v5464_v7, %v5464_v7 }
 0x35e   : > { %v1227_v45 = vmul.f32 %v5466_v47, %v5466_v47  ;;  %v1197_v16 = vpop.f32.mrb[2].mxu0  ;;  %v1214_v39 = vadd.f32 %v5466_v47, %v5464_v7 }
 0x35f   : > { %v5474_v62 = vadd.f32 %v1197_v16, %v1011_v36  ;;  %v1199_v50 = vpop.f32.mrb[3].mxu0 }
 0x360   : > { %v5476_v37 = vadd.f32 %v1199_v50, %v1011_v36  ;;  %1215 = vadd.xlane.f32.xlu1 %v1214_v39  ;;  %v1234_v59 = vadd.f32 %v1227_v45, %v1226_v20 }
 0x361   : > { %v1228_v15 = vmul.f32 %v5474_v62, %v5474_v62 }
 0x362   : > { %v1229_v38 = vmul.f32 %v5476_v37, %v5476_v37  ;;  %v1203_v18 = vpop.f32.mrb[4].mxu0  ;;  %1235 = vadd.xlane.f32.xlu0 %v1234_v59  ;;  %v1217_v63 = vadd.f32 %v5476_v37, %v5474_v62 }
 0x363   : > { %v1205_v53 = vpop.f32.mrb[5].mxu0  ;;  %v5482_v27 = vadd.f32 %v1203_v18, %v1016_v51 }
 0x364   : > { %v5484_v1 = vadd.f32 %v1205_v53, %v1016_v51  ;;  %v1237_v11 = vadd.f32 %v1229_v38, %v1228_v15  ;;  %v5530_v38 = vpop.permute.xlu1 %2676 }
 0x365   : > { %v1230_v3 = vmul.f32 %v5482_v27, %v5482_v27 }
 0x366   : > { %v1209_v9 = vpop.f32.mrb[6].mxu0  ;;  %1218 = vadd.xlane.f32.xlu0 %v1217_v63  ;;  %1238 = vadd.xlane.f32.xlu1 %v1237_v11  ;;  %v1231_v44 = vmul.f32 %v5484_v1, %v5484_v1  ;;  %v1220_v23 = vadd.f32 %v5484_v1, %v5482_v27 }
 0x367   : > { %v5488_v10 = vadd.f32 %v1209_v9, %v1021_v13  ;;  %v1211_v29 = vpop.f32.mrb[7].mxu0 }
 0x368   : > { %v5494_v12 = vadd.f32 %v1211_v29, %v1021_v13  ;;  %v1240_v32 = vadd.f32 %v1231_v44, %v1230_v3 }
 0x369   : > { %v1232_v61 = vmul.f32 %v5488_v10, %v5488_v10 }
 0x36a   : > { %v1233_v17 = vmul.f32 %v5494_v12, %v5494_v12  ;;  %1221 = vadd.xlane.f32.xlu0 %v1220_v23  ;;  %v1223_v28 = vadd.f32 %v5494_v12, %v5488_v10 }
 0x36c   : > { %1224 = vadd.xlane.f32.xlu1 %v1223_v28  ;;  %v1243_v14 = vadd.f32 %v1233_v17, %v1232_v61 }
 0x36e   : > { %1241 = vadd.xlane.f32.xlu0 %v1240_v32 }
 0x370   : > { %1244 = vadd.xlane.f32.xlu1 %v1243_v14 }
 0x381   : > { %2686 = vperm.xlu1 %3833, %v5268_v24  }
 0x384   : > { %2691 = vperm.xlu0 %3834, %v5294_v40   ;;  %v5518_v40 = vpop.permute.xlu0 %1339 }
 0x388   : > { %v5534_v63 = vpop.permute.xlu0 %2681 }
 0x3e2   : > { %v2543_v2 = vpop.f32.mrb[8].mxu0 }
 0x3e3   : > { %v5510_v6 = vadd.f32 %v2543_v2, %v2371_v57  ;;  %v2545_v21 = vpop.f32.mrb[9].mxu0 }
 0x3e4   : > { %v5514_v54 = vadd.f32 %v2545_v21, %v2371_v57 }
 0x3e5   : > { %v2578_v24 = vmul.f32 %v5510_v6, %v5510_v6 }
 0x3e6   : > { %v2579_v20 = vmul.f32 %v5514_v54, %v5514_v54  ;;  %v2549_v36 = vpop.f32.mrb[10].mxu0  ;;  %v2566_v45 = vadd.f32 %v5514_v54, %v5510_v6 }
 0x3e7   : > { %v5524_v16 = vadd.f32 %v2549_v36, %v2376_v30  ;;  %v2551_v39 = vpop.f32.mrb[11].mxu0 }
 0x3e8   : > { %v5526_v50 = vadd.f32 %v2551_v39, %v2376_v30  ;;  %2567 = vadd.xlane.f32.xlu1 %v2566_v45  ;;  %v2586_v59 = vadd.f32 %v2579_v20, %v2578_v24 }
 0x3e9   : > { %v2580_v15 = vmul.f32 %v5524_v16, %v5524_v16 }
 0x3ea   : > { %v2581_v18 = vmul.f32 %v5526_v50, %v5526_v50  ;;  %v2555_v51 = vpop.f32.mrb[12].mxu0  ;;  %2587 = vadd.xlane.f32.xlu0 %v2586_v59  ;;  %v2569_v9 = vadd.f32 %v5526_v50, %v5524_v16 }
 0x3eb   : > { %v2557_v53 = vpop.f32.mrb[13].mxu0  ;;  %v5536_v11 = vadd.f32 %v2555_v51, %v2381_v4 }
 0x3ec   : > { %v5538_v13 = vadd.f32 %v2557_v53, %v2381_v4  ;;  %v2589_v29 = vadd.f32 %v2581_v18, %v2580_v15 }
 0x3ed   : > { %v1216_v3 = vpop.xlane.xlu1 %1215  ;;  %v2582_v28 = vmul.f32 %v5536_v11, %v5536_v11 }
 0x3ee   : > { %v2561_v44 = vpop.f32.mrb[14].mxu0  ;;  %2570 = vadd.xlane.f32.xlu0 %v2569_v9  ;;  %2590 = vadd.xlane.f32.xlu1 %v2589_v29  ;;  %v5542_v23 = vmul.f32 0.00390625, %v1216_v3  ;;  %v2583_v32 = vmul.f32 %v5538_v13, %v5538_v13  ;;  %v2572_v57 = vadd.f32 %v5538_v13, %v5536_v11 }
 0x3ef   : > { %v5544_v61 = vadd.f32 %v2561_v44, %v2386_v52  ;;  %v2563_v17 = vpop.f32.mrb[15].mxu0  ;;  %v1236_v30 = vpop.xlane.xlu0 %1235 }
 0x3f0   : > { %v5550_v14 = vadd.f32 %v2563_v17, %v2386_v52  ;;  %v1250_v4 = vmul.f32 0.00390625, %v1236_v30  ;;  %v1254_v2 = vmul.f32 %v5542_v23, %v5542_v23  ;;  %v2592_v39 = vadd.f32 %v2583_v32, %v2582_v28 }
 0x3f1   : > { %v2584_v21 = vmul.f32 %v5544_v61, %v5544_v61 }
 0x3f2   : > { %v2585_v24 = vmul.f32 %v5550_v14, %v5550_v14  ;;  %2573 = vadd.xlane.f32.xlu0 %v2572_v57  ;;  %v2575_v20 = vadd.f32 %v5550_v14, %v5544_v61  ;;  %v1258_v52 = vsub.f32 %v1250_v4, %v1254_v2 }
 0x3f3   : > { %v1219_v36 = vpop.xlane.xlu0 %1218  ;;  %v1239_v45 = vpop.xlane.xlu1 %1238 }
 0x3f4   : > { %2576 = vadd.xlane.f32.xlu1 %v2575_v20  ;;  %v1262_v59 = vmax.f32 %v1258_v52, 0.0  ;;  %v5562_v15 = vmul.f32 0.00390625, %v1219_v36  ;;  %v2595_v18 = vadd.f32 %v2585_v24, %v2584_v21  ;;  %v1251_v53 = vmul.f32 0.00390625, %v1239_v45 }
 0x3f6   : > { %2593 = vadd.xlane.f32.xlu0 %v2592_v39  ;;  %v1255_v51 = vmul.f32 %v5562_v15, %v5562_v15  ;;  %v1266_v29 = vadd.f32 1e-06, %v1262_v59 }
 0x3f7   : > { %v1222_v9 = vpop.xlane.xlu0 %1221 }
 0x3f8   : > { %2596 = vadd.xlane.f32.xlu1 %v2595_v18  ;;  %v1259_v3 = vsub.f32 %v1251_v53, %v1255_v51  ;;  %v5566_v44 = vmul.f32 0.00390625, %v1222_v9  ;;  %3923 = vrsqrt.f32 %v1266_v29  ;;  %v5577_v53 = vld [vmem:[%s6795_s7 + $0x8] sm:$0xff]  ;;  %v1282_v9 = vld [vmem:[%s6795_s7] sm:$0xff] }
 0x3f9   : > { %v1225_v17 = vpop.xlane.xlu1 %1224 }
 0x3fa   : > { %v1263_v30 = vmax.f32 %v1259_v3, 0.0  ;;  %v5568_v57 = vmul.f32 0.00390625, %v1225_v17  ;;  %v1256_v4 = vmul.f32 %v5566_v44, %v5566_v44 }
 0x3fb   : > { %v1242_v28 = vpop.xlane.xlu0 %1241 }
 0x3fc   : > { %v1267_v32 = vadd.f32 1e-06, %v1263_v30  ;;  %v1252_v2 = vmul.f32 0.00390625, %v1242_v28  ;;  %v1257_v20 = vmul.f32 %v5568_v57, %v5568_v57  ;;  %v5586_v30 = vld [vmem:[%s6795_s7 + $0x10] sm:$0xff] }
 0x3fd   : > { %v1245_v21 = vpop.xlane.xlu1 %1244 }
 0x3fe   : > { %3925 = vrsqrt.f32 %v1267_v32  ;;  %v1260_v24 = vsub.f32 %v1252_v2, %v1256_v4  ;;  %v1253_v52 = vmul.f32 0.00390625, %v1245_v21  ;;  %v5591_v32 = vld [vmem:[%s6795_s7 + $0x18] sm:$0xff] }
 0x400   : > { %v1264_v36 = vmax.f32 %v1260_v24, 0.0  ;;  %v1261_v45 = vsub.f32 %v1253_v52, %v1257_v20 }
 0x401   : > { %v5595_v24 = vpop.permute.xlu1 %2686 }
 0x402   : > { %v1268_v39 = vadd.f32 1e-06, %v1264_v36  ;;  %v1265_v59 = vmax.f32 %v1261_v45, 0.0  ;;  %v3924_v51 = vpop.eup %3923 }
 0x403   : > { %v1286_v17 = vmul.f32 %v3924_v51, %v1282_v9  ;;  %v5597_v20 = vpop.permute.xlu0 %2691 }
 0x404   : > { %3927 = vrsqrt.f32 %v1268_v39  ;;  %v1269_v18 = vadd.f32 1e-06, %v1265_v59 }
 0x406   : > { %3929 = vrsqrt.f32 %v1269_v18 }
 0x408   : > { %v3926_v29 = vpop.eup %3925 }
 0x409   : > { %v1287_v3 = vmul.f32 %v3926_v29, %v5577_v53 }
 0x40b   : > { %1297 = vperm.xlu1 %3833, %v1287_v3  }
 0x40c   : > { %1292 = vperm.xlu0 %3834, %v1286_v17  }
 0x40e   : > { %v3928_v28 = vpop.eup %3927 }
 0x40f   : > { %v1288_v4 = vmul.f32 %v3928_v28, %v5586_v30 }
 0x410   : > { %v3930_v2 = vpop.eup %3929 }
 0x411   : > { %1302 = vperm.xlu1 %3833, %v1288_v4   ;;  %v1289_v21 = vmul.f32 %v3930_v2, %v5591_v32 }
 0x413   : > { %1307 = vperm.xlu0 %3834, %v1289_v21  }
 0x475   : > { %v2568_v52 = vpop.xlane.xlu1 %2567 }
 0x476   : > { %v5599_v36 = vmul.f32 0.00390625, %v2568_v52 }
 0x477   : > { %v2588_v45 = vpop.xlane.xlu0 %2587 }
 0x478   : > { %v2602_v39 = vmul.f32 0.00390625, %v2588_v45  ;;  %v2606_v59 = vmul.f32 %v5599_v36, %v5599_v36 }
 0x47a   : > { %v2610_v18 = vsub.f32 %v2602_v39, %v2606_v59 }
 0x47b   : > { %v2571_v51 = vpop.xlane.xlu0 %2570  ;;  %v2591_v29 = vpop.xlane.xlu1 %2590 }
 0x47c   : > { %v2614_v3 = vmax.f32 %v2610_v18, 0.0  ;;  %v5603_v17 = vmul.f32 0.00390625, %v2571_v51  ;;  %v2603_v2 = vmul.f32 0.00390625, %v2591_v29 }
 0x47e   : > { %v2618_v28 = vadd.f32 1e-06, %v2614_v3  ;;  %v2607_v4 = vmul.f32 %v5603_v17, %v5603_v17 }
 0x47f   : > { %v2574_v21 = vpop.xlane.xlu0 %2573 }
 0x480   : > { %3931 = vrsqrt.f32 %v2618_v28  ;;  %v2611_v52 = vsub.f32 %v2603_v2, %v2607_v4  ;;  %v5607_v58 = vmul.f32 0.00390625, %v2574_v21 }
 0x481   : > { %v2577_v45 = vpop.xlane.xlu1 %2576 }
 0x482   : > { %v2615_v33 = vmax.f32 %v2611_v52, 0.0  ;;  %v5609_v49 = vmul.f32 0.00390625, %v2577_v45  ;;  %v2608_v18 = vmul.f32 %v5607_v58, %v5607_v58  ;;  %v1276_v45 = vsub.f32 %v5474_v62, %v5562_v15 }
 0x483   : > { %v2594_v39 = vpop.xlane.xlu0 %2593 }
 0x484   : > { %v2619_v59 = vadd.f32 1e-06, %v2615_v33  ;;  %v2604_v51 = vmul.f32 0.00390625, %v2594_v39  ;;  %v2609_v29 = vmul.f32 %v5609_v49, %v5609_v49  ;;  %v1277_v33 = vsub.f32 %v5476_v37, %v5562_v15 }
 0x485   : > { %v2597_v3 = vpop.xlane.xlu1 %2596  ;;  %v1274_v39 = vsub.f32 %v5464_v7, %v5542_v23 }
 0x486   : > { %3933 = vrsqrt.f32 %v2619_v59  ;;  %v2612_v26 = vsub.f32 %v2604_v51, %v2608_v18  ;;  %v2605_v28 = vmul.f32 0.00390625, %v2597_v3  ;;  %v1275_v59 = vsub.f32 %v5466_v47, %v5542_v23 }
 0x488   : > { %v2616_v4 = vmax.f32 %v2612_v26, 0.0  ;;  %v2613_v2 = vsub.f32 %v2605_v28, %v2609_v29 }
 0x48a   : > { %v3932_v21 = vpop.eup %3931  ;;  %v2620_v41 = vadd.f32 1e-06, %v2616_v4  ;;  %v2617_v52 = vmax.f32 %v2613_v2, 0.0  ;;  %v1298_v48 = vpop.permute.xlu1 %1297 }
 0x48b   : > { %v1293_v18 = vpop.permute.xlu0 %1292  ;;  %v2638_v51 = vmul.f32 %v3932_v21, %v1282_v9  ;;  %v1312_v3 = vmul.f32 %v1298_v48, %v1276_v45  ;;  %v1313_v29 = vmul.f32 %v1298_v48, %v1277_v33 }
 0x48c   : > { %3935 = vrsqrt.f32 %v2620_v41  ;;  %v2621_v26 = vadd.f32 1e-06, %v2617_v52  ;;  %v1310_v28 = vmul.f32 %v1293_v18, %v1274_v39  ;;  %v1311_v4 = vmul.f32 %v1293_v18, %v1275_v59 }
 0x48d   : > { %2644 = vperm.xlu1 %3833, %v2638_v51   ;;  %v1344_v62 = vadd.f32 %v5508_v55, %v1312_v3  ;;  %v1345_v37 = vadd.f32 %v5508_v55, %v1313_v29 }
 0x48e   : > { %3937 = vrsqrt.f32 %v2621_v26  ;;  %v1342_v15 = vadd.f32 %v5506_v8, %v1310_v28  ;;  %v1343_v7 = vadd.f32 %v5506_v8, %v1311_v4 }
 0x48f   : > { %v3360_v47 = vmul.f32 -1.442695, %v1344_v62  ;;  %v3361_v23 = vmul.f32 -1.442695, %v1345_v37 }
 0x490   : > { %v3934_v2 = vpop.eup %3933  ;;  %v3358_v9 = vmul.f32 -1.442695, %v1342_v15  ;;  %v3359_v41 = vmul.f32 -1.442695, %v1343_v7 }
 0x491   : > { %v2639_v21 = vmul.f32 %v3934_v2, %v5577_v53  ;;  %3939 = vpow2.f32 %v3360_v47 }
 0x492   : > { %3941 = vpow2.f32 %v3361_v23 }
 0x493   : > { %2649 = vperm.xlu0 %3834, %v2639_v21   ;;  %3943 = vpow2.f32 %v3358_v9  ;;  %v1278_v9 = vsub.f32 %v5482_v27, %v5566_v44 }
 0x494   : > { %3945 = vpow2.f32 %v3359_v41 }
 0x496   : > { %v3936_v48 = vpop.eup %3935 }
 0x497   : > { %v2640_v52 = vmul.f32 %v3936_v48, %v5586_v30  ;;  %v1281_v48 = vsub.f32 %v5494_v12, %v5568_v57 }
 0x498   : > { %v3938_v55 = vpop.eup %3937 }
 0x499   : > { %2654 = vperm.xlu1 %3833, %v2640_v52   ;;  %v2641_v45 = vmul.f32 %v3938_v55, %v5591_v32 }
 0x49b   : > { %2659 = vperm.xlu0 %3834, %v2641_v45   ;;  %v3940_v8 = vpop.eup %3939 }
 0x49c   : > { %v3942_v33 = vpop.eup %3941  ;;  %v1376_v39 = vadd.f32 1.0, %v3940_v8 }
 0x49d   : > { %v3944_v59 = vpop.eup %3943  ;;  %v1377_v18 = vadd.f32 1.0, %v3942_v33 }
 0x49e   : > { %v3946_v51 = vpop.eup %3945  ;;  %3947 = vrcp.f32 %v1376_v39  ;;  %v1374_v53 = vadd.f32 1.0, %v3944_v59 }
 0x49f   : > { %3949 = vrcp.f32 %v1377_v18  ;;  %v1375_v26 = vadd.f32 1.0, %v3946_v51 }
 0x4a0   : > { %3951 = vrcp.f32 %v1374_v53 }
 0x4a1   : > { %3953 = vrcp.f32 %v1375_v26 }
 0x4a8   : > { %v3948_v3 = vpop.eup %3947 }
 0x4a9   : > { %v3950_v29 = vpop.eup %3949  ;;  %v5630_v30 = vmul.f32 %v3948_v3, %v1344_v62 }
 0x4aa   : > { %v3952_v28 = vpop.eup %3951  ;;  %v5632_v4 = vmul.f32 %v3950_v29, %v1345_v37  ;;  %v1308_v37 = vpop.permute.xlu0 %1307 }
 0x4ab   : > { %v3954_v32 = vpop.eup %3953  ;;  %v5634_v2 = vmul.f32 %v3952_v28, %v1342_v15  ;;  %1408 = vrot.lane.b32.xlu0 %v5630_v30, %s6864_s16  ;;  %v1280_v15 = vsub.f32 %v5488_v10, %v5568_v57  ;;  %v1279_v10 = vsub.f32 %v5484_v1, %v5566_v44  ;;  %v1317_v52 = vmul.f32 %v1308_v37, %v1281_v48 }
 0x4ac   : > { %v5638_v47 = vmul.f32 %v3954_v32, %v1343_v7  ;;  %v1303_v7 = vpop.permute.xlu1 %1302 }
 0x4ad   : > { %1406 = vrot.lane.b32.xlu1 %v5634_v2, %s6864_s16  ;;  %v1316_v41 = vmul.f32 %v1308_v37, %v1280_v15  ;;  %v1314_v21 = vmul.f32 %v1303_v7, %v1278_v9  ;;  %v1315_v27 = vmul.f32 %v1303_v7, %v1279_v10  ;;  %v1349_v12 = vadd.f32 %v5518_v40, %v1317_v52 }
 0x4af   : > { %1416 = vrot.lane.b32.xlu0 %v5632_v4, %s6864_s16  ;;  %v1348_v55 = vadd.f32 %v5518_v40, %v1316_v41  ;;  %v1346_v45 = vadd.f32 %v5512_v31, %v1314_v21  ;;  %v1347_v1 = vadd.f32 %v5512_v31, %v1315_v27  ;;  %v3365_v8 = vmul.f32 -1.442695, %v1349_v12 }
 0x4b0   : > { %v2626_v41 = vsub.f32 %v5510_v6, %v5599_v36  ;;  %v2627_v21 = vsub.f32 %v5514_v54, %v5599_v36  ;;  %v2628_v36 = vsub.f32 %v5524_v16, %v5603_v17 }
 0x4b1   : > { %1414 = vrot.lane.b32.xlu1 %v5638_v47, %s6864_s16  ;;  %v3364_v57 = vmul.f32 -1.442695, %v1348_v55  ;;  %v3362_v44 = vmul.f32 -1.442695, %v1346_v45  ;;  %v3363_v33 = vmul.f32 -1.442695, %v1347_v1 }
 0x4b3   : > { %1440 = vrot.lane.b32.xlu0 %v5630_v30, %s6865_s28  ;;  %3955 = vpow2.f32 %v3364_v57 }
 0x4b4   : > { %3957 = vpow2.f32 %v3362_v44 }
 0x4b5   : > { %1438 = vrot.lane.b32.xlu1 %v5634_v2, %s6865_s28  ;;  %3959 = vpow2.f32 %v3365_v8 }
 0x4b6   : > { %3961 = vpow2.f32 %v3363_v33 }
 0x4b7   : > { %1448 = vrot.lane.b32.xlu0 %v5632_v4, %s6865_s28 }
 0x4b9   : > { %1446 = vrot.lane.b32.xlu1 %v5638_v47, %s6865_s28 }
 0x4bb   : > { %1472 = vrot.lane.b32.xlu0 %v5630_v30, %s6866_s24 }
 0x4bd   : > { %1470 = vrot.lane.b32.xlu1 %v5634_v2, %s6866_s24  ;;  %v3956_v31 = vpop.eup %3955 }
 0x4be   : > { %v3958_v40 = vpop.eup %3957  ;;  %v1380_v39 = vadd.f32 1.0, %v3956_v31 }
 0x4bf   : > { %1480 = vrot.lane.b32.xlu0 %v5632_v4, %s6866_s24  ;;  %v3960_v59 = vpop.eup %3959  ;;  %v1378_v18 = vadd.f32 1.0, %v3958_v40 }
 0x4c0   : > { %v3962_v51 = vpop.eup %3961  ;;  %v1381_v53 = vadd.f32 1.0, %v3960_v59  ;;  %3963 = vrcp.f32 %v1380_v39 }
 0x4c1   : > { %1478 = vrot.lane.b32.xlu1 %v5638_v47, %s6866_s24  ;;  %v1379_v26 = vadd.f32 1.0, %v3962_v51  ;;  %3965 = vrcp.f32 %v1378_v18 }
 0x4c2   : > { %3967 = vrcp.f32 %v1381_v53 }
 0x4c3   : > { %1504 = vrot.lane.b32.xlu0 %v5630_v30, %s6856_s13  ;;  %3969 = vrcp.f32 %v1379_v26 }
 0x4c5   : > { %1502 = vrot.lane.b32.xlu1 %v5634_v2, %s6856_s13 }
 0x4c7   : > { %1512 = vrot.lane.b32.xlu0 %v5632_v4, %s6856_s13 }
 0x4c9   : > { %1510 = vrot.lane.b32.xlu1 %v5638_v47, %s6856_s13 }
 0x4ca   : > { %v3964_v3 = vpop.eup %3963 }
 0x4cb   : > { %1536 = vrot.lane.b32.xlu0 %v5630_v30, %s6857_s19  ;;  %v3966_v29 = vpop.eup %3965  ;;  %v5716_v28 = vmul.f32 %v3964_v3, %v1348_v55 }
 0x4cc   : > { %v3968_v32 = vpop.eup %3967  ;;  %v5720_v37 = vmul.f32 %v3966_v29, %v1346_v45  ;;  %v2629_v45 = vsub.f32 %v5526_v50, %v5603_v17 }
 0x4cd   : > { %1534 = vrot.lane.b32.xlu1 %v5634_v2, %s6857_s19  ;;  %v3970_v15 = vpop.eup %3969  ;;  %v5724_v7 = vmul.f32 %v3968_v32, %v1349_v12 }
 0x4ce   : > { %v5728_v9 = vmul.f32 %v3970_v15, %v1347_v1 }
 0x4cf   : > { %1544 = vrot.lane.b32.xlu0 %v5632_v4, %s6857_s19 }
 0x4d1   : > { %1542 = vrot.lane.b32.xlu1 %v5638_v47, %s6857_s19 }
 0x4d3   : > { %1568 = vrot.lane.b32.xlu0 %v5630_v30, %s6859_s12 }
 0x4d5   : > { %1566 = vrot.lane.b32.xlu1 %v5634_v2, %s6859_s12 }
 0x4d7   : > { %1576 = vrot.lane.b32.xlu0 %v5632_v4, %s6859_s12 }
 0x4d9   : > { %1574 = vrot.lane.b32.xlu1 %v5638_v47, %s6859_s12 }
 0x4db   : > { %1600 = vrot.lane.b32.xlu0 %v5630_v30, %s6867_s26 }
 0x4dd   : > { %1598 = vrot.lane.b32.xlu1 %v5634_v2, %s6867_s26 }
 0x4df   : > { %1608 = vrot.lane.b32.xlu0 %v5632_v4, %s6867_s26 }
 0x4e1   : > { %1606 = vrot.lane.b32.xlu1 %v5638_v47, %s6867_s26 }
 0x4e3   : > { %1632 = vrot.lane.b32.xlu0 %v5630_v30, %s6868_s15 }
 0x4e5   : > { %1630 = vrot.lane.b32.xlu1 %v5634_v2, %s6868_s15 }
 0x4e7   : > { %1640 = vrot.lane.b32.xlu0 %v5632_v4, %s6868_s15 }
 0x4e9   : > { %1638 = vrot.lane.b32.xlu1 %v5638_v47, %s6868_s15 }
 0x4eb   : > { %1412 = vrot.lane.b32.xlu0 %v5716_v28, %s6864_s16 }
 0x4ed   : > { %1410 = vrot.lane.b32.xlu1 %v5720_v37, %s6864_s16 }
 0x4ef   : > { %1420 = vrot.lane.b32.xlu0 %v5724_v7, %s6864_s16 }
 0x4f1   : > { %1418 = vrot.lane.b32.xlu1 %v5728_v9, %s6864_s16 }
 0x4f3   : > { %1444 = vrot.lane.b32.xlu0 %v5716_v28, %s6865_s28 }
 0x4f5   : > { %1442 = vrot.lane.b32.xlu1 %v5720_v37, %s6865_s28 }
 0x4f7   : > { %1452 = vrot.lane.b32.xlu0 %v5724_v7, %s6865_s28 }
 0x4f9   : > { %1450 = vrot.lane.b32.xlu1 %v5728_v9, %s6865_s28 }
 0x4fb   : > { %1476 = vrot.lane.b32.xlu0 %v5716_v28, %s6866_s24 }
 0x4fd   : > { %1474 = vrot.lane.b32.xlu1 %v5720_v37, %s6866_s24 }
 0x4ff   : > { %1484 = vrot.lane.b32.xlu0 %v5724_v7, %s6866_s24 }
 0x501   : > { %1482 = vrot.lane.b32.xlu1 %v5728_v9, %s6866_s24 }
 0x503   : > { %1508 = vrot.lane.b32.xlu0 %v5716_v28, %s6856_s13 }
 0x505   : > { %1506 = vrot.lane.b32.xlu1 %v5720_v37, %s6856_s13 }
 0x507   : > { %1516 = vrot.lane.b32.xlu0 %v5724_v7, %s6856_s13 }
 0x509   : > { %1514 = vrot.lane.b32.xlu1 %v5728_v9, %s6856_s13 }
 0x50b   : > { %1540 = vrot.lane.b32.xlu0 %v5716_v28, %s6857_s19 }
 0x50c   : > { %v2645_v48 = vpop.permute.xlu1 %2644 }
 0x50d   : > { %v2662_v10 = vmul.f32 %v2645_v48, %v2626_v41  ;;  %v2663_v52 = vmul.f32 %v2645_v48, %v2627_v21  ;;  %1538 = vrot.lane.b32.xlu1 %v5720_v37, %s6857_s19  ;;  %v5816_v21 = vld [vmem:[%s6797_s9 + $0x8] sm:$0xff] }
 0x50e   : > { %6869 = vst [vmem:[#allocation15_spill] sm:$0xff] %v5816_v21  ;;  %1763 = vmatprep.mubr.f32.mxu1 %v5816_v21 }
 0x50f   : > { %v5767_v55 = vadd.f32 %v5530_v38, %v2662_v10  ;;  %v5770_v27 = vadd.f32 %v5530_v38, %v2663_v52  ;;  %1548 = vrot.lane.b32.xlu0 %v5724_v7, %s6857_s19 }
 0x511   : > { %v3392_v6 = vmul.f32 -1.442695, %v5767_v55  ;;  %v3393_v54 = vmul.f32 -1.442695, %v5770_v27  ;;  %1546 = vrot.lane.b32.xlu1 %v5728_v9, %s6857_s19 }
 0x512   : > { %v2650_v12 = vpop.permute.xlu0 %2649 }
 0x513   : > { %3971 = vpow2.f32 %v3392_v6  ;;  %v2664_v38 = vmul.f32 %v2650_v12, %v2628_v36  ;;  %v2665_v57 = vmul.f32 %v2650_v12, %v2629_v45  ;;  %1572 = vrot.lane.b32.xlu0 %v5716_v28, %s6859_s12 }
 0x514   : > { %3973 = vpow2.f32 %v3393_v54 }
 0x515   : > { %v2696_v1 = vadd.f32 %v5534_v63, %v2664_v38  ;;  %v5786_v44 = vadd.f32 %v5534_v63, %v2665_v57  ;;  %1570 = vrot.lane.b32.xlu1 %v5720_v37, %s6859_s12 }
 0x517   : > { %v3394_v16 = vmul.f32 -1.442695, %v2696_v1  ;;  %v3395_v50 = vmul.f32 -1.442695, %v5786_v44  ;;  %1580 = vrot.lane.b32.xlu0 %v5724_v7, %s6859_s12 }
 0x518   : > { %v2655_v8 = vpop.permute.xlu1 %2654 }
 0x519   : > { %3975 = vpow2.f32 %v3394_v16  ;;  %1578 = vrot.lane.b32.xlu1 %v5728_v9, %s6859_s12 }
 0x51a   : > { %3977 = vpow2.f32 %v3395_v50  ;;  %v5795_v17 = vpop.permute.xlu0 %2659 }
 0x51b   : > { %1604 = vrot.lane.b32.xlu0 %v5716_v28, %s6867_s26 }
 0x51d   : > { %v3972_v63 = vpop.eup %3971  ;;  %1602 = vrot.lane.b32.xlu1 %v5720_v37, %s6867_s26 }
 0x51e   : > { %v3974_v33 = vpop.eup %3973  ;;  %v2726_v31 = vadd.f32 1.0, %v3972_v63  ;;  %v1409_v40 = vpop.permute.xlu0 %1408 }
 0x51f   : > { %v2727_v39 = vadd.f32 1.0, %v3974_v33  ;;  %v1407_v59 = vpop.permute.xlu1 %1406  ;;  %1612 = vrot.lane.b32.xlu0 %v5724_v7, %s6867_s26 }
 0x520   : > { %3979 = vrcp.f32 %v2726_v31 }
 0x521   : > { %1610 = vrot.lane.b32.xlu1 %v5728_v9, %s6867_s26  ;;  %3981 = vrcp.f32 %v2727_v39 }
 0x522   : > { %v1417_v18 = vpop.permute.xlu0 %1416 }
 0x523   : > { %v3976_v51 = vpop.eup %3975  ;;  %v1427_v53 = vsel %vm687_vm0, %v1417_v18, %v1409_v40  ;;  %v1423_v26 = vsel %vm687_vm0, %v1409_v40, %v1417_v18  ;;  %v1415_v32 = vpop.permute.xlu1 %1414  ;;  %1636 = vrot.lane.b32.xlu0 %v5716_v28, %s6868_s15 }
 0x524   : > { %v3978_v3 = vpop.eup %3977  ;;  %v2728_v29 = vadd.f32 1.0, %v3976_v51  ;;  %v1433_v15 = vmul.f32 %v1423_v26, %v4709_v35  ;;  %v1432_v41 = vmul.f32 %v1427_v53, %v4706_v34  ;;  %v1426_v10 = vsel %vm687_vm0, %v1415_v32, %v1407_v59 }
 0x525   : > { %v2729_v48 = vadd.f32 1.0, %v3978_v3  ;;  %v1422_v52 = vsel %vm687_vm0, %v1407_v59, %v1415_v32  ;;  %1634 = vrot.lane.b32.xlu1 %v5720_v37, %s6868_s15  ;;  %v1430_v36 = vmul.f32 %v1426_v10, %v4706_v34  ;;  %v2630_v59 = vsub.f32 %v5536_v11, %v5607_v58 }
 0x526   : > { %3983 = vrcp.f32 %v2728_v29  ;;  %v5825_v6 = vpop.permute.xlu0 %1440  ;;  %v1431_v54 = vmul.f32 %v1422_v52, %v4709_v35 }
 0x527   : > { %3985 = vrcp.f32 %v2729_v48  ;;  %v5829_v45 = vpop.permute.xlu1 %1438  ;;  %1644 = vrot.lane.b32.xlu0 %v5724_v7, %s6868_s15  ;;  %v3496_v38 = vpack.c.bf16 %v1432_v41, %v1430_v36  ;;  %v2666_v53 = vmul.f32 %v2655_v8, %v2630_v59 }
 0x528   : > { %v3494_v12 = vpack.c.bf16 %v1433_v15, %v1431_v54 }
 0x529   : > { %1642 = vrot.lane.b32.xlu1 %v5728_v9, %s6868_s15  ;;  %v5871_v32 = vadd.f32 %v5595_v24, %v2666_v53 }
 0x52a   : > { %v3980_v57 = vpop.eup %3979  ;;  %3495 = vmatprep.subr.bf16.mxu1 %v3494_v12  ;;  %v5835_v16 = vpop.permute.xlu0 %1448 }
 0x52b   : > { %v5838_v50 = vmul.f32 %v3980_v57, %v5767_v55  ;;  %3497 = vmatpush1.bf16.msra.mxu1 %v3496_v38  ;;  %v5840_v63 = vpop.permute.xlu1 %1446  ;;  %v3982_v33 = vpop.eup %3981 }
 0x52c   : > { %v5847_v39 = vmul.f32 %v3982_v33, %v5770_v27  ;;  %v2631_v27 = vsub.f32 %v5538_v13, %v5607_v58  ;;  %v2633_v13 = vsub.f32 %v5550_v14, %v5609_v49 }
 0x52d   : > { %2758 = vrot.lane.b32.xlu1 %v5838_v50, %s6864_s16 }
 0x52e   : > { %v5844_v31 = vpop.permute.xlu0 %1472  ;;  %6870 = vst [vmem:[#allocation16_spill] sm:$0xff] %v5847_v39  ;;  %v2667_v29 = vmul.f32 %v2655_v8, %v2631_v27  ;;  %v2669_v48 = vmul.f32 %v5795_v17, %v2633_v13 }
 0x52f   : > { %v5851_v18 = vpop.permute.xlu1 %1470 }
 0x530   : > { %v3984_v40 = vpop.eup %3983 }
 0x531   : > { %v5853_v55 = vmul.f32 %v3984_v40, %v2696_v1  ;;  %v3986_v51 = vpop.eup %3985  ;;  %2766 = vrot.lane.b32.xlu1 %v5847_v39, %s6864_s16  ;;  %v2632_v1 = vsub.f32 %v5544_v61, %v5609_v49  ;;  %v5885_v61 = vadd.f32 %v5595_v24, %v2667_v29  ;;  %v5906_v24 = vadd.f32 %v5597_v20, %v2669_v48 }
 0x532   : > { %v5857_v26 = vpop.permute.xlu0 %1480  ;;  %v5866_v11 = vmul.f32 %v3986_v51, %v5786_v44  ;;  %v3396_v44 = vmul.f32 -1.442695, %v5871_v32 }
 0x533   : > { %2760 = vrot.lane.b32.xlu0 %v5853_v55, %s6864_s16  ;;  %v5863_v3 = vpop.permute.xlu1 %1478  ;;  %v2668_v41 = vmul.f32 %v5795_v17, %v2632_v1  ;;  %v3397_v49 = vmul.f32 -1.442695, %v5885_v61  ;;  %v3399_v12 = vmul.f32 -1.442695, %v5906_v24 }
 0x534   : > { %3987 = vpow2.f32 %v3396_v44 }
 0x535   : > { %2790 = vrot.lane.b32.xlu1 %v5838_v50, %s6865_s28  ;;  %v5894_v10 = vadd.f32 %v5597_v20, %v2668_v41  ;;  %3989 = vpow2.f32 %v3397_v49 }
 0x536   : > { %v5875_v15 = vpop.permute.xlu0 %1504 }
 0x537   : > { %2768 = vrot.lane.b32.xlu0 %v5866_v11, %s6864_s16  ;;  %v5880_v58 = vpop.permute.xlu1 %1502  ;;  %v3398_v17 = vmul.f32 -1.442695, %v5894_v10 }
 0x539   : > { %2798 = vrot.lane.b32.xlu1 %v5847_v39, %s6865_s28  ;;  %3991 = vpow2.f32 %v3398_v17 }
 0x53a   : > { %v5890_v8 = vpop.permute.xlu0 %1512  ;;  %3993 = vpow2.f32 %v3399_v12 }
 0x53b   : > { %2792 = vrot.lane.b32.xlu0 %v5853_v55, %s6865_s28  ;;  %v5898_v52 = vpop.permute.xlu1 %1510 }
 0x53d   : > { %2822 = vrot.lane.b32.xlu1 %v5838_v50, %s6866_s24 }
 0x53e   : > { %v5903_v14 = vpop.permute.xlu0 %1536  ;;  %v3988_v57 = vpop.eup %3987 }
 0x53f   : > { %2800 = vrot.lane.b32.xlu0 %v5866_v11, %s6865_s28  ;;  %v5911_v54 = vpop.permute.xlu1 %1534  ;;  %v2730_v59 = vadd.f32 1.0, %v3988_v57  ;;  %v3990_v51 = vpop.eup %3989 }
 0x540   : > { %v2731_v29 = vadd.f32 1.0, %v3990_v51 }
 0x541   : > { %2830 = vrot.lane.b32.xlu1 %v5847_v39, %s6866_s24  ;;  %3995 = vrcp.f32 %v2730_v59 }
 0x542   : > { %v5915_v36 = vpop.permute.xlu0 %1544  ;;  %3997 = vrcp.f32 %v2731_v29 }
 0x543   : > { %2824 = vrot.lane.b32.xlu0 %v5853_v55, %s6866_s24  ;;  %v5920_v20 = vpop.permute.xlu1 %1542  ;;  %v3992_v27 = vpop.eup %3991 }
 0x544   : > { %v2732_v41 = vadd.f32 1.0, %v3992_v27  ;;  %v3994_v44 = vpop.eup %3993 }
 0x545   : > { %2854 = vrot.lane.b32.xlu1 %v5838_v50, %s6856_s13  ;;  %v2733_v49 = vadd.f32 1.0, %v3994_v44 }
 0x546   : > { %v5924_v38 = vpop.permute.xlu0 %1568  ;;  %3999 = vrcp.f32 %v2732_v41 }
 0x547   : > { %2832 = vrot.lane.b32.xlu0 %v5866_v11, %s6866_s24  ;;  %v5928_v33 = vpop.permute.xlu1 %1566  ;;  %4001 = vrcp.f32 %v2733_v49 }
 0x549   : > { %2862 = vrot.lane.b32.xlu1 %v5847_v39, %s6856_s13 }
 0x54a   : > { %v5932_v40 = vpop.permute.xlu0 %1576 }
 0x54b   : > { %2856 = vrot.lane.b32.xlu0 %v5853_v55, %s6856_s13  ;;  %v5936_v53 = vpop.permute.xlu1 %1574  ;;  %v3996_v59 = vpop.eup %3995 }
 0x54c   : > { %v5969_v27 = vmul.f32 %v3996_v59, %v5871_v32  ;;  %v3998_v41 = vpop.eup %3997 }
 0x54d   : > { %2886 = vrot.lane.b32.xlu1 %v5838_v50, %s6857_s19  ;;  %v5978_v23 = vmul.f32 %v3998_v41, %v5885_v61  ;;  %v1454_v61 = vsel %vm728_vm1, %v5829_v45, %v5840_v63 }
 0x54e   : > { %v5940_v1 = vpop.permute.xlu0 %1600 }
 0x54f   : > { %2864 = vrot.lane.b32.xlu0 %v5866_v11, %s6856_s13  ;;  %v5944_v13 = vpop.permute.xlu1 %1598 }
 0x550   : > { %v4000_v44 = vpop.eup %3999 }
 0x551   : > { %2894 = vrot.lane.b32.xlu1 %v5847_v39, %s6857_s19  ;;  %v5981_v21 = vmul.f32 %v4000_v44, %v5894_v10  ;;  %v4002_v32 = vpop.eup %4001  ;;  %v1459_v44 = vsel %vm728_vm1, %v5835_v16, %v5825_v6 }
 0x552   : > { %v5948_v48 = vpop.permute.xlu0 %1608 }
 0x553   : > { %2888 = vrot.lane.b32.xlu0 %v5853_v55, %s6857_s19  ;;  %v5952_v17 = vpop.permute.xlu1 %1606 }
 0x554   : > { %6871 = vst [vmem:[#allocation17_spill] sm:$0xff] %v5952_v17 }
 0x555   : > { %2918 = vrot.lane.b32.xlu1 %v5838_v50, %s6859_s12 }
 0x556   : > { %v5956_v12 = vpop.permute.xlu0 %1632 }
 0x557   : > { %6872 = vst [vmem:[#allocation18_spill] sm:$0xff] %v5956_v12  ;;  %2896 = vrot.lane.b32.xlu0 %v5866_v11, %s6857_s19  ;;  %v5960_v57 = vpop.permute.xlu1 %1630 }
 0x558   : > { %6873 = vst [vmem:[#allocation19_spill] sm:$0xff] %v5960_v57 }
 0x559   : > { %2926 = vrot.lane.b32.xlu1 %v5847_v39, %s6859_s12  ;;  %v6006_v39 = vmul.f32 %v4002_v32, %v5906_v24 }
 0x55a   : > { %v5964_v51 = vpop.permute.xlu0 %1640 }
 0x55b   : > { %6874 = vst [vmem:[#allocation20_spill] sm:$0xff] %v5964_v51  ;;  %2920 = vrot.lane.b32.xlu0 %v5853_v55, %s6859_s12  ;;  %v5971_v29 = vpop.permute.xlu1 %1638 }
 0x55c   : > { %6875 = vst [vmem:[#allocation21_spill] sm:$0xff] %v5971_v29  ;;  %v1455_v29 = vsel %vm728_vm1, %v5825_v6, %v5835_v16  ;;  %v1463_v16 = vmul.f32 %v1454_v61, %v4777_v43 }
 0x55d   : > { %2762 = vrot.lane.b32.xlu1 %v5969_v27, %s6864_s16  ;;  %v1465_v6 = vmul.f32 %v1455_v29, %v4777_v43 }
 0x55e   : > { %v1413_v49 = vpop.permute.xlu0 %1412 }
 0x55f   : > { %2928 = vrot.lane.b32.xlu0 %v5866_v11, %s6859_s12  ;;  %v1411_v62 = vpop.permute.xlu1 %1410 }
 0x561   : > { %2770 = vrot.lane.b32.xlu1 %v5978_v23, %s6864_s16 }
 0x562   : > { %v1421_v59 = vpop.permute.xlu0 %1420 }
 0x563   : > { %v1425_v41 = vsel %vm687_vm0, %v1413_v49, %v1421_v59  ;;  %v1429_v10 = vsel %vm687_vm0, %v1421_v59, %v1413_v49  ;;  %2764 = vrot.lane.b32.xlu0 %v5981_v21, %s6864_s16  ;;  %v1419_v12 = vpop.permute.xlu1 %1418  ;;  %v1458_v49 = vsel %vm728_vm1, %v5840_v63, %v5829_v45  ;;  %v1464_v45 = vmul.f32 %v1459_v44, %v4774_v42 }
 0x564   : > { %v1436_v57 = vmul.f32 %v1429_v10, %v4706_v34  ;;  %v1437_v51 = vmul.f32 %v1425_v41, %v4709_v35  ;;  %v1424_v59 = vsel %vm687_vm0, %v1411_v62, %v1419_v12  ;;  %v1428_v17 = vsel %vm687_vm0, %v1419_v12, %v1411_v62 }
 0x565   : > { %v1434_v41 = vmul.f32 %v1428_v17, %v4706_v34  ;;  %v1435_v24 = vmul.f32 %v1424_v59, %v4709_v35  ;;  %2794 = vrot.lane.b32.xlu1 %v5969_v27, %s6865_s28  ;;  %v1462_v63 = vmul.f32 %v1458_v49, %v4774_v42  ;;  %v1487_v17 = vsel %vm769_vm2, %v5844_v31, %v5857_v26 }
 0x566   : > { %v1445_v32 = vpop.permute.xlu0 %1444  ;;  %v3502_v10 = vpack.c.bf16 %v1465_v6, %v1463_v16  ;;  %v1486_v44 = vsel %vm769_vm2, %v5851_v18, %v5863_v3 }
 0x567   : > { %2772 = vrot.lane.b32.xlu0 %v6006_v39, %s6864_s16  ;;  %v1443_v62 = vpop.permute.xlu1 %1442  ;;  %v3498_v12 = vpack.c.bf16 %v1437_v51, %v1435_v24  ;;  %v3500_v29 = vpack.c.bf16 %v1436_v57, %v1434_v41  ;;  %v3504_v16 = vpack.c.bf16 %v1464_v45, %v1462_v63  ;;  %v1491_v41 = vsel %vm769_vm2, %v5857_v26, %v5844_v31 }
 0x568   : > { %v1490_v24 = vsel %vm769_vm2, %v5863_v3, %v5851_v18  ;;  %v1495_v45 = vmul.f32 %v1486_v44, %v4831_v5  ;;  %v1496_v18 = vmul.f32 %v1491_v41, %v4828_v22 }
 0x569   : > { %3499 = vmatprep.subr.bf16.mxu1 %v3498_v12  ;;  %2802 = vrot.lane.b32.xlu1 %v5978_v23, %s6865_s28  ;;  %v1494_v26 = vmul.f32 %v1490_v24, %v4828_v22 }
 0x56a   : > { %v1453_v61 = vpop.permute.xlu0 %1452  ;;  %3501 = vmatpush1.bf16.msra.mxu1 %v3500_v29  ;;  %v1497_v29 = vmul.f32 %v1487_v17, %v4831_v5 }
 0x56b   : > { %v1457_v57 = vsel %vm728_vm1, %v1445_v32, %v1453_v61  ;;  %v1461_v51 = vsel %vm728_vm1, %v1453_v61, %v1445_v32  ;;  %2796 = vrot.lane.b32.xlu0 %v5981_v21, %s6865_s28  ;;  %3503 = vmatprep.subr.bf16.mxu1 %v3502_v10  ;;  %v1451_v6 = vpop.permute.xlu1 %1450  ;;  %v1519_v10 = vsel %vm810_vm3, %v5875_v15, %v5890_v8 }
 0x56c   : > { %v1468_v49 = vmul.f32 %v1461_v51, %v4774_v42  ;;  %v1469_v59 = vmul.f32 %v1457_v57, %v4777_v43  ;;  %v1456_v32 = vsel %vm728_vm1, %v1443_v62, %v1451_v6  ;;  %v1460_v12 = vsel %vm728_vm1, %v1451_v6, %v1443_v62 }
 0x56d   : > { %v1466_v63 = vmul.f32 %v1460_v12, %v4774_v42  ;;  %v1467_v61 = vmul.f32 %v1456_v32, %v4777_v43  ;;  %2826 = vrot.lane.b32.xlu1 %v5969_v27, %s6866_s24  ;;  %v3510_v57 = vpack.c.bf16 %v1497_v29, %v1495_v45  ;;  %v1518_v51 = vsel %vm810_vm3, %v5880_v58, %v5898_v52 }
 0x56e   : > { %v1477_v31 = vpop.permute.xlu0 %1476  ;;  %3505 = vmatpush1.bf16.msra.mxu1 %v3504_v16  ;;  %v3512_v24 = vpack.c.bf16 %v1496_v18, %v1494_v26  ;;  %v1523_v32 = vsel %vm810_vm3, %v5890_v8, %v5875_v15  ;;  %v1529_v12 = vmul.f32 %v1519_v10, %v4879_v0 }
 0x56f   : > { %2804 = vrot.lane.b32.xlu0 %v6006_v39, %s6865_s28  ;;  %v1475_v3 = vpop.permute.xlu1 %1474  ;;  %v3506_v62 = vpack.c.bf16 %v1469_v59, %v1467_v61  ;;  %v3508_v17 = vpack.c.bf16 %v1468_v49, %v1466_v63  ;;  %v1522_v63 = vsel %vm810_vm3, %v5898_v52, %v5880_v58  ;;  %v1527_v61 = vmul.f32 %v1518_v51, %v4879_v0 }
 0x570   : > { %v1526_v58 = vmul.f32 %v1522_v63, %v4876_v56  ;;  %v1555_v63 = vsel %vm851_vm4, %v5915_v36, %v5903_v14 }
 0x571   : > { %3507 = vmatprep.subr.bf16.mxu1 %v3506_v62  ;;  %2834 = vrot.lane.b32.xlu1 %v5978_v23, %s6866_s24  ;;  %v1528_v62 = vmul.f32 %v1523_v32, %v4876_v56 }
 0x572   : > { %v1485_v44 = vpop.permute.xlu0 %1484  ;;  %3509 = vmatpush1.bf16.msra.mxu1 %v3508_v17  ;;  %v3518_v17 = vpack.c.bf16 %v1529_v12, %v1527_v61  ;;  %v1554_v61 = vsel %vm851_vm4, %v5920_v20, %v5911_v54 }
 0x573   : > { %v1489_v49 = vsel %vm769_vm2, %v1477_v31, %v1485_v44  ;;  %v1493_v59 = vsel %vm769_vm2, %v1485_v44, %v1477_v31  ;;  %2828 = vrot.lane.b32.xlu0 %v5981_v21, %s6866_s24  ;;  %3511 = vmatprep.subr.bf16.mxu1 %v3510_v57  ;;  %v1483_v41 = vpop.permute.xlu1 %1482 }
 0x574   : > { %v1500_v6 = vmul.f32 %v1493_v59, %v4828_v22  ;;  %v1501_v16 = vmul.f32 %v1489_v49, %v4831_v5  ;;  %v1488_v29 = vsel %vm769_vm2, %v1475_v3, %v1483_v41  ;;  %v1492_v45 = vsel %vm769_vm2, %v1483_v41, %v1475_v3 }
 0x575   : > { %v1498_v31 = vmul.f32 %v1492_v45, %v4828_v22  ;;  %v1499_v18 = vmul.f32 %v1488_v29, %v4831_v5  ;;  %2858 = vrot.lane.b32.xlu1 %v5969_v27, %s6856_s13 }
 0x576   : > { %v1509_v15 = vpop.permute.xlu0 %1508  ;;  %3513 = vmatpush1.bf16.msra.mxu1 %v3512_v24 }
 0x577   : > { %2836 = vrot.lane.b32.xlu0 %v6006_v39, %s6866_s24  ;;  %v1507_v8 = vpop.permute.xlu1 %1506  ;;  %v3514_v26 = vpack.c.bf16 %v1501_v16, %v1499_v18  ;;  %v3516_v3 = vpack.c.bf16 %v1500_v6, %v1498_v31  ;;  %v3520_v16 = vpack.c.bf16 %v1528_v62, %v1526_v58  ;;  %v6876_v18 = vpack.c.bf16 %v5632_v4, %v5638_v47  ;;  %s6910_s24 = sshll.u32 %s4296_s22, 7 }
 0x578   : > { %v1559_v62 = vmul.f32 %v1554_v61, %v4928_v25  ;;  %v3530_v47 = vpack.c.bf16 %v5724_v7, %v5728_v9  ;;  %v1587_v7 = vsel %vm892_vm5, %v5932_v40, %v5924_v38  ;;  %v6879_v61 = vld [vmem:[#allocation17_spill] sm:$0xff] }
 0x579   : > { %3515 = vmatprep.subr.bf16.mxu1 %v3514_v26  ;;  %2866 = vrot.lane.b32.xlu1 %v5978_v23, %s6856_s13  ;;  %v1561_v26 = vmul.f32 %v1555_v63, %v4928_v25  ;;  %v1619_v63 = vsel %vm933_vm6, %v5948_v48, %v5940_v1 }
 0x57a   : > { %v1517_v52 = vpop.permute.xlu0 %1516  ;;  %3517 = vmatpush1.bf16.msra.mxu1 %v3516_v3  ;;  %v1550_v3 = vsel %vm851_vm4, %v5911_v54, %v5920_v20 }
 0x57b   : > { %v1521_v10 = vsel %vm810_vm3, %v1509_v15, %v1517_v52  ;;  %v1525_v44 = vsel %vm810_vm3, %v1517_v52, %v1509_v15  ;;  %2860 = vrot.lane.b32.xlu0 %v5981_v21, %s6856_s13  ;;  %3519 = vmatprep.subr.bf16.mxu1 %v3518_v17  ;;  %v1515_v49 = vpop.permute.xlu1 %1514  ;;  %v1558_v20 = vmul.f32 %v1550_v3, %v4946_v46 }
 0x57c   : > { %v1532_v57 = vmul.f32 %v1525_v44, %v4876_v56  ;;  %v1533_v51 = vmul.f32 %v1521_v10, %v4879_v0  ;;  %v1520_v59 = vsel %vm810_vm3, %v1507_v8, %v1515_v49  ;;  %v1524_v6 = vsel %vm810_vm3, %v1515_v49, %v1507_v8 }
 0x57d   : > { %v1530_v41 = vmul.f32 %v1524_v6, %v4876_v56  ;;  %v1531_v24 = vmul.f32 %v1520_v59, %v4879_v0  ;;  %2950 = vrot.lane.b32.xlu1 %v5838_v50, %s6867_s26  ;;  %v1551_v8 = vsel %vm851_vm4, %v5903_v14, %v5915_v36  ;;  %v6877_v36 = vpack.c.bf16 %v5630_v30, %v5634_v2 }
 0x57e   : > { %v1541_v32 = vpop.permute.xlu0 %1540  ;;  %3521 = vmatpush1.bf16.msra.mxu1 %v3520_v16  ;;  %v1560_v54 = vmul.f32 %v1551_v8, %v4946_v46  ;;  %v1586_v30 = vsel %vm892_vm5, %v5936_v53, %v5928_v33  ;;  %v3532_v2 = vpack.c.bf16 %v5716_v28, %v5720_v37  ;;  %v3534_v9 = vpack.c.bf16 %v1561_v26, %v1559_v62 }
 0x57f   : > { %2868 = vrot.lane.b32.xlu0 %v6006_v39, %s6856_s13  ;;  %v1539_v12 = vpop.permute.xlu1 %1538  ;;  %v3522_v29 = vpack.c.bf16 %v1533_v51, %v1531_v24  ;;  %v3524_v45 = vpack.c.bf16 %v1532_v57, %v1530_v41  ;;  %v1583_v28 = vsel %vm892_vm5, %v5924_v38, %v5932_v40  ;;  %v1593_v37 = vmul.f32 %v1587_v7, %v4983_v60 }
 0x580   : > { %v3536_v59 = vpack.c.bf16 %v1560_v54, %v1558_v20  ;;  %v1582_v6 = vsel %vm892_vm5, %v5928_v33, %v5936_v53  ;;  %v1591_v16 = vmul.f32 %v1586_v30, %v4983_v60  ;;  %v6878_v33 = vld [vmem:[#allocation10_spill] sm:$0xff] }
 0x581   : > { %3523 = vmatprep.subr.bf16.mxu1 %v3522_v29  ;;  %2890 = vrot.lane.b32.xlu1 %v5969_v27, %s6857_s19  ;;  %v1592_v53 = vmul.f32 %v1583_v28, %v6878_v33  ;;  %v1590_v29 = vmul.f32 %v1582_v6, %v6878_v33  ;;  %v6884_v28 = vld [vmem:[#allocation20_spill] sm:$0xff] }
 0x582   : > { %v1549_v31 = vpop.permute.xlu0 %1548  ;;  %3525 = vmatpush1.bf16.msra.mxu1 %v3524_v45 }
 0x583   : > { %2952 = vrot.lane.b32.xlu0 %v5853_v55, %s6867_s26  ;;  %3527 = vmatprep.subr.bf16.mxu1 %v6876_v18  ;;  %v1547_v15 = vpop.permute.xlu1 %1546  ;;  %v1557_v58 = vsel %vm851_vm4, %v1549_v31, %v1541_v32  ;;  %v1553_v17 = vsel %vm851_vm4, %v1541_v32, %v1549_v31  ;;  %v1618_v31 = vsel %vm933_vm6, %v6879_v61, %v5944_v13 }
 0x584   : > { %v1556_v14 = vsel %vm851_vm4, %v1547_v15, %v1539_v12  ;;  %v1565_v10 = vmul.f32 %v1557_v58, %v4928_v25  ;;  %v1552_v44 = vsel %vm851_vm4, %v1539_v12, %v1547_v15  ;;  %v1564_v41 = vmul.f32 %v1553_v17, %v4946_v46 }
 0x585   : > { %2898 = vrot.lane.b32.xlu1 %v5978_v23, %s6857_s19  ;;  %v1563_v57 = vmul.f32 %v1556_v14, %v4928_v25  ;;  %v1562_v24 = vmul.f32 %v1552_v44, %v4946_v46  ;;  %v3542_v15 = vpack.c.bf16 %v1593_v37, %v1591_v16  ;;  %v6881_v14 = vld [vmem:[#allocation12_spill] sm:$0xff]  ;;  %v3544_v20 = vpack.c.bf16 %v1592_v53, %v1590_v29 }
 0x586   : > { %v1573_v4 = vpop.permute.xlu0 %1572  ;;  %3529 = vmatpush1.bf16.msra.mxu1 %v6877_v36  ;;  %v1625_v36 = vmul.f32 %v1619_v63, %v6881_v14  ;;  %v1623_v7 = vmul.f32 %v1618_v31, %v6881_v14 }
 0x587   : > { %2960 = vrot.lane.b32.xlu0 %v5866_v11, %s6867_s26  ;;  %3531 = vmatprep.subr.bf16.mxu1 %v3530_v47  ;;  %v1571_v52 = vpop.permute.xlu1 %1570  ;;  %v3538_v40 = vpack.c.bf16 %v1565_v10, %v1563_v57  ;;  %v3540_v18 = vpack.c.bf16 %v1564_v41, %v1562_v24  ;;  %v6880_v47 = vld [vmem:[#allocation16_spill] sm:$0xff] }
 0x588   : > { %v3550_v41 = vpack.c.bf16 %v1625_v36, %v1623_v7 }
 0x589   : > { %2922 = vrot.lane.b32.xlu1 %v5969_v27, %s6859_s12 }
 0x58a   : > { %v1581_v51 = vpop.permute.xlu0 %1580  ;;  %3533 = vmatpush1.bf16.msra.mxu1 %v3532_v2 }
 0x58b   : > { %2892 = vrot.lane.b32.xlu0 %v5981_v21, %s6857_s19  ;;  %3535 = vmatprep.subr.bf16.mxu1 %v3534_v9  ;;  %v1579_v49 = vpop.permute.xlu1 %1578  ;;  %v1589_v32 = vsel %vm892_vm5, %v1581_v51, %v1573_v4  ;;  %v1585_v8 = vsel %vm892_vm5, %v1573_v4, %v1581_v51  ;;  %v1615_v4 = vsel %vm933_vm6, %v5940_v1, %v5948_v48  ;;  %v6883_v51 = vld [vmem:[#allocation18_spill] sm:$0xff] }
 0x58c   : > { %v1588_v12 = vsel %vm892_vm5, %v1579_v49, %v1571_v52  ;;  %v1597_v26 = vmul.f32 %v1589_v32, %v4983_v60  ;;  %v1584_v3 = vsel %vm892_vm5, %v1571_v52, %v1579_v49  ;;  %v1614_v52 = vsel %vm933_vm6, %v5944_v13, %v6879_v61  ;;  %v6882_v13 = vld [vmem:[#allocation11_spill] sm:$0xff]  ;;  %v6887_v61 = vld [vmem:[#allocation14_spill] sm:$0xff] }
 0x58d   : > { %2930 = vrot.lane.b32.xlu1 %v5978_v23, %s6859_s12  ;;  %v1595_v62 = vmul.f32 %v1588_v12, %v4983_v60  ;;  %v1596_v30 = vmul.f32 %v1585_v8, %v6878_v33  ;;  %v1594_v2 = vmul.f32 %v1584_v3, %v6878_v33  ;;  %v1624_v10 = vmul.f32 %v1615_v4, %v6882_v13  ;;  %v6885_v49 = vld [vmem:[#allocation19_spill] sm:$0xff]  ;;  %v6888_v4 = vld [vmem:[#allocation13_spill] sm:$0xff] }
 0x58e   : > { %v1605_v38 = vpop.permute.xlu0 %1604  ;;  %3537 = vmatpush1.bf16.msra.mxu1 %v3536_v59  ;;  %v1622_v44 = vmul.f32 %v1614_v52, %v6882_v13  ;;  %v1651_v37 = vsel %vm974_vm7, %v6884_v28, %v6883_v51  ;;  %v6886_v59 = vld [vmem:[#allocation21_spill] sm:$0xff] }
 0x58f   : > { %2900 = vrot.lane.b32.xlu0 %v6006_v39, %s6857_s19  ;;  %3539 = vmatprep.subr.bf16.mxu1 %v3538_v40  ;;  %v1603_v45 = vpop.permute.xlu1 %1602  ;;  %v3546_v48 = vpack.c.bf16 %v1597_v26, %v1595_v62  ;;  %v1650_v6 = vsel %vm974_vm7, %v6886_v59, %v6885_v49  ;;  %v3548_v16 = vpack.c.bf16 %v1596_v30, %v1594_v2 }
 0x590   : > { %v3552_v63 = vpack.c.bf16 %v1624_v10, %v1622_v44  ;;  %v1655_v31 = vmul.f32 %v1650_v6, %v6887_v61  ;;  %v1646_v8 = vsel %vm974_vm7, %v6885_v49, %v6886_v59 }
 0x591   : > { %2958 = vrot.lane.b32.xlu1 %v6880_v47, %s6867_s26 }
 0x592   : > { %v1613_v58 = vpop.permute.xlu0 %1612  ;;  %3541 = vmatpush1.bf16.msra.mxu1 %v3540_v18 }
 0x593   : > { %2924 = vrot.lane.b32.xlu0 %v5981_v21, %s6859_s12  ;;  %3543 = vmatprep.subr.bf16.mxu1 %v3542_v15  ;;  %v1611_v54 = vpop.permute.xlu1 %1610  ;;  %v1621_v9 = vsel %vm933_vm6, %v1613_v58, %v1605_v38  ;;  %v1617_v24 = vsel %vm933_vm6, %v1605_v38, %v1613_v58  ;;  %v1657_v38 = vmul.f32 %v1651_v37, %v6887_v61  ;;  %v6318_v37 = vld [vmem:[%s6797_s9 + $0x18] sm:$0xff] }
 0x594   : > { %v1620_v17 = vsel %vm933_vm6, %v1611_v54, %v1603_v45  ;;  %v1629_v40 = vmul.f32 %v1621_v9, %v6881_v14  ;;  %v1616_v32 = vsel %vm933_vm6, %v1603_v45, %v1611_v54  ;;  %v1628_v18 = vmul.f32 %v1617_v24, %v6882_v13  ;;  %v6301_v9 = vld [vmem:[%s6797_s9] sm:$0xff]  ;;  %6889 = vst [vmem:[#allocation10_spill] sm:$0xff] %v6318_v37 }
 0x595   : > { %2954 = vrot.lane.b32.xlu1 %v5969_v27, %s6867_s26  ;;  %v1627_v12 = vmul.f32 %v1620_v17, %v6881_v14  ;;  %v1626_v45 = vmul.f32 %v1616_v32, %v6882_v13  ;;  %v1647_v15 = vsel %vm974_vm7, %v6883_v51, %v6884_v28  ;;  %v1654_v54 = vmul.f32 %v1646_v8, %v6888_v4  ;;  %v6308_v51 = vld [vmem:[%s6797_s9 + $0x20] sm:$0xff] }
 0x596   : > { %v1637_v1 = vpop.permute.xlu0 %1636  ;;  %3545 = vmatpush1.bf16.msra.mxu1 %v3544_v20  ;;  %v1656_v36 = vmul.f32 %v1647_v15, %v6888_v4  ;;  %v3558_v52 = vpack.c.bf16 %v1657_v38, %v1655_v31  ;;  %v1664_v15 = vld [vmem:[%s6798_s10 + $0x10] sm:$0xff] }
 0x597   : > { %2932 = vrot.lane.b32.xlu0 %v6006_v39, %s6859_s12  ;;  %3547 = vmatprep.subr.bf16.mxu1 %v3546_v48  ;;  %v1635_v57 = vpop.permute.xlu1 %1634  ;;  %v3554_v26 = vpack.c.bf16 %v1629_v40, %v1627_v12  ;;  %v3556_v20 = vpack.c.bf16 %v1628_v18, %v1626_v45  ;;  %v6342_v12 = vld [vmem:[%s6797_s9 + $0x30] sm:$0xff]  ;;  %v6366_v45 = vld [vmem:[%s6797_s9 + $0x48] sm:$0xff]  ;;  %s6738_s12 = scalar_lea.hbm %s6799_s11, %s3421_s14 }
 0x598   : > { %v3560_v17 = vpack.c.bf16 %v1656_v36, %v1654_v54  ;;  %6891 = vst [vmem:[#allocation16_spill] sm:$0xff] %v6342_v12  ;;  %6893 = vst [vmem:[#allocation11_spill] sm:$0xff] %v6366_v45 }
 0x599   : > { %2962 = vrot.lane.b32.xlu1 %v5978_v23, %s6867_s26 }
 0x59a   : > { %3549 = vmatpush1.bf16.msra.mxu1 %v3548_v16  ;;  %v1645_v53 = vpop.permute.xlu0 %1644 }
 0x59b   : > { %2956 = vrot.lane.b32.xlu0 %v5981_v21, %s6867_s26  ;;  %3551 = vmatprep.subr.bf16.mxu1 %v3550_v41  ;;  %v1643_v29 = vpop.permute.xlu1 %1642  ;;  %v1653_v3 = vsel %vm974_vm7, %v1645_v53, %v1637_v1  ;;  %v1649_v7 = vsel %vm974_vm7, %v1637_v1, %v1645_v53  ;;  %v6328_v41 = vld [vmem:[%s6797_s9 + $0x38] sm:$0xff]  ;;  %v1662_v53 = vld [vmem:[%s6798_s10] sm:$0xff] }
 0x59c   : > { %v1652_v62 = vsel %vm974_vm7, %v1643_v29, %v1635_v57  ;;  %v1661_v30 = vmul.f32 %v1653_v3, %v6887_v61  ;;  %v1648_v2 = vsel %vm974_vm7, %v1635_v57, %v1643_v29  ;;  %v1660_v10 = vmul.f32 %v1649_v7, %v6888_v4  ;;  %6890 = vst [vmem:[#allocation17_spill] sm:$0xff] %v6328_v41  ;;  %v1663_v3 = vld [vmem:[%s6798_s10 + $0x8] sm:$0xff]  ;;  %v1665_v7 = vld [vmem:[%s6798_s10 + $0x18] sm:$0xff] }
 0x59d   : > { %2982 = vrot.lane.b32.xlu1 %v5838_v50, %s6868_s15  ;;  %v1659_v48 = vmul.f32 %v1652_v62, %v6887_v61  ;;  %v1658_v44 = vmul.f32 %v1648_v2, %v6888_v4 }
 0x59e   : > { %3553 = vmatpush1.bf16.msra.mxu1 %v3552_v63  ;;  %v6353_v63 = vld [vmem:[%s6797_s9 + $0x50] sm:$0xff] }
 0x59f   : > { %2964 = vrot.lane.b32.xlu0 %v6006_v39, %s6867_s26  ;;  %3555 = vmatprep.subr.bf16.mxu1 %v3554_v26  ;;  %v2759_v58 = vpop.permute.xlu1 %2758  ;;  %v3562_v28 = vpack.c.bf16 %v1661_v30, %v1659_v48  ;;  %v3564_v6 = vpack.c.bf16 %v1660_v10, %v1658_v44  ;;  %6892 = vst [vmem:[#allocation12_spill] sm:$0xff] %v6353_v63  ;;  %v6399_v48 = vld [vmem:[%s6797_s9 + $0x28] sm:$0xff]  ;;  %v6410_v10 = vld [vmem:[%s6797_s9 + $0x40] sm:$0xff]  ;;  %s6704_s26 = scalar_lea.vmem [#allocation5], %s6910_s24 }
 0x5a0   : > { %6896 = vst [vmem:[#allocation20_spill] sm:$0xff] %v6399_v48  ;;  %6897 = vst [vmem:[#allocation19_spill] sm:$0xff] %v6410_v10  ;;  %s3248_s25 = sshll.u32 %s6704_s26, 4  ;;  %s6741_s25 = int_to_ptr.vmem [resolvable:$true] %s3248_s25 }
 0x5a1   : > { %2990 = vrot.lane.b32.xlu1 %v6880_v47, %s6868_s15  ;;  %s4049_s16 = scalar_lea.vmem %s6741_s25, 2048 }
 0x5a2   : > { %3557 = vmatpush1.bf16.msra.mxu1 %v3556_v20  ;;  %v6894_v20 = vmov 0.0   ;;  %p4050_p11 = scmp.ne.s32.totalorder %s6741_s25, %s4049_s16 }
 0x5a3   : > { %2984 = vrot.lane.b32.xlu0 %v5853_v55, %s6868_s15  ;;  %3559 = vmatprep.subr.bf16.mxu1 %v3558_v52  ;;  %v2767_v1 = vpop.permute.xlu1 %2766 }
 0x5a4   : > { %v2774_v49 = vsel %vm687_vm0, %v2759_v58, %v2767_v1  ;;  %v2778_v8 = vsel %vm687_vm0, %v2767_v1, %v2759_v58  ;;  %v6385_v58 = vld [vmem:[%s6797_s9 + $0x10] sm:$0xff]  ;;  %p4051_p13 = pnand %p4050_p11, %p6911_p12 }
 0x5a5   : > { %v2761_v57 = vpop.permute.xlu0 %2760  ;;  %1764 = vmatmul.mubr.f32.vlgmr.msra.gmra.mrb[0].mxu1 %v6301_v9  ;;  %2986 = vrot.lane.b32.xlu1 %v5969_v27, %s6868_s15  ;;  %v2783_v40 = vmul.f32 %v2774_v49, %v4709_v35  ;;  %v2782_v54 = vmul.f32 %v2778_v8, %v4706_v34  ;;  %6895 = vst [vmem:[#allocation18_spill] sm:$0xff] %v6385_v58 }
 0x5a6   : > { %3561 = vmatpush1.bf16.msra.mxu1 %v3560_v17  ;;  %1769 = vmatprep.mubr.f32.mxu1 %v6308_v51  ;;  %p4052_p8 = pneg %p4051_p13 }
 0x5a7   : > { %2992 = vrot.lane.b32.xlu0 %v5866_v11, %s6868_s15  ;;  %3563 = vmatprep.subr.bf16.mxu1 %v3562_v28  ;;  %v6323_v59 = vpop.permute.xlu1 %2790  ;;  %v6422_v28 = vld [vmem:[%s6797_s9 + $0x58] sm:$0xff] }
 0x5a8   : > { %6898 = vst [vmem:[#allocation21_spill] sm:$0xff] %v6422_v28 }
 0x5a9   : > { %v2769_v16 = vpop.permute.xlu0 %2768  ;;  %1770 = vmatmul.mubr.f32.gmra.mrb[2].mxu1 %v6318_v37  ;;  %2994 = vrot.lane.b32.xlu1 %v5978_v23, %s6868_s15 }
 0x5aa   : > { %v2775_v24 = vsel %vm687_vm0, %v2761_v57, %v2769_v16  ;;  %3565 = vmatpush1.bf16.msra.mxu1 %v3564_v6  ;;  %1775 = vmatprep.mubr.f32.mxu1 %v6328_v41  ;;  %v2779_v18 = vsel %vm687_vm0, %v2769_v16, %v2761_v57  ;;  %v6899_v16 = vld [vmem:[#allocation15_spill] sm:$0xff] }
 0x5ab   : > { %v2785_v32 = vmul.f32 %v2775_v24, %v4709_v35  ;;  %2988 = vrot.lane.b32.xlu0 %v5981_v21, %s6868_s15  ;;  %v6348_v29 = vpop.permute.xlu1 %2798  ;;  %v2784_v62 = vmul.f32 %v2779_v18, %v4706_v34 }
 0x5ad   : > { %v6355_v38 = vpop.permute.xlu0 %2792  ;;  %v3638_v31 = vpack.c.bf16 %v2785_v32, %v2783_v40  ;;  %1776 = vmatmul.mubr.f32.gmra.mrb[4].mxu1 %v6342_v12  ;;  %1668 = vperm.xlu1 %3833, %v1662_v53   ;;  %v3640_v30 = vpack.c.bf16 %v2784_v62, %v2782_v54 }
 0x5ae   : > { %1781 = vmatprep.mubr.f32.mxu1 %v6353_v63 }
 0x5af   : > { %2996 = vrot.lane.b32.xlu0 %v6006_v39, %s6868_s15  ;;  %3639 = vmatprep.subr.bf16.mxu1 %v3638_v31  ;;  %v6373_v26 = vpop.permute.xlu1 %2822  ;;  %s4130_s15 = smov [#allocation5]  }
 0x5b0   : > { %s4053_s24 = sshll.u32 %s4130_s15, 4  ;;  %s4054_s24 = int_to_ptr.vmem [resolvable:$false] %s4053_s24 }
 0x5b1   : > { %v2801_v36 = vpop.permute.xlu0 %2800  ;;  %1782 = vmatmul.mubr.f32.gmra.mrb[6].mxu1 %v6366_v45  ;;  %1678 = vperm.xlu1 %3833, %v1664_v15   ;;  %s4055_s14 = scalar_lea.vmem %s4054_s24, 4096  ;;  %p4056_p10 = scmp.lt.s32.totalorder %s6741_s25, %s4054_s24 }
 0x5b2   : > { %1852 = vmatprep.mubr.f32.mxu1 %v6894_v20  ;;  %v2807_v54 = vsel %vm728_vm1, %v6355_v38, %v2801_v36  ;;  %p4057_p0 = scmp.lt.s32.totalorder %s4055_s14, %s4049_s16 }
 0x5b3   : > { %1673 = vperm.xlu0 %3834, %v1663_v3   ;;  %v6387_v52 = vpop.permute.xlu1 %2830 }
 0x5b4   : > { %p4058_p2 = por %p4057_p0, %p4056_p10 }
 0x5b5   : > { %v6392_v2 = vpop.permute.xlu0 %2824  ;;  %3366 = vmatmul.mubr.msk.f32.vlgmr.msra.gmra.mrb[0].mxu1 %vm1686_vm9, %v6385_v58  ;;  %3020 = vperm.xlu1 %3833, %v1662_v53   ;;  %v2817_v58 = vmul.f32 %v2807_v54, %v4777_v43 }
 0x5b6   : > { %3641 = vmatpush1.bf16.msra.mxu1 %v3640_v30  ;;  %1858 = vmatprep.mubr.f32.mxu1 %v6894_v20  ;;  %p4059_p4 = pnand %p4058_p2, %p4052_p8 }
 0x5b7   : > { %1683 = vperm.xlu0 %3834, %v1665_v7   ;;  %v6402_v1 = vpop.permute.xlu1 %2854 }
 0x5b9   : > { %v2833_v17 = vpop.permute.xlu0 %2832  ;;  %3367 = vmatmul.mubr.msk.f32.gmra.mrb[2].mxu1 %vm1686_vm9, %v6399_v48  ;;  %3030 = vperm.xlu1 %3833, %v1664_v15   ;;  %v2811_v48 = vsel %vm728_vm1, %v2801_v36, %v6355_v38  ;;  %v2810_v38 = vsel %vm728_vm1, %v6348_v29, %v6323_v59 }
 0x5ba   : > { %1864 = vmatprep.mubr.f32.mxu1 %v6894_v20  ;;  %v2816_v41 = vmul.f32 %v2811_v48, %v4774_v42 }
 0x5bb   : > { %3025 = vperm.xlu0 %3834, %v1663_v3   ;;  %v6412_v44 = vpop.permute.xlu1 %2862 }
 0x5bd   : > { %v6414_v57 = vpop.permute.xlu0 %2856  ;;  %3368 = vmatmul.mubr.msk.f32.gmra.mrb[4].mxu1 %vm1686_vm9, %v6410_v10 }
 0x5be   : > { %1870 = vmatprep.mubr.f32.mxu1 %v6894_v20 }
 0x5bf   : > { %3035 = vperm.xlu0 %3834, %v1665_v7   ;;  %v6424_v49 = vpop.permute.xlu1 %2886 }
 0x5c1   : > { %v6426_v6 = vpop.permute.xlu0 %2864  ;;  %3369 = vmatmul.mubr.msk.f32.gmra.mrb[6].mxu1 %vm1686_vm9, %v6422_v28  ;;  %v2806_v28 = vsel %vm728_vm1, %v6323_v59, %v6348_v29 }
 0x5c2   : > { %3102 = vmatprep.mubr.f32.mxu1 %v6899_v16  ;;  %v2815_v54 = vmul.f32 %v2806_v28, %v4777_v43 }
 0x5c3   : > { %v6431_v24 = vpop.permute.xlu1 %2894 }
 0x5c5   : > { %v6433_v40 = vpop.permute.xlu0 %2888 }
 0x5c7   : > { %v6435_v32 = vpop.permute.xlu1 %2918 }
 0x5c9   : > { %v6437_v53 = vpop.permute.xlu0 %2896 }
 0x5cb   : > { %v6439_v31 = vpop.permute.xlu1 %2926 }
 0x5cd   : > { %v6441_v18 = vpop.permute.xlu0 %2920 }
 0x5cf   : > { %v2763_v15 = vpop.permute.xlu1 %2762 }
 0x5d1   : > { %v6443_v8 = vpop.permute.xlu0 %2928 }
 0x5d3   : > { %v2771_v3 = vpop.permute.xlu1 %2770 }
 0x5d4   : > { %v2776_v7 = vsel %vm687_vm0, %v2763_v15, %v2771_v3  ;;  %v2780_v30 = vsel %vm687_vm0, %v2771_v3, %v2763_v15 }
 0x5d5   : > { %v2765_v62 = vpop.permute.xlu0 %2764  ;;  %v2786_v15 = vmul.f32 %v2780_v30, %v4706_v34  ;;  %v2787_v3 = vmul.f32 %v2776_v7, %v4709_v35  ;;  %v2814_v30 = vmul.f32 %v2810_v38, %v4774_v42 }
 0x5d7   : > { %v2795_v16 = vpop.permute.xlu1 %2794 }
 0x5d9   : > { %v2773_v10 = vpop.permute.xlu0 %2772 }
 0x5da   : > { %v2777_v20 = vsel %vm687_vm0, %v2765_v62, %v2773_v10  ;;  %v2781_v45 = vsel %vm687_vm0, %v2773_v10, %v2765_v62 }
 0x5db   : > { %v2788_v63 = vmul.f32 %v2781_v45, %v4706_v34  ;;  %v2789_v12 = vmul.f32 %v2777_v20, %v4709_v35  ;;  %v2803_v36 = vpop.permute.xlu1 %2802  ;;  %v2839_v34 = vsel %vm769_vm2, %v6392_v2, %v2833_v17  ;;  %v3646_v35 = vpack.c.bf16 %v2817_v58, %v2815_v54 }
 0x5dc   : > { %v2808_v45 = vsel %vm728_vm1, %v2795_v16, %v2803_v36  ;;  %v2812_v59 = vsel %vm728_vm1, %v2803_v36, %v2795_v16  ;;  %v3648_v20 = vpack.c.bf16 %v2816_v41, %v2814_v30  ;;  %v2843_v58 = vsel %vm769_vm2, %v2833_v17, %v6392_v2 }
 0x5dd   : > { %v3644_v37 = vpack.c.bf16 %v2788_v63, %v2786_v15  ;;  %v2797_v10 = vpop.permute.xlu0 %2796  ;;  %v3642_v62 = vpack.c.bf16 %v2789_v12, %v2787_v3  ;;  %v2838_v12 = vsel %vm769_vm2, %v6373_v26, %v6387_v52  ;;  %v2849_v48 = vmul.f32 %v2839_v34, %v4831_v5 }
 0x5de   : > { %v2818_v41 = vmul.f32 %v2812_v59, %v4774_v42  ;;  %v2819_v7 = vmul.f32 %v2808_v45, %v4777_v43  ;;  %v2842_v2 = vsel %vm769_vm2, %v6387_v52, %v6373_v26  ;;  %v2847_v3 = vmul.f32 %v2838_v12, %v4831_v5 }
 0x5df   : > { %3643 = vmatprep.subr.bf16.mxu1 %v3642_v62  ;;  %v2827_v29 = vpop.permute.xlu1 %2826  ;;  %v2848_v38 = vmul.f32 %v2843_v58, %v4828_v22  ;;  %v2846_v62 = vmul.f32 %v2842_v2, %v4828_v22  ;;  %v2875_v59 = vsel %vm810_vm3, %v6426_v6, %v6414_v57 }
 0x5e0   : > { %3645 = vmatpush1.bf16.msra.mxu1 %v3644_v37 }
 0x5e1   : > { %v2805_v63 = vpop.permute.xlu0 %2804  ;;  %3647 = vmatprep.subr.bf16.mxu1 %v3646_v35  ;;  %v3656_v34 = vpack.c.bf16 %v2848_v38, %v2846_v62  ;;  %v2870_v35 = vsel %vm810_vm3, %v6402_v1, %v6412_v44 }
 0x5e2   : > { %v2809_v28 = vsel %vm728_vm1, %v2797_v10, %v2805_v63  ;;  %v2813_v37 = vsel %vm728_vm1, %v2805_v63, %v2797_v10 }
 0x5e3   : > { %v2820_v16 = vmul.f32 %v2813_v37, %v4774_v42  ;;  %v2821_v15 = vmul.f32 %v2809_v28, %v4777_v43  ;;  %v2835_v17 = vpop.permute.xlu1 %2834  ;;  %v2871_v42 = vsel %vm810_vm3, %v6414_v57, %v6426_v6  ;;  %v3654_v43 = vpack.c.bf16 %v2849_v48, %v2847_v3 }
 0x5e4   : > { %3649 = vmatpush1.bf16.msra.mxu1 %v3648_v20  ;;  %v2840_v26 = vsel %vm769_vm2, %v2827_v29, %v2835_v17  ;;  %v2844_v52 = vsel %vm769_vm2, %v2835_v17, %v2827_v29  ;;  %v2881_v20 = vmul.f32 %v2871_v42, %v4879_v0  ;;  %v2874_v57 = vsel %vm810_vm3, %v6412_v44, %v6402_v1 }
 0x5e5   : > { %v3652_v36 = vpack.c.bf16 %v2820_v16, %v2818_v41  ;;  %v2829_v54 = vpop.permute.xlu0 %2828  ;;  %v3650_v10 = vpack.c.bf16 %v2821_v15, %v2819_v7  ;;  %v2850_v63 = vmul.f32 %v2844_v52, %v4828_v22  ;;  %v2851_v58 = vmul.f32 %v2840_v26, %v4831_v5 }
 0x5e6   : > { %v2879_v6 = vmul.f32 %v2870_v35, %v4879_v0  ;;  %v2880_v15 = vmul.f32 %v2875_v59, %v4876_v56  ;;  %v2907_v35 = vsel %vm851_vm4, %v6437_v53, %v6433_v40 }
 0x5e7   : > { %3651 = vmatprep.subr.bf16.mxu1 %v3650_v10  ;;  %v2859_v30 = vpop.permute.xlu1 %2858  ;;  %v2913_v59 = vmul.f32 %v2907_v35, %v4928_v25 }
 0x5e8   : > { %3653 = vmatpush1.bf16.msra.mxu1 %v3652_v36  ;;  %v3662_v2 = vpack.c.bf16 %v2881_v20, %v2879_v6  ;;  %v3674_v20 = vpack.c.bf16 %v6006_v39, %v5978_v23  ;;  %v2939_v23 = vsel %vm892_vm5, %v6443_v8, %v6441_v18 }
 0x5e9   : > { %v2837_v45 = vpop.permute.xlu0 %2836  ;;  %3655 = vmatprep.subr.bf16.mxu1 %v3654_v43 }
 0x5ea   : > { %v2841_v29 = vsel %vm769_vm2, %v2829_v54, %v2837_v45  ;;  %v2845_v12 = vsel %vm769_vm2, %v2837_v45, %v2829_v54 }
 0x5eb   : > { %v2852_v48 = vmul.f32 %v2845_v12, %v4828_v22  ;;  %v2853_v28 = vmul.f32 %v2841_v29, %v4831_v5  ;;  %v2867_v37 = vpop.permute.xlu1 %2866  ;;  %v2878_v22 = vmul.f32 %v2874_v57, %v4876_v56  ;;  %v2902_v29 = vsel %vm851_vm4, %v6424_v49, %v6431_v24 }
 0x5ec   : > { %3657 = vmatpush1.bf16.msra.mxu1 %v3656_v34  ;;  %v2872_v5 = vsel %vm810_vm3, %v2859_v30, %v2867_v37  ;;  %v2876_v17 = vsel %vm810_vm3, %v2867_v37, %v2859_v30  ;;  %v3670_v34 = vpack.c.bf16 %v5866_v11, %v6880_v47  ;;  %v2903_v11 = vsel %vm851_vm4, %v6433_v40, %v6437_v53 }
 0x5ed   : > { %v3660_v41 = vpack.c.bf16 %v2852_v48, %v2850_v63  ;;  %v2861_v7 = vpop.permute.xlu0 %2860  ;;  %v3658_v16 = vpack.c.bf16 %v2853_v28, %v2851_v58  ;;  %v3664_v44 = vpack.c.bf16 %v2880_v15, %v2878_v22  ;;  %v2882_v54 = vmul.f32 %v2876_v17, %v4876_v56 }
 0x5ee   : > { %v2883_v10 = vmul.f32 %v2872_v5, %v4879_v0  ;;  %v3672_v47 = vpack.c.bf16 %v5853_v55, %v5838_v50  ;;  %v2912_v58 = vmul.f32 %v2903_v11, %v4946_v46  ;;  %v3676_v50 = vpack.c.bf16 %v5981_v21, %v5969_v27 }
 0x5ef   : > { %3659 = vmatprep.subr.bf16.mxu1 %v3658_v16  ;;  %v6541_v3 = vpop.permute.xlu1 %2950  ;;  %v2910_v55 = vmul.f32 %v2902_v29, %v4946_v46  ;;  %v2938_v21 = vsel %vm892_vm5, %v6439_v31, %v6435_v32  ;;  %v2935_v28 = vsel %vm892_vm5, %v6441_v18, %v6443_v8  ;;  %v2945_v37 = vmul.f32 %v2939_v23, %v4983_v60 }
 0x5f0   : > { %3661 = vmatpush1.bf16.msra.mxu1 %v3660_v41  ;;  %v2934_v18 = vsel %vm892_vm5, %v6435_v32, %v6439_v31  ;;  %v2944_v22 = vmul.f32 %v2935_v28, %v6878_v33 }
 0x5f1   : > { %v2869_v1 = vpop.permute.xlu0 %2868  ;;  %3663 = vmatprep.subr.bf16.mxu1 %v3662_v2  ;;  %v3680_v48 = vpack.c.bf16 %v2912_v58, %v2910_v55  ;;  %v2943_v2 = vmul.f32 %v2938_v21, %v4983_v60 }
 0x5f2   : > { %v2873_v38 = vsel %vm810_vm3, %v2861_v7, %v2869_v1  ;;  %v2877_v36 = vsel %vm810_vm3, %v2869_v1, %v2861_v7 }
 0x5f3   : > { %v2884_v62 = vmul.f32 %v2877_v36, %v4876_v56  ;;  %v2885_v42 = vmul.f32 %v2873_v38, %v4879_v0  ;;  %v2891_v43 = vpop.permute.xlu1 %2890  ;;  %v2906_v0 = vsel %vm851_vm4, %v6431_v24, %v6424_v49  ;;  %v3686_v38 = vpack.c.bf16 %v2945_v37, %v2943_v2 }
 0x5f4   : > { %3665 = vmatpush1.bf16.msra.mxu1 %v3664_v44  ;;  %v2911_v63 = vmul.f32 %v2906_v0, %v4928_v25  ;;  %v2942_v44 = vmul.f32 %v2934_v18, %v6878_v33 }
 0x5f5   : > { %v3668_v26 = vpack.c.bf16 %v2884_v62, %v2882_v54  ;;  %v6551_v52 = vpop.permute.xlu0 %2952  ;;  %v3666_v30 = vpack.c.bf16 %v2885_v42, %v2883_v10 }
 0x5f6   : > { %v3678_v39 = vpack.c.bf16 %v2913_v59, %v2911_v63  ;;  %v3688_v36 = vpack.c.bf16 %v2944_v22, %v2942_v44  ;;  %v6900_v22 = vld [vmem:[#allocation10_spill] sm:$0xff] }
 0x5f7   : > { %3667 = vmatprep.subr.bf16.mxu1 %v3666_v30  ;;  %v2899_v45 = vpop.permute.xlu1 %2898 }
 0x5f8   : > { %3669 = vmatpush1.bf16.msra.mxu1 %v3668_v26  ;;  %v2904_v49 = vsel %vm851_vm4, %v2891_v43, %v2899_v45  ;;  %v2908_v24 = vsel %vm851_vm4, %v2899_v45, %v2891_v43 }
 0x5f9   : > { %v6559_v56 = vpop.permute.xlu0 %2960  ;;  %3671 = vmatprep.subr.bf16.mxu1 %v3670_v34  ;;  %v2914_v41 = vmul.f32 %v2904_v49, %v4946_v46  ;;  %v2915_v7 = vmul.f32 %v2908_v24, %v4928_v25 }
 0x5fa   : > { %v2971_v54 = vsel %vm933_vm6, %v6559_v56, %v6551_v52  ;;  %v2967_v11 = vsel %vm933_vm6, %v6551_v52, %v6559_v56 }
 0x5fb   : > { %v2923_v12 = vpop.permute.xlu1 %2922 }
 0x5fc   : > { %3673 = vmatpush1.bf16.msra.mxu1 %v3672_v47  ;;  %v2977_v47 = vmul.f32 %v2971_v54, %v6881_v14 }
 0x5fd   : > { %v2893_v40 = vpop.permute.xlu0 %2892  ;;  %3675 = vmatprep.subr.bf16.mxu1 %v3674_v20 }
 0x5ff   : > { %v2931_v53 = vpop.permute.xlu1 %2930 }
 0x600   : > { %3677 = vmatpush1.bf16.msra.mxu1 %v3676_v50 }
 0x601   : > { %v2901_v27 = vpop.permute.xlu0 %2900  ;;  %3679 = vmatprep.subr.bf16.mxu1 %v3678_v39 }
 0x602   : > { %v2905_v57 = vsel %vm851_vm4, %v2893_v40, %v2901_v27  ;;  %v2909_v6 = vsel %vm851_vm4, %v2901_v27, %v2893_v40 }
 0x603   : > { %v2916_v16 = vmul.f32 %v2905_v57, %v4946_v46  ;;  %v2917_v15 = vmul.f32 %v2909_v6, %v4928_v25  ;;  %v2959_v8 = vpop.permute.xlu1 %2958  ;;  %v2936_v46 = vsel %vm892_vm5, %v2923_v12, %v2931_v53  ;;  %v2940_v25 = vsel %vm892_vm5, %v2931_v53, %v2923_v12 }
 0x604   : > { %3681 = vmatpush1.bf16.msra.mxu1 %v3680_v48  ;;  %v2970_v32 = vsel %vm933_vm6, %v2959_v8, %v6541_v3  ;;  %v2946_v62 = vmul.f32 %v2936_v46, %v6878_v33  ;;  %v2947_v42 = vmul.f32 %v2940_v25, %v4983_v60  ;;  %v2966_v30 = vsel %vm933_vm6, %v6541_v3, %v2959_v8 }
 0x605   : > { %v3684_v5 = vpack.c.bf16 %v2916_v16, %v2914_v41  ;;  %v2925_v17 = vpop.permute.xlu0 %2924  ;;  %v3682_v1 = vpack.c.bf16 %v2917_v15, %v2915_v7  ;;  %v2975_v34 = vmul.f32 %v2970_v32, %v6881_v14  ;;  %v2974_v3 = vmul.f32 %v2966_v30, %v6882_v13 }
 0x607   : > { %3683 = vmatprep.subr.bf16.mxu1 %v3682_v1  ;;  %v2955_v31 = vpop.permute.xlu1 %2954  ;;  %v3694_v12 = vpack.c.bf16 %v2977_v47, %v2975_v34  ;;  %v6901_v1 = vld [vmem:[#allocation17_spill] sm:$0xff] }
 0x608   : > { %3685 = vmatpush1.bf16.msra.mxu1 %v3684_v5 }
 0x609   : > { %v2933_v10 = vpop.permute.xlu0 %2932  ;;  %3687 = vmatprep.subr.bf16.mxu1 %v3686_v38 }
 0x60a   : > { %v2937_v43 = vsel %vm892_vm5, %v2925_v17, %v2933_v10  ;;  %v2941_v26 = vsel %vm892_vm5, %v2933_v10, %v2925_v17 }
 0x60b   : > { %v2948_v35 = vmul.f32 %v2937_v43, %v6878_v33  ;;  %v2949_v45 = vmul.f32 %v2941_v26, %v4983_v60  ;;  %v2963_v0 = vpop.permute.xlu1 %2962  ;;  %v2976_v33 = vmul.f32 %v2967_v11, %v6882_v13  ;;  %v6909_v43 = vld [vmem:[#allocation21_spill] sm:$0xff] }
 0x60c   : > { %3689 = vmatpush1.bf16.msra.mxu1 %v3688_v36  ;;  %v2968_v60 = vsel %vm933_vm6, %v2955_v31, %v2963_v0  ;;  %v2972_v63 = vsel %vm933_vm6, %v2963_v0, %v2955_v31  ;;  %v6902_v31 = vld [vmem:[#allocation16_spill] sm:$0xff]  ;;  %v4003_v0 = vld [vmem:[%s4302_s27] sm:$0xff] }
 0x60d   : > { %v3692_v59 = vpack.c.bf16 %v2948_v35, %v2946_v62  ;;  %v2957_v20 = vpop.permute.xlu0 %2956  ;;  %v3690_v29 = vpack.c.bf16 %v2949_v45, %v2947_v42  ;;  %v3696_v56 = vpack.c.bf16 %v2976_v33, %v2974_v3  ;;  %v2978_v55 = vmul.f32 %v2968_v60, %v6882_v13  ;;  %v6903_v36 = vld [vmem:[#allocation12_spill] sm:$0xff]  ;;  %v6904_v62 = vld [vmem:[#allocation11_spill] sm:$0xff]  ;;  %v6906_v42 = vld [vmem:[#allocation18_spill] sm:$0xff] }
 0x60e   : > { %v2979_v23 = vmul.f32 %v2972_v63, %v6881_v14  ;;  %v4005_v60 = vld [vmem:[%s4302_s27 + $0x10] sm:$0xff] }
 0x60f   : > { %3691 = vmatprep.subr.bf16.mxu1 %v3690_v29  ;;  %v2983_v58 = vpop.permute.xlu1 %2982 }
 0x610   : > { %3693 = vmatpush1.bf16.msra.mxu1 %v3692_v59  ;;  %v4004_v59 = vld [vmem:[%s4302_s27 + $0x8] sm:$0xff] }
 0x611   : > { %v2965_v52 = vpop.permute.xlu0 %2964  ;;  %3695 = vmatprep.subr.bf16.mxu1 %v3694_v12 }
 0x612   : > { %v2969_v40 = vsel %vm933_vm6, %v2957_v20, %v2965_v52  ;;  %v2973_v50 = vsel %vm933_vm6, %v2965_v52, %v2957_v20  ;;  %v4006_v52 = vld [vmem:[%s4302_s27 + $0x18] sm:$0xff] }
 0x613   : > { %v2980_v39 = vmul.f32 %v2969_v40, %v6882_v13  ;;  %v2981_v49 = vmul.f32 %v2973_v50, %v6881_v14  ;;  %v2991_v24 = vpop.permute.xlu1 %2990 }
 0x614   : > { %3697 = vmatpush1.bf16.msra.mxu1 %v3696_v56  ;;  %v2998_v27 = vsel %vm974_vm7, %v2983_v58, %v2991_v24  ;;  %v3002_v28 = vsel %vm974_vm7, %v2991_v24, %v2983_v58 }
 0x615   : > { %v3700_v53 = vpack.c.bf16 %v2980_v39, %v2978_v55  ;;  %v2985_v48 = vpop.permute.xlu0 %2984  ;;  %v3698_v21 = vpack.c.bf16 %v2981_v49, %v2979_v23  ;;  %v3006_v6 = vmul.f32 %v2998_v27, %v6888_v4  ;;  %v3007_v41 = vmul.f32 %v3002_v28, %v6887_v61  ;;  %v4007_v39 = vld [vmem:[%s4302_s27 + $0x20] sm:$0xff] }
 0x617   : > { %3699 = vmatprep.subr.bf16.mxu1 %v3698_v21  ;;  %v2987_v37 = vpop.permute.xlu1 %2986 }
 0x618   : > { %3701 = vmatpush1.bf16.msra.mxu1 %v3700_v53  ;;  %v4008_v53 = vld [vmem:[%s4302_s27 + $0x28] sm:$0xff] }
 0x619   : > { %v2993_v57 = vpop.permute.xlu0 %2992 }
 0x61a   : > { %v2999_v13 = vsel %vm974_vm7, %v2985_v48, %v2993_v57  ;;  %v3003_v14 = vsel %vm974_vm7, %v2993_v57, %v2985_v48  ;;  %v4009_v57 = vld [vmem:[%s4302_s27 + $0x30] sm:$0xff] }
 0x61b   : > { %v3008_v7 = vmul.f32 %v2999_v13, %v6888_v4  ;;  %v3009_v16 = vmul.f32 %v3003_v14, %v6887_v61  ;;  %3103 = vmatmul.mubr.f32.vlgmr.msra.gmra.mrb[8].mxu1 %v6301_v9  ;;  %v2995_v18 = vpop.permute.xlu1 %2994  ;;  %v4010_v14 = vld [vmem:[%s4302_s27 + $0x38] sm:$0xff] }
 0x61c   : > { %3108 = vmatprep.mubr.f32.mxu1 %v6308_v51  ;;  %v3000_v5 = vsel %vm974_vm7, %v2987_v37, %v2995_v18  ;;  %v3004_v17 = vsel %vm974_vm7, %v2995_v18, %v2987_v37 }
 0x61d   : > { %v3704_v15 = vpack.c.bf16 %v3008_v7, %v3006_v6  ;;  %v2989_v8 = vpop.permute.xlu0 %2988  ;;  %v3702_v2 = vpack.c.bf16 %v3009_v16, %v3007_v41  ;;  %v3010_v46 = vmul.f32 %v3000_v5, %v6888_v4  ;;  %v3011_v25 = vmul.f32 %v3004_v17, %v6887_v61  ;;  %v4012_v5 = vld [vmem:[%s4302_s27 + $0x48] sm:$0xff] }
 0x61f   : > { %3109 = vmatmul.mubr.f32.gmra.mrb[10].mxu1 %v6900_v22  ;;  %3703 = vmatprep.subr.bf16.mxu1 %v3702_v2 }
 0x620   : > { %3705 = vmatpush1.bf16.msra.mxu1 %v3704_v15  ;;  %3114 = vmatprep.mubr.f32.mxu1 %v6901_v1 }
 0x621   : > { %v2997_v44 = vpop.permute.xlu0 %2996 }
 0x622   : > { %v3001_v9 = vsel %vm974_vm7, %v2989_v8, %v2997_v44  ;;  %v3005_v51 = vsel %vm974_vm7, %v2997_v44, %v2989_v8  ;;  %v4011_v8 = vld [vmem:[%s4302_s27 + $0x40] sm:$0xff] }
 0x623   : > { %v3012_v38 = vmul.f32 %v3001_v9, %v6888_v4  ;;  %v3013_v32 = vmul.f32 %v3005_v51, %v6887_v61  ;;  %3115 = vmatmul.mubr.f32.gmra.mrb[12].mxu1 %v6902_v31  ;;  %v6907_v61 = vld [vmem:[#allocation20_spill] sm:$0xff]  ;;  %v6908_v4 = vld [vmem:[#allocation19_spill] sm:$0xff] }
 0x624   : > { %3120 = vmatprep.mubr.f32.mxu1 %v6903_v36 }
 0x625   : > { %v3708_v54 = vpack.c.bf16 %v3012_v38, %v3010_v46  ;;  %v3706_v10 = vpack.c.bf16 %v3013_v32, %v3011_v25  ;;  %v4013_v46 = vld [vmem:[%s4302_s27 + $0x50] sm:$0xff]  ;;  %v4014_v32 = vld [vmem:[%s4302_s27 + $0x58] sm:$0xff] }
 0x627   : > { %3121 = vmatmul.mubr.f32.gmra.mrb[14].mxu1 %v6904_v62  ;;  %3707 = vmatprep.subr.bf16.mxu1 %v3706_v10 }
 0x628   : > { %3709 = vmatpush1.bf16.msra.mxu1 %v3708_v54  ;;  %3191 = vmatprep.mubr.f32.mxu1 %v6905_v19 }
 0x62b   : > { %3400 = vmatmul.mubr.msk.f32.vlgmr.msra.gmra.mrb[8].mxu1 %vm1686_vm9, %v6906_v42 }
 0x62c   : > { %3197 = vmatprep.mubr.f32.mxu1 %v6905_v19  ;;  %v1669_v26 = vpop.permute.xlu1 %1668 }
 0x62f   : > { %3401 = vmatmul.mubr.msk.f32.gmra.mrb[10].mxu1 %vm1686_vm9, %v6907_v61 }
 0x630   : > { %3203 = vmatprep.mubr.f32.mxu1 %v6905_v19  ;;  %v1679_v58 = vpop.permute.xlu1 %1678 }
 0x632   : > { %v1674_v47 = vpop.permute.xlu0 %1673 }
 0x633   : > { %3402 = vmatmul.mubr.msk.f32.gmra.mrb[12].mxu1 %vm1686_vm9, %v6908_v4  ;;  %v4016_v4 = vld [vmem:[%s4302_s27 + $0x68] sm:$0xff] }
 0x634   : > { %3209 = vmatprep.mubr.f32.mxu1 %v6905_v19  ;;  %v3021_v41 = vpop.permute.xlu1 %3020  ;;  %v4015_v19 = vld [vmem:[%s4302_s27 + $0x60] sm:$0xff] }
 0x636   : > { %v1684_v24 = vpop.permute.xlu0 %1683 }
 0x637   : > { %3403 = vmatmul.mubr.msk.f32.gmra.mrb[14].mxu1 %vm1686_vm9, %v6909_v43 }
 0x638   : > { %v3031_v38 = vpop.permute.xlu1 %3030 }
 0x63a   : > { %v3026_v22 = vpop.permute.xlu0 %3025 }
 0x63e   : > { %v3036_v61 = vpop.permute.xlu0 %3035 }
 0x688   : > { %v1854_v30 = vpop.f32.mrb[0].mxu1 }
 0x689   : > { %v3718_v34 = vadd.f32 %v1854_v30, %v1669_v26  ;;  %v1856_v35 = vpop.f32.mrb[1].mxu1 }
 0x68a   : > { %v3719_v45 = vadd.f32 %v1856_v35, %v1669_v26 }
 0x68b   : > { %v1877_v11 = vadd.f32 %v4003_v0, %v3718_v34 }
 0x68c   : > { %v1878_v20 = vadd.f32 %v4004_v59, %v3719_v45  ;;  %v1860_v29 = vpop.f32.mrb[2].mxu1  ;;  %v4017_v45 = vld [vmem:[%s4302_s27 + $0x70] sm:$0xff] }
 0x68d   : > { %1885 = vst [vmem:[%s6704_s26] sm:$0xff] %v1877_v11  ;;  %v3720_v3 = vadd.f32 %v1860_v29, %v1674_v47  ;;  %v1862_v12 = vpop.f32.mrb[3].mxu1  ;;  %v4018_v11 = vld [vmem:[%s4302_s27 + $0x78] sm:$0xff] }
 0x68e   : > { %1886 = vst [vmem:[%s6704_s26 + $0x8] sm:$0xff] %v1878_v20  ;;  %v3721_v33 = vadd.f32 %v1862_v12, %v1674_v47 }
 0x68f   : > { %v1879_v63 = vadd.f32 %v4005_v60, %v3720_v3 }
 0x690   : > { %v1880_v56 = vadd.f32 %v4006_v52, %v3721_v33  ;;  %v1866_v40 = vpop.f32.mrb[4].mxu1 }
 0x691   : > { %1887 = vst [vmem:[%s6704_s26 + $0x10] sm:$0xff] %v1879_v63  ;;  %v3722_v50 = vadd.f32 %v1866_v40, %v1679_v58  ;;  %v1868_v55 = vpop.f32.mrb[5].mxu1 }
 0x692   : > { %1888 = vst [vmem:[%s6704_s26 + $0x18] sm:$0xff] %v1880_v56  ;;  %v3723_v23 = vadd.f32 %v1868_v55, %v1679_v58 }
 0x693   : > { %v1881_v49 = vadd.f32 %v4007_v39, %v3722_v50 }
 0x694   : > { %v1882_v48 = vadd.f32 %v4008_v53, %v3723_v23  ;;  %v1872_v21 = vpop.f32.mrb[6].mxu1 }
 0x695   : > { %1889 = vst [vmem:[%s6704_s26 + $0x20] sm:$0xff] %v1881_v49  ;;  %v3724_v27 = vadd.f32 %v1872_v21, %v1684_v24  ;;  %v1874_v28 = vpop.f32.mrb[7].mxu1 }
 0x696   : > { %1890 = vst [vmem:[%s6704_s26 + $0x28] sm:$0xff] %v1882_v48  ;;  %v3725_v37 = vadd.f32 %v1874_v28, %v1684_v24 }
 0x697   : > { %v1883_v13 = vadd.f32 %v4009_v57, %v3724_v27 }
 0x698   : > { %v1884_v6 = vadd.f32 %v4010_v14, %v3725_v37 }
 0x699   : > { %1891 = vst [vmem:[%s6704_s26 + $0x30] sm:$0xff] %v1883_v13 }
 0x69a   : > { %1892 = vst [vmem:[%s6704_s26 + $0x38] sm:$0xff] %v1884_v6 }
 0x6fe   : > { %v3193_v7 = vpop.f32.mrb[8].mxu1 }
 0x6ff   : > { %v3734_v16 = vadd.f32 %v3193_v7, %v3021_v41  ;;  %v3195_v15 = vpop.f32.mrb[9].mxu1 }
 0x700   : > { %v3735_v18 = vadd.f32 %v3195_v15, %v3021_v41 }
 0x701   : > { %v3216_v2 = vadd.f32 %v4011_v8, %v3734_v16 }
 0x702   : > { %v3217_v17 = vadd.f32 %v4012_v5, %v3735_v18  ;;  %v3199_v1 = vpop.f32.mrb[10].mxu1 }
 0x703   : > { %3404 = vst [vmem:[%s6704_s26 + $0x40] sm:$0xff] %v3216_v2  ;;  %v3736_v44 = vadd.f32 %v3199_v1, %v3026_v22  ;;  %v3201_v9 = vpop.f32.mrb[11].mxu1 }
 0x704   : > { %3405 = vst [vmem:[%s6704_s26 + $0x48] sm:$0xff] %v3217_v17  ;;  %v3737_v51 = vadd.f32 %v3201_v9, %v3026_v22 }
 0x705   : > { %v3218_v25 = vadd.f32 %v4013_v46, %v3736_v44 }
 0x706   : > { %v3219_v31 = vadd.f32 %v4014_v32, %v3737_v51  ;;  %v3205_v36 = vpop.f32.mrb[12].mxu1 }
 0x707   : > { %3406 = vst [vmem:[%s6704_s26 + $0x50] sm:$0xff] %v3218_v25  ;;  %v3738_v54 = vadd.f32 %v3205_v36, %v3031_v38  ;;  %v3207_v10 = vpop.f32.mrb[13].mxu1 }
 0x708   : > { %3407 = vst [vmem:[%s6704_s26 + $0x58] sm:$0xff] %v3219_v31  ;;  %v3739_v62 = vadd.f32 %v3207_v10, %v3031_v38 }
 0x709   : > { %v3220_v42 = vadd.f32 %v4015_v19, %v3738_v54 }
 0x70a   : > { %v3221_v43 = vadd.f32 %v4016_v4, %v3739_v62  ;;  %v3211_v26 = vpop.f32.mrb[14].mxu1 }
 0x70b   : > { %3408 = vst [vmem:[%s6704_s26 + $0x60] sm:$0xff] %v3220_v42  ;;  %v3740_v30 = vadd.f32 %v3211_v26, %v3036_v61  ;;  %v3213_v34 = vpop.f32.mrb[15].mxu1 }
 0x70c   : > { %3409 = vst [vmem:[%s6704_s26 + $0x68] sm:$0xff] %v3221_v43  ;;  %v3741_v35 = vadd.f32 %v3213_v34, %v3036_v61 }
 0x70d   : > { %v3222_v0 = vadd.f32 %v4017_v45, %v3740_v30 }
 0x70e   : > { %v3223_v47 = vadd.f32 %v4018_v11, %v3741_v35 }
 0x70f   : > { %3410 = vst [vmem:[%s6704_s26 + $0x70] sm:$0xff] %v3222_v0 }
 0x710   : > { %3411 = vst [vmem:[%s6704_s26 + $0x78] sm:$0xff] %v3223_v47 }
 0x711   : > { %4062 = shalt.err (!%p4059_p4)
}
 0x712   : > { %s4063_s27 = scalar_lea.hbm %s6738_s12, 2048  ;;  %s4067_s19 = scalar_lea.hbm %s6799_s11, 4096 }
 0x713   : > { %p4064_p5 = scmp.ne.s32.totalorder %s6738_s12, %s4063_s27  ;;  %p4068_p1 = scmp.lt.u32.totalorder %s6738_s12, %s6799_s11 }
 0x714   : > { %p4069_p3 = scmp.lt.u32.totalorder %s4067_s19, %s4063_s27  ;;  %p4071_p11 = scmp.lt.u32.totalorder %s4063_s27, %s6738_s12 }
 0x715   : > { %p4065_p7 = pnand %p4064_p5, %p6911_p12 }
 0x716   : > { %p4070_p6 = por %p4069_p3, %p4068_p1 }
 0x717   : > { %p4066_p9 = pneg %p4065_p7 }
 0x718   : > { %p4072_p13 = por %p4071_p11, %p4070_p6 }
 0x71a   : > { %p4073_p8 = pnand %p4072_p13, %p4066_p9 }
 0x71c   : > { %4076 = shalt.err (!%p4073_p8)
}
 0x71d   : > { %s4131_s16 = smov 256  }
 0x71e   : > { %3776 = dma.vmem_to_hbm [thread:$0]  (%p6911_p12), %s6741_s25, 2048, %s6738_s12, %s3234_s21, %s4131_s16, %s4131_s16, %s6865_s28  }
 0x71f PF: > { %s3263_s14 = sand.u32 1, %s4103_s17   ;;  %p6912_p10 = scmp.ne.s32.totalorder %s6854_s30, 0 }
 0x720   : > { %p6913_p0 = scmp.ge.s32.totalorder %s4115_s20, 2  ;;  %s3264_s27 = scalar_lea.sflag [#allocation4], %s3263_s14 }
 0x722   : > { %p3783_p2 = pnand %p6913_p0, %p6912_p10 }
 0x724   : > { %4098 = dma.done.wait (!%p3783_p2), %s3264_s27, 2048  }
 0x725   : > { %4100 = vsyncadd (!%p3783_p2), %s3264_s27, 4294965248  ;;  %s6914_s29 = sld [smem:[#allocation8_spill]]  ;;  %s6915_s19 = sld [smem:[#allocation9_spill]] }
 0x726   : > { %p24_p4 = scmp.ge.s32.totalorder %s4217_s23, 4   ;;  %s6916_s17 = smov %s4107_s18 }
 0x727   : > { %s6918_s20 = smov %s4217_s23 }
 0x728   :  { %26 = sbr.rel (!%p24_p4) target bundleno = 5 (0x5), region = 115 }
 0x72b   : > { %s6917_s18 = smov %s6914_s29 }
 0x72f   :  { %3269 = vsyncpa [#allocation3], 1 }
 0x730   :  { %3271 = vsyncpa [#allocation3 + $0x1], 1 }
 0x731   :  { %3272 = vsyncpa [#allocation4], 1 }
 0x732   :  { %3274 = vsyncpa [#allocation4 + $0x1], 1 }

</bundles_post_ra>
